<compile_context>
chip_gen: v7x
topology: tpu7x:2x2x1
jax: 0.10.0
libtpu: 0.0.40
codegen_flags: <defaults>
</compile_context>

<pallas_src>
import functools

import jax
import jax.numpy as jnp
from jax import lax
from jax.experimental import pallas as pl
from jax.experimental.pallas import tpu as pltpu


# ----------------------------------------------------------------------------
# Fused Pallas kernel: encoder LSTM -> decoder LSTM -> Linear projection
# ----------------------------------------------------------------------------
def _seq2seq_kernel(src_emb_ref, dec_emb_ref,
                    enc_wih_ref, enc_whh_ref, enc_b_ref,
                    dec_wih_ref, dec_whh_ref, dec_b_ref,
                    fc_w_ref, fc_b_ref,
                    out_ref):
    S, B, _ = src_emb_ref.shape
    Tm1 = dec_emb_ref.shape[0]          # = trg_lens - 1 decode steps
    H = enc_whh_ref.shape[0]
    V = fc_w_ref.shape[1]

    # Load all weights once; resident across the whole recurrence.
    enc_wih = enc_wih_ref[...]
    enc_whh = enc_whh_ref[...]
    enc_b = enc_b_ref[...]
    dec_wih = dec_wih_ref[...]
    dec_whh = dec_whh_ref[...]
    dec_b = dec_b_ref[...]
    fc_w = fc_w_ref[...]
    fc_b = fc_b_ref[...]

    def lstm_cell(x_t, h, c, w_ih, w_hh, b):
        # Gate layout follows PyTorch nn.LSTM: [i, f, g, o] along the 4H axis.
        # With H a multiple of 128 these slices are lane-aligned vreg views.
        gates = (jnp.dot(x_t, w_ih, preferred_element_type=jnp.float32)
                 + jnp.dot(h, w_hh, preferred_element_type=jnp.float32)
                 + b)                                        # (B, 4H)
        i_g = jax.nn.sigmoid(gates[:, 0 * H:1 * H])
        f_g = jax.nn.sigmoid(gates[:, 1 * H:2 * H])
        g_g = jnp.tanh(gates[:, 2 * H:3 * H])
        o_g = jax.nn.sigmoid(gates[:, 3 * H:4 * H])
        c_new = f_g * c + i_g * g_g
        h_new = o_g * jnp.tanh(c_new)
        return h_new, c_new

    # outputs[0] stays all-zeros, as in the reference module.
    out_ref[0] = jnp.zeros((B, V), jnp.float32)

    # ---- encoder recurrence (in-kernel loop, no per-step grid overhead) ----
    def enc_body(t, carry):
        h, c = carry
        return lstm_cell(src_emb_ref[t], h, c, enc_wih, enc_whh, enc_b)

    h0 = jnp.zeros((B, H), jnp.float32)
    c0 = jnp.zeros((B, H), jnp.float32)
    h, c = lax.fori_loop(0, S, enc_body, (h0, c0), unroll=True)

    # ---- decoder recurrence, fused with the output projection ----
    # logits_t is written straight into the final output buffer at row t+1.
    def dec_body(t, carry):
        h, c = carry
        h, c = lstm_cell(dec_emb_ref[t], h, c, dec_wih, dec_whh, dec_b)
        out_ref[t + 1] = (jnp.dot(h, fc_w, preferred_element_type=jnp.float32)
                          + fc_b)
        return h, c

    lax.fori_loop(0, Tm1, dec_body, (h, c), unroll=True)


# ----------------------------------------------------------------------------
# Wrapper
# ----------------------------------------------------------------------------
def seq2seq_pallas(src_emb, dec_emb, params, trg_lens):
    """src_emb: (S,B,E), dec_emb: (T-1,B,E) -> outputs (T,B,V)."""
    S, B, E = src_emb.shape
    Tm1 = dec_emb.shape[0]
    H = params["enc_w_hh"].shape[0]
    V = params["fc_w"].shape[1]
    T = trg_lens

    def full(shape):
        return pl.BlockSpec(shape, lambda i, _s=shape: (0,) * len(_s))

    return pl.pallas_call(
        _seq2seq_kernel,
        grid=(1,),
        in_specs=[
            full((S, B, E)),            # src_emb
            full((Tm1, B, E)),          # dec_emb
            full((E, 4 * H)),           # enc_w_ih
            full((H, 4 * H)),           # enc_w_hh
            full((1, 4 * H)),           # enc_b
            full((E, 4 * H)),           # dec_w_ih
            full((H, 4 * H)),           # dec_w_hh
            full((1, 4 * H)),           # dec_b
            full((H, V)),               # fc_w
            full((1, V)),               # fc_b
        ],
        out_specs=full((T, B, V)),
        out_shape=jax.ShapeDtypeStruct((T, B, V), jnp.float32),
        compiler_params=pltpu.CompilerParams(
            dimension_semantics=("arbitrary",)),
    )(src_emb, dec_emb,
      params["enc_w_ih"], params["enc_w_hh"], params["enc_b"],
      params["dec_w_ih"], params["dec_w_hh"], params["dec_b"],
      params["fc_w"], params["fc_b"])


# ----------------------------------------------------------------------------
# Parameter construction (deterministic, synthetic)
# ----------------------------------------------------------------------------
def init_params(key, src_vocab, trg_vocab, emb_dim, hid_dim):
    ks = jax.random.split(key, 12)
    s_lstm = 1.0 / jnp.sqrt(hid_dim)

    def unif(k, shape, scale):
        return jax.random.uniform(k, shape, jnp.float32, -scale, scale)

    return {
        # encoder
        "enc_emb": jax.random.normal(ks[0], (src_vocab, emb_dim), jnp.float32),
        "enc_w_ih": unif(ks[1], (emb_dim, 4 * hid_dim), s_lstm),
        "enc_w_hh": unif(ks[2], (hid_dim, 4 * hid_dim), s_lstm),
        "enc_b": (unif(ks[3], (1, 4 * hid_dim), s_lstm)
                  + unif(ks[4], (1, 4 * hid_dim), s_lstm)),   # b_ih + b_hh
        # decoder
        "dec_emb": jax.random.normal(ks[5], (trg_vocab, emb_dim), jnp.float32),
        "dec_w_ih": unif(ks[6], (emb_dim, 4 * hid_dim), s_lstm),
        "dec_w_hh": unif(ks[7], (hid_dim, 4 * hid_dim), s_lstm),
        "dec_b": (unif(ks[8], (1, 4 * hid_dim), s_lstm)
                  + unif(ks[9], (1, 4 * hid_dim), s_lstm)),
        # decoder output projection
        "fc_w": unif(ks[10], (hid_dim, trg_vocab), s_lstm),
        "fc_b": unif(ks[11], (1, trg_vocab), s_lstm),
    }


# ----------------------------------------------------------------------------
# Seq2Seq forward (mirrors PyTorch Seq2Seq.forward with use_pinyin=False,
# teacher_forcing_ratio=1.0)
# ----------------------------------------------------------------------------
@functools.partial(jax.jit, static_argnums=(4,))
def seq2seq_forward(params, src, src_lens, trg, trg_lens, vocab_sim=None):
    del src_lens, vocab_sim  # see TODO(synk); pinyin branch dead for use_pinyin=False

    # Embedding gathers stay in plain JAX (glue around the fused kernel).
    src_emb = jnp.take(params["enc_emb"], src, axis=0)        # (S, B, E)
    dec_in = trg[:trg_lens - 1]                               # (T-1, B)
    dec_emb = jnp.take(params["dec_emb"], dec_in, axis=0)     # (T-1, B, E)

    return seq2seq_pallas(src_emb, dec_emb, params, trg_lens)  # (T, B, V)


# ----------------------------------------------------------------------------
if __name__ == "__main__":
    key = jax.random.PRNGKey(0)
    k_params, k_src, k_trg = jax.random.split(key, 3)

    # Small but lane/sublane-aligned shapes (B multiple of 8, feature dims
    # multiples of 128) so gate slices are free vreg views and stores are
    # lane-dense.
    SRC_VOCAB = 128
    TRG_VOCAB = 128
    EMB_DIM = 128
    HID_DIM = 128
    BATCH = 8
    SRC_LEN = 8
    TRG_LEN = 8

    params = init_params(k_params, SRC_VOCAB, TRG_VOCAB, EMB_DIM, HID_DIM)

    src = jax.random.randint(k_src, (SRC_LEN, BATCH), 0, SRC_VOCAB, jnp.int32)
    trg = jax.random.randint(k_trg, (TRG_LEN, BATCH), 0, TRG_VOCAB, jnp.int32)
    src_lens = jnp.full((BATCH,), SRC_LEN, jnp.int32)

    outputs = seq2seq_forward(params, src, src_lens, trg, TRG_LEN)
    outputs = jax.block_until_ready(outputs)

    assert outputs.shape == (TRG_LEN, BATCH, TRG_VOCAB)
    assert outputs.dtype == jnp.float32
    assert bool(jnp.all(outputs[0] == 0.0))
    assert bool(jnp.all(jnp.isfinite(outputs)))

    print("KERNEL_OK")
</pallas_src>

<mosaic_0001>
module attributes {stable_mosaic.version = 11 : i64} {
  func.func @_seq2seq_kernel(%arg0: i32, %arg1: memref<8x8x128xf32, #tpu.memory_space<vmem>>, %arg2: memref<7x8x128xf32, #tpu.memory_space<vmem>>, %arg3: memref<128x512xf32, #tpu.memory_space<vmem>>, %arg4: memref<128x512xf32, #tpu.memory_space<vmem>>, %arg5: memref<1x512xf32, #tpu.memory_space<vmem>>, %arg6: memref<128x512xf32, #tpu.memory_space<vmem>>, %arg7: memref<128x512xf32, #tpu.memory_space<vmem>>, %arg8: memref<1x512xf32, #tpu.memory_space<vmem>>, %arg9: memref<128x128xf32, #tpu.memory_space<vmem>>, %arg10: memref<1x128xf32, #tpu.memory_space<vmem>>, %arg11: memref<8x8x128xf32, #tpu.memory_space<vmem>>) attributes {dimension_semantics = [#tpu.dimension_semantics<arbitrary>], iteration_bounds = array<i64: 1>, scalar_prefetch = 0 : i64, scratch_operands = 0 : i64, tpu.core_type = #tpu.core_type<tc>, window_params = [{pipeline_mode = #tpu.pipeline_mode<synchronous>, transform_indices = @transform_0, window_bounds = array<i64: 8, 8, 128>}, {pipeline_mode = #tpu.pipeline_mode<synchronous>, transform_indices = @transform_1, window_bounds = array<i64: 7, 8, 128>}, {pipeline_mode = #tpu.pipeline_mode<synchronous>, transform_indices = @transform_2, window_bounds = array<i64: 128, 512>}, {pipeline_mode = #tpu.pipeline_mode<synchronous>, transform_indices = @transform_3, window_bounds = array<i64: 128, 512>}, {pipeline_mode = #tpu.pipeline_mode<synchronous>, transform_indices = @transform_4, window_bounds = array<i64: 1, 512>}, {pipeline_mode = #tpu.pipeline_mode<synchronous>, transform_indices = @transform_5, window_bounds = array<i64: 128, 512>}, {pipeline_mode = #tpu.pipeline_mode<synchronous>, transform_indices = @transform_6, window_bounds = array<i64: 128, 512>}, {pipeline_mode = #tpu.pipeline_mode<synchronous>, transform_indices = @transform_7, window_bounds = array<i64: 1, 512>}, {pipeline_mode = #tpu.pipeline_mode<synchronous>, transform_indices = @transform_8, window_bounds = array<i64: 128, 128>}, {pipeline_mode = #tpu.pipeline_mode<synchronous>, transform_indices = @transform_9, window_bounds = array<i64: 1, 128>}, {pipeline_mode = #tpu.pipeline_mode<synchronous>, transform_indices = @transform_10, window_bounds = array<i64: 8, 8, 128>}]} {
    %c0 = arith.constant 0 : index
    %c0_0 = arith.constant 0 : index
    %0 = vector.load %arg3[%c0, %c0_0] : memref<128x512xf32, #tpu.memory_space<vmem>>, vector<128x512xf32>
    %c0_1 = arith.constant 0 : index
    %c0_2 = arith.constant 0 : index
    %1 = vector.load %arg4[%c0_1, %c0_2] : memref<128x512xf32, #tpu.memory_space<vmem>>, vector<128x512xf32>
    %c0_3 = arith.constant 0 : index
    %c0_4 = arith.constant 0 : index
    %2 = vector.load %arg5[%c0_3, %c0_4] : memref<1x512xf32, #tpu.memory_space<vmem>>, vector<1x512xf32>
    %c0_5 = arith.constant 0 : index
    %c0_6 = arith.constant 0 : index
    %3 = vector.load %arg6[%c0_5, %c0_6] : memref<128x512xf32, #tpu.memory_space<vmem>>, vector<128x512xf32>
    %c0_7 = arith.constant 0 : index
    %c0_8 = arith.constant 0 : index
    %4 = vector.load %arg7[%c0_7, %c0_8] : memref<128x512xf32, #tpu.memory_space<vmem>>, vector<128x512xf32>
    %c0_9 = arith.constant 0 : index
    %c0_10 = arith.constant 0 : index
    %5 = vector.load %arg8[%c0_9, %c0_10] : memref<1x512xf32, #tpu.memory_space<vmem>>, vector<1x512xf32>
    %c0_11 = arith.constant 0 : index
    %c0_12 = arith.constant 0 : index
    %6 = vector.load %arg9[%c0_11, %c0_12] : memref<128x128xf32, #tpu.memory_space<vmem>>, vector<128x128xf32>
    %c0_13 = arith.constant 0 : index
    %c0_14 = arith.constant 0 : index
    %7 = vector.load %arg10[%c0_13, %c0_14] : memref<1x128xf32, #tpu.memory_space<vmem>>, vector<1x128xf32>
    %cst = arith.constant 0.000000e+00 : f32
    %8 = vector.broadcast %cst : f32 to vector<8x128xf32>
    %c0_15 = arith.constant 0 : index
    %c0_16 = arith.constant 0 : index
    %c0_17 = arith.constant 0 : index
    %9 = vector.load %arg11[%c0_15, %c0_16, %c0_17] : memref<8x8x128xf32, #tpu.memory_space<vmem>>, vector<1x8x128xf32>
    %10 = vector.shape_cast %9 : vector<1x8x128xf32> to vector<8x128xf32>
    %11 = vector.shape_cast %8 : vector<8x128xf32> to vector<1x8x128xf32>
    tpu.vector_store %arg11[%c0_15, %c0_16, %c0_17], %11 {strides = array<i32>} : memref<8x8x128xf32, #tpu.memory_space<vmem>>, vector<1x8x128xf32>,
    %cst_18 = arith.constant 0.000000e+00 : f32
    %12 = vector.broadcast %cst_18 : f32 to vector<8x128xf32>
    %cst_19 = arith.constant 0.000000e+00 : f32
    %13 = vector.broadcast %cst_19 : f32 to vector<8x128xf32>
    %c0_i32 = arith.constant 0 : i32
    %14 = arith.index_cast %c0_i32 : i32 to index
    %c0_20 = arith.constant 0 : index
    %c0_21 = arith.constant 0 : index
    %15 = vector.load %arg1[%14, %c0_20, %c0_21] : memref<8x8x128xf32, #tpu.memory_space<vmem>>, vector<1x8x128xf32>
    %16 = vector.shape_cast %15 : vector<1x8x128xf32> to vector<8x128xf32>
    %cst_22 = arith.constant dense<0.000000e+00> : vector<8x512xf32>
    %17 = tpu.matmul %16, %0, %cst_22 {dimension_numbers = #tpu.dot_dimension_numbers<[1], [0], [0], [1], [0, 0, 1, 1], [], []>} : vector<8x128xf32>, vector<128x512xf32>, vector<8x512xf32> -> vector<8x512xf32>
    %cst_23 = arith.constant dense<0.000000e+00> : vector<8x512xf32>
    %18 = tpu.matmul %12, %1, %cst_23 {dimension_numbers = #tpu.dot_dimension_numbers<[1], [0], [0], [1], [0, 0, 1, 1], [], []>} : vector<8x128xf32>, vector<128x512xf32>, vector<8x512xf32> -> vector<8x512xf32>
    %19 = arith.addf %17, %18 : vector<8x512xf32>
    %20 = vector.broadcast %2 : vector<1x512xf32> to vector<8x512xf32>
    %21 = arith.addf %19, %20 : vector<8x512xf32>
    %22 = vector.extract_strided_slice %21 {offsets = [0, 0], sizes = [8, 128], strides = [1, 1]} : vector<8x512xf32> to vector<8x128xf32>
    %23 = arith.negf %22 : vector<8x128xf32>
    %24 = math.exp %23 : vector<8x128xf32>
    %cst_24 = arith.constant 1.000000e+00 : f32
    %25 = vector.broadcast %cst_24 : f32 to vector<8x128xf32>
    %26 = arith.addf %25, %24 : vector<8x128xf32>
    %27 = arith.divf %25, %26 : vector<8x128xf32>
    %28 = vector.extract_strided_slice %21 {offsets = [0, 128], sizes = [8, 128], strides = [1, 1]} : vector<8x512xf32> to vector<8x128xf32>
    %29 = arith.negf %28 : vector<8x128xf32>
    %30 = math.exp %29 : vector<8x128xf32>
    %cst_25 = arith.constant 1.000000e+00 : f32
    %31 = vector.broadcast %cst_25 : f32 to vector<8x128xf32>
    %32 = arith.addf %31, %30 : vector<8x128xf32>
    %33 = arith.divf %31, %32 : vector<8x128xf32>
    %34 = vector.extract_strided_slice %21 {offsets = [0, 256], sizes = [8, 128], strides = [1, 1]} : vector<8x512xf32> to vector<8x128xf32>
    %35 = math.tanh %34 : vector<8x128xf32>
    %36 = vector.extract_strided_slice %21 {offsets = [0, 384], sizes = [8, 128], strides = [1, 1]} : vector<8x512xf32> to vector<8x128xf32>
    %37 = arith.negf %36 : vector<8x128xf32>
    %38 = math.exp %37 : vector<8x128xf32>
    %cst_26 = arith.constant 1.000000e+00 : f32
    %39 = vector.broadcast %cst_26 : f32 to vector<8x128xf32>
    %40 = arith.addf %39, %38 : vector<8x128xf32>
    %41 = arith.divf %39, %40 : vector<8x128xf32>
    %42 = arith.mulf %33, %13 : vector<8x128xf32>
    %43 = arith.mulf %27, %35 : vector<8x128xf32>
    %44 = arith.addf %42, %43 : vector<8x128xf32>
    %45 = math.tanh %44 : vector<8x128xf32>
    %46 = arith.mulf %41, %45 : vector<8x128xf32>
    %c1_i32 = arith.constant 1 : i32
    %47 = arith.index_cast %c1_i32 : i32 to index
    %c0_27 = arith.constant 0 : index
    %c0_28 = arith.constant 0 : index
    %48 = vector.load %arg1[%47, %c0_27, %c0_28] : memref<8x8x128xf32, #tpu.memory_space<vmem>>, vector<1x8x128xf32>
    %49 = vector.shape_cast %48 : vector<1x8x128xf32> to vector<8x128xf32>
    %cst_29 = arith.constant dense<0.000000e+00> : vector<8x512xf32>
    %50 = tpu.matmul %49, %0, %cst_29 {dimension_numbers = #tpu.dot_dimension_numbers<[1], [0], [0], [1], [0, 0, 1, 1], [], []>} : vector<8x128xf32>, vector<128x512xf32>, vector<8x512xf32> -> vector<8x512xf32>
    %cst_30 = arith.constant dense<0.000000e+00> : vector<8x512xf32>
    %51 = tpu.matmul %46, %1, %cst_30 {dimension_numbers = #tpu.dot_dimension_numbers<[1], [0], [0], [1], [0, 0, 1, 1], [], []>} : vector<8x128xf32>, vector<128x512xf32>, vector<8x512xf32> -> vector<8x512xf32>
    %52 = arith.addf %50, %51 : vector<8x512xf32>
    %53 = vector.broadcast %2 : vector<1x512xf32> to vector<8x512xf32>
    %54 = arith.addf %52, %53 : vector<8x512xf32>
    %55 = vector.extract_strided_slice %54 {offsets = [0, 0], sizes = [8, 128], strides = [1, 1]} : vector<8x512xf32> to vector<8x128xf32>
    %56 = arith.negf %55 : vector<8x128xf32>
    %57 = math.exp %56 : vector<8x128xf32>
    %cst_31 = arith.constant 1.000000e+00 : f32
    %58 = vector.broadcast %cst_31 : f32 to vector<8x128xf32>
    %59 = arith.addf %58, %57 : vector<8x128xf32>
    %60 = arith.divf %58, %59 : vector<8x128xf32>
    %61 = vector.extract_strided_slice %54 {offsets = [0, 128], sizes = [8, 128], strides = [1, 1]} : vector<8x512xf32> to vector<8x128xf32>
    %62 = arith.negf %61 : vector<8x128xf32>
    %63 = math.exp %62 : vector<8x128xf32>
    %cst_32 = arith.constant 1.000000e+00 : f32
    %64 = vector.broadcast %cst_32 : f32 to vector<8x128xf32>
    %65 = arith.addf %64, %63 : vector<8x128xf32>
    %66 = arith.divf %64, %65 : vector<8x128xf32>
    %67 = vector.extract_strided_slice %54 {offsets = [0, 256], sizes = [8, 128], strides = [1, 1]} : vector<8x512xf32> to vector<8x128xf32>
    %68 = math.tanh %67 : vector<8x128xf32>
    %69 = vector.extract_strided_slice %54 {offsets = [0, 384], sizes = [8, 128], strides = [1, 1]} : vector<8x512xf32> to vector<8x128xf32>
    %70 = arith.negf %69 : vector<8x128xf32>
    %71 = math.exp %70 : vector<8x128xf32>
    %cst_33 = arith.constant 1.000000e+00 : f32
    %72 = vector.broadcast %cst_33 : f32 to vector<8x128xf32>
    %73 = arith.addf %72, %71 : vector<8x128xf32>
    %74 = arith.divf %72, %73 : vector<8x128xf32>
    %75 = arith.mulf %66, %44 : vector<8x128xf32>
    %76 = arith.mulf %60, %68 : vector<8x128xf32>
    %77 = arith.addf %75, %76 : vector<8x128xf32>
    %78 = math.tanh %77 : vector<8x128xf32>
    %79 = arith.mulf %74, %78 : vector<8x128xf32>
    %c2_i32 = arith.constant 2 : i32
    %80 = arith.index_cast %c2_i32 : i32 to index
    %c0_34 = arith.constant 0 : index
    %c0_35 = arith.constant 0 : index
    %81 = vector.load %arg1[%80, %c0_34, %c0_35] : memref<8x8x128xf32, #tpu.memory_space<vmem>>, vector<1x8x128xf32>
    %82 = vector.shape_cast %81 : vector<1x8x128xf32> to vector<8x128xf32>
    %cst_36 = arith.constant dense<0.000000e+00> : vector<8x512xf32>
    %83 = tpu.matmul %82, %0, %cst_36 {dimension_numbers = #tpu.dot_dimension_numbers<[1], [0], [0], [1], [0, 0, 1, 1], [], []>} : vector<8x128xf32>, vector<128x512xf32>, vector<8x512xf32> -> vector<8x512xf32>
    %cst_37 = arith.constant dense<0.000000e+00> : vector<8x512xf32>
    %84 = tpu.matmul %79, %1, %cst_37 {dimension_numbers = #tpu.dot_dimension_numbers<[1], [0], [0], [1], [0, 0, 1, 1], [], []>} : vector<8x128xf32>, vector<128x512xf32>, vector<8x512xf32> -> vector<8x512xf32>
    %85 = arith.addf %83, %84 : vector<8x512xf32>
    %86 = vector.broadcast %2 : vector<1x512xf32> to vector<8x512xf32>
    %87 = arith.addf %85, %86 : vector<8x512xf32>
    %88 = vector.extract_strided_slice %87 {offsets = [0, 0], sizes = [8, 128], strides = [1, 1]} : vector<8x512xf32> to vector<8x128xf32>
    %89 = arith.negf %88 : vector<8x128xf32>
    %90 = math.exp %89 : vector<8x128xf32>
    %cst_38 = arith.constant 1.000000e+00 : f32
    %91 = vector.broadcast %cst_38 : f32 to vector<8x128xf32>
    %92 = arith.addf %91, %90 : vector<8x128xf32>
    %93 = arith.divf %91, %92 : vector<8x128xf32>
    %94 = vector.extract_strided_slice %87 {offsets = [0, 128], sizes = [8, 128], strides = [1, 1]} : vector<8x512xf32> to vector<8x128xf32>
    %95 = arith.negf %94 : vector<8x128xf32>
    %96 = math.exp %95 : vector<8x128xf32>
    %cst_39 = arith.constant 1.000000e+00 : f32
    %97 = vector.broadcast %cst_39 : f32 to vector<8x128xf32>
    %98 = arith.addf %97, %96 : vector<8x128xf32>
    %99 = arith.divf %97, %98 : vector<8x128xf32>
    %100 = vector.extract_strided_slice %87 {offsets = [0, 256], sizes = [8, 128], strides = [1, 1]} : vector<8x512xf32> to vector<8x128xf32>
    %101 = math.tanh %100 : vector<8x128xf32>
    %102 = vector.extract_strided_slice %87 {offsets = [0, 384], sizes = [8, 128], strides = [1, 1]} : vector<8x512xf32> to vector<8x128xf32>
    %103 = arith.negf %102 : vector<8x128xf32>
    %104 = math.exp %103 : vector<8x128xf32>
    %cst_40 = arith.constant 1.000000e+00 : f32
    %105 = vector.broadcast %cst_40 : f32 to vector<8x128xf32>
    %106 = arith.addf %105, %104 : vector<8x128xf32>
    %107 = arith.divf %105, %106 : vector<8x128xf32>
    %108 = arith.mulf %99, %77 : vector<8x128xf32>
    %109 = arith.mulf %93, %101 : vector<8x128xf32>
    %110 = arith.addf %108, %109 : vector<8x128xf32>
    %111 = math.tanh %110 : vector<8x128xf32>
    %112 = arith.mulf %107, %111 : vector<8x128xf32>
    %c3_i32 = arith.constant 3 : i32
    %113 = arith.index_cast %c3_i32 : i32 to index
    %c0_41 = arith.constant 0 : index
    %c0_42 = arith.constant 0 : index
    %114 = vector.load %arg1[%113, %c0_41, %c0_42] : memref<8x8x128xf32, #tpu.memory_space<vmem>>, vector<1x8x128xf32>
    %115 = vector.shape_cast %114 : vector<1x8x128xf32> to vector<8x128xf32>
    %cst_43 = arith.constant dense<0.000000e+00> : vector<8x512xf32>
    %116 = tpu.matmul %115, %0, %cst_43 {dimension_numbers = #tpu.dot_dimension_numbers<[1], [0], [0], [1], [0, 0, 1, 1], [], []>} : vector<8x128xf32>, vector<128x512xf32>, vector<8x512xf32> -> vector<8x512xf32>
    %cst_44 = arith.constant dense<0.000000e+00> : vector<8x512xf32>
    %117 = tpu.matmul %112, %1, %cst_44 {dimension_numbers = #tpu.dot_dimension_numbers<[1], [0], [0], [1], [0, 0, 1, 1], [], []>} : vector<8x128xf32>, vector<128x512xf32>, vector<8x512xf32> -> vector<8x512xf32>
    %118 = arith.addf %116, %117 : vector<8x512xf32>
    %119 = vector.broadcast %2 : vector<1x512xf32> to vector<8x512xf32>
    %120 = arith.addf %118, %119 : vector<8x512xf32>
    %121 = vector.extract_strided_slice %120 {offsets = [0, 0], sizes = [8, 128], strides = [1, 1]} : vector<8x512xf32> to vector<8x128xf32>
    %122 = arith.negf %121 : vector<8x128xf32>
    %123 = math.exp %122 : vector<8x128xf32>
    %cst_45 = arith.constant 1.000000e+00 : f32
    %124 = vector.broadcast %cst_45 : f32 to vector<8x128xf32>
    %125 = arith.addf %124, %123 : vector<8x128xf32>
    %126 = arith.divf %124, %125 : vector<8x128xf32>
    %127 = vector.extract_strided_slice %120 {offsets = [0, 128], sizes = [8, 128], strides = [1, 1]} : vector<8x512xf32> to vector<8x128xf32>
    %128 = arith.negf %127 : vector<8x128xf32>
    %129 = math.exp %128 : vector<8x128xf32>
    %cst_46 = arith.constant 1.000000e+00 : f32
    %130 = vector.broadcast %cst_46 : f32 to vector<8x128xf32>
    %131 = arith.addf %130, %129 : vector<8x128xf32>
    %132 = arith.divf %130, %131 : vector<8x128xf32>
    %133 = vector.extract_strided_slice %120 {offsets = [0, 256], sizes = [8, 128], strides = [1, 1]} : vector<8x512xf32> to vector<8x128xf32>
    %134 = math.tanh %133 : vector<8x128xf32>
    %135 = vector.extract_strided_slice %120 {offsets = [0, 384], sizes = [8, 128], strides = [1, 1]} : vector<8x512xf32> to vector<8x128xf32>
    %136 = arith.negf %135 : vector<8x128xf32>
    %137 = math.exp %136 : vector<8x128xf32>
    %cst_47 = arith.constant 1.000000e+00 : f32
    %138 = vector.broadcast %cst_47 : f32 to vector<8x128xf32>
    %139 = arith.addf %138, %137 : vector<8x128xf32>
    %140 = arith.divf %138, %139 : vector<8x128xf32>
    %141 = arith.mulf %132, %110 : vector<8x128xf32>
    %142 = arith.mulf %126, %134 : vector<8x128xf32>
    %143 = arith.addf %141, %142 : vector<8x128xf32>
    %144 = math.tanh %143 : vector<8x128xf32>
    %145 = arith.mulf %140, %144 : vector<8x128xf32>
    %c4_i32 = arith.constant 4 : i32
    %146 = arith.index_cast %c4_i32 : i32 to index
    %c0_48 = arith.constant 0 : index
    %c0_49 = arith.constant 0 : index
    %147 = vector.load %arg1[%146, %c0_48, %c0_49] : memref<8x8x128xf32, #tpu.memory_space<vmem>>, vector<1x8x128xf32>
    %148 = vector.shape_cast %147 : vector<1x8x128xf32> to vector<8x128xf32>
    %cst_50 = arith.constant dense<0.000000e+00> : vector<8x512xf32>
    %149 = tpu.matmul %148, %0, %cst_50 {dimension_numbers = #tpu.dot_dimension_numbers<[1], [0], [0], [1], [0, 0, 1, 1], [], []>} : vector<8x128xf32>, vector<128x512xf32>, vector<8x512xf32> -> vector<8x512xf32>
    %cst_51 = arith.constant dense<0.000000e+00> : vector<8x512xf32>
    %150 = tpu.matmul %145, %1, %cst_51 {dimension_numbers = #tpu.dot_dimension_numbers<[1], [0], [0], [1], [0, 0, 1, 1], [], []>} : vector<8x128xf32>, vector<128x512xf32>, vector<8x512xf32> -> vector<8x512xf32>
    %151 = arith.addf %149, %150 : vector<8x512xf32>
    %152 = vector.broadcast %2 : vector<1x512xf32> to vector<8x512xf32>
    %153 = arith.addf %151, %152 : vector<8x512xf32>
    %154 = vector.extract_strided_slice %153 {offsets = [0, 0], sizes = [8, 128], strides = [1, 1]} : vector<8x512xf32> to vector<8x128xf32>
    %155 = arith.negf %154 : vector<8x128xf32>
    %156 = math.exp %155 : vector<8x128xf32>
    %cst_52 = arith.constant 1.000000e+00 : f32
    %157 = vector.broadcast %cst_52 : f32 to vector<8x128xf32>
    %158 = arith.addf %157, %156 : vector<8x128xf32>
    %159 = arith.divf %157, %158 : vector<8x128xf32>
    %160 = vector.extract_strided_slice %153 {offsets = [0, 128], sizes = [8, 128], strides = [1, 1]} : vector<8x512xf32> to vector<8x128xf32>
    %161 = arith.negf %160 : vector<8x128xf32>
    %162 = math.exp %161 : vector<8x128xf32>
    %cst_53 = arith.constant 1.000000e+00 : f32
    %163 = vector.broadcast %cst_53 : f32 to vector<8x128xf32>
    %164 = arith.addf %163, %162 : vector<8x128xf32>
    %165 = arith.divf %163, %164 : vector<8x128xf32>
    %166 = vector.extract_strided_slice %153 {offsets = [0, 256], sizes = [8, 128], strides = [1, 1]} : vector<8x512xf32> to vector<8x128xf32>
    %167 = math.tanh %166 : vector<8x128xf32>
    %168 = vector.extract_strided_slice %153 {offsets = [0, 384], sizes = [8, 128], strides = [1, 1]} : vector<8x512xf32> to vector<8x128xf32>
    %169 = arith.negf %168 : vector<8x128xf32>
    %170 = math.exp %169 : vector<8x128xf32>
    %cst_54 = arith.constant 1.000000e+00 : f32
    %171 = vector.broadcast %cst_54 : f32 to vector<8x128xf32>
    %172 = arith.addf %171, %170 : vector<8x128xf32>
    %173 = arith.divf %171, %172 : vector<8x128xf32>
    %174 = arith.mulf %165, %143 : vector<8x128xf32>
    %175 = arith.mulf %159, %167 : vector<8x128xf32>
    %176 = arith.addf %174, %175 : vector<8x128xf32>
    %177 = math.tanh %176 : vector<8x128xf32>
    %178 = arith.mulf %173, %177 : vector<8x128xf32>
    %c5_i32 = arith.constant 5 : i32
    %179 = arith.index_cast %c5_i32 : i32 to index
    %c0_55 = arith.constant 0 : index
    %c0_56 = arith.constant 0 : index
    %180 = vector.load %arg1[%179, %c0_55, %c0_56] : memref<8x8x128xf32, #tpu.memory_space<vmem>>, vector<1x8x128xf32>
    %181 = vector.shape_cast %180 : vector<1x8x128xf32> to vector<8x128xf32>
    %cst_57 = arith.constant dense<0.000000e+00> : vector<8x512xf32>
    %182 = tpu.matmul %181, %0, %cst_57 {dimension_numbers = #tpu.dot_dimension_numbers<[1], [0], [0], [1], [0, 0, 1, 1], [], []>} : vector<8x128xf32>, vector<128x512xf32>, vector<8x512xf32> -> vector<8x512xf32>
    %cst_58 = arith.constant dense<0.000000e+00> : vector<8x512xf32>
    %183 = tpu.matmul %178, %1, %cst_58 {dimension_numbers = #tpu.dot_dimension_numbers<[1], [0], [0], [1], [0, 0, 1, 1], [], []>} : vector<8x128xf32>, vector<128x512xf32>, vector<8x512xf32> -> vector<8x512xf32>
    %184 = arith.addf %182, %183 : vector<8x512xf32>
    %185 = vector.broadcast %2 : vector<1x512xf32> to vector<8x512xf32>
    %186 = arith.addf %184, %185 : vector<8x512xf32>
    %187 = vector.extract_strided_slice %186 {offsets = [0, 0], sizes = [8, 128], strides = [1, 1]} : vector<8x512xf32> to vector<8x128xf32>
    %188 = arith.negf %187 : vector<8x128xf32>
    %189 = math.exp %188 : vector<8x128xf32>
    %cst_59 = arith.constant 1.000000e+00 : f32
    %190 = vector.broadcast %cst_59 : f32 to vector<8x128xf32>
    %191 = arith.addf %190, %189 : vector<8x128xf32>
    %192 = arith.divf %190, %191 : vector<8x128xf32>
    %193 = vector.extract_strided_slice %186 {offsets = [0, 128], sizes = [8, 128], strides = [1, 1]} : vector<8x512xf32> to vector<8x128xf32>
    %194 = arith.negf %193 : vector<8x128xf32>
    %195 = math.exp %194 : vector<8x128xf32>
    %cst_60 = arith.constant 1.000000e+00 : f32
    %196 = vector.broadcast %cst_60 : f32 to vector<8x128xf32>
    %197 = arith.addf %196, %195 : vector<8x128xf32>
    %198 = arith.divf %196, %197 : vector<8x128xf32>
    %199 = vector.extract_strided_slice %186 {offsets = [0, 256], sizes = [8, 128], strides = [1, 1]} : vector<8x512xf32> to vector<8x128xf32>
    %200 = math.tanh %199 : vector<8x128xf32>
    %201 = vector.extract_strided_slice %186 {offsets = [0, 384], sizes = [8, 128], strides = [1, 1]} : vector<8x512xf32> to vector<8x128xf32>
    %202 = arith.negf %201 : vector<8x128xf32>
    %203 = math.exp %202 : vector<8x128xf32>
    %cst_61 = arith.constant 1.000000e+00 : f32
    %204 = vector.broadcast %cst_61 : f32 to vector<8x128xf32>
    %205 = arith.addf %204, %203 : vector<8x128xf32>
    %206 = arith.divf %204, %205 : vector<8x128xf32>
    %207 = arith.mulf %198, %176 : vector<8x128xf32>
    %208 = arith.mulf %192, %200 : vector<8x128xf32>
    %209 = arith.addf %207, %208 : vector<8x128xf32>
    %210 = math.tanh %209 : vector<8x128xf32>
    %211 = arith.mulf %206, %210 : vector<8x128xf32>
    %c6_i32 = arith.constant 6 : i32
    %212 = arith.index_cast %c6_i32 : i32 to index
    %c0_62 = arith.constant 0 : index
    %c0_63 = arith.constant 0 : index
    %213 = vector.load %arg1[%212, %c0_62, %c0_63] : memref<8x8x128xf32, #tpu.memory_space<vmem>>, vector<1x8x128xf32>
    %214 = vector.shape_cast %213 : vector<1x8x128xf32> to vector<8x128xf32>
    %cst_64 = arith.constant dense<0.000000e+00> : vector<8x512xf32>
    %215 = tpu.matmul %214, %0, %cst_64 {dimension_numbers = #tpu.dot_dimension_numbers<[1], [0], [0], [1], [0, 0, 1, 1], [], []>} : vector<8x128xf32>, vector<128x512xf32>, vector<8x512xf32> -> vector<8x512xf32>
    %cst_65 = arith.constant dense<0.000000e+00> : vector<8x512xf32>
    %216 = tpu.matmul %211, %1, %cst_65 {dimension_numbers = #tpu.dot_dimension_numbers<[1], [0], [0], [1], [0, 0, 1, 1], [], []>} : vector<8x128xf32>, vector<128x512xf32>, vector<8x512xf32> -> vector<8x512xf32>
    %217 = arith.addf %215, %216 : vector<8x512xf32>
    %218 = vector.broadcast %2 : vector<1x512xf32> to vector<8x512xf32>
    %219 = arith.addf %217, %218 : vector<8x512xf32>
    %220 = vector.extract_strided_slice %219 {offsets = [0, 0], sizes = [8, 128], strides = [1, 1]} : vector<8x512xf32> to vector<8x128xf32>
    %221 = arith.negf %220 : vector<8x128xf32>
    %222 = math.exp %221 : vector<8x128xf32>
    %cst_66 = arith.constant 1.000000e+00 : f32
    %223 = vector.broadcast %cst_66 : f32 to vector<8x128xf32>
    %224 = arith.addf %223, %222 : vector<8x128xf32>
    %225 = arith.divf %223, %224 : vector<8x128xf32>
    %226 = vector.extract_strided_slice %219 {offsets = [0, 128], sizes = [8, 128], strides = [1, 1]} : vector<8x512xf32> to vector<8x128xf32>
    %227 = arith.negf %226 : vector<8x128xf32>
    %228 = math.exp %227 : vector<8x128xf32>
    %cst_67 = arith.constant 1.000000e+00 : f32
    %229 = vector.broadcast %cst_67 : f32 to vector<8x128xf32>
    %230 = arith.addf %229, %228 : vector<8x128xf32>
    %231 = arith.divf %229, %230 : vector<8x128xf32>
    %232 = vector.extract_strided_slice %219 {offsets = [0, 256], sizes = [8, 128], strides = [1, 1]} : vector<8x512xf32> to vector<8x128xf32>
    %233 = math.tanh %232 : vector<8x128xf32>
    %234 = vector.extract_strided_slice %219 {offsets = [0, 384], sizes = [8, 128], strides = [1, 1]} : vector<8x512xf32> to vector<8x128xf32>
    %235 = arith.negf %234 : vector<8x128xf32>
    %236 = math.exp %235 : vector<8x128xf32>
    %cst_68 = arith.constant 1.000000e+00 : f32
    %237 = vector.broadcast %cst_68 : f32 to vector<8x128xf32>
    %238 = arith.addf %237, %236 : vector<8x128xf32>
    %239 = arith.divf %237, %238 : vector<8x128xf32>
    %240 = arith.mulf %231, %209 : vector<8x128xf32>
    %241 = arith.mulf %225, %233 : vector<8x128xf32>
    %242 = arith.addf %240, %241 : vector<8x128xf32>
    %243 = math.tanh %242 : vector<8x128xf32>
    %244 = arith.mulf %239, %243 : vector<8x128xf32>
    %c7_i32 = arith.constant 7 : i32
    %245 = arith.index_cast %c7_i32 : i32 to index
    %c0_69 = arith.constant 0 : index
    %c0_70 = arith.constant 0 : index
    %246 = vector.load %arg1[%245, %c0_69, %c0_70] : memref<8x8x128xf32, #tpu.memory_space<vmem>>, vector<1x8x128xf32>
    %247 = vector.shape_cast %246 : vector<1x8x128xf32> to vector<8x128xf32>
    %cst_71 = arith.constant dense<0.000000e+00> : vector<8x512xf32>
    %248 = tpu.matmul %247, %0, %cst_71 {dimension_numbers = #tpu.dot_dimension_numbers<[1], [0], [0], [1], [0, 0, 1, 1], [], []>} : vector<8x128xf32>, vector<128x512xf32>, vector<8x512xf32> -> vector<8x512xf32>
    %cst_72 = arith.constant dense<0.000000e+00> : vector<8x512xf32>
    %249 = tpu.matmul %244, %1, %cst_72 {dimension_numbers = #tpu.dot_dimension_numbers<[1], [0], [0], [1], [0, 0, 1, 1], [], []>} : vector<8x128xf32>, vector<128x512xf32>, vector<8x512xf32> -> vector<8x512xf32>
    %250 = arith.addf %248, %249 : vector<8x512xf32>
    %251 = vector.broadcast %2 : vector<1x512xf32> to vector<8x512xf32>
    %252 = arith.addf %250, %251 : vector<8x512xf32>
    %253 = vector.extract_strided_slice %252 {offsets = [0, 0], sizes = [8, 128], strides = [1, 1]} : vector<8x512xf32> to vector<8x128xf32>
    %254 = arith.negf %253 : vector<8x128xf32>
    %255 = math.exp %254 : vector<8x128xf32>
    %cst_73 = arith.constant 1.000000e+00 : f32
    %256 = vector.broadcast %cst_73 : f32 to vector<8x128xf32>
    %257 = arith.addf %256, %255 : vector<8x128xf32>
    %258 = arith.divf %256, %257 : vector<8x128xf32>
    %259 = vector.extract_strided_slice %252 {offsets = [0, 128], sizes = [8, 128], strides = [1, 1]} : vector<8x512xf32> to vector<8x128xf32>
    %260 = arith.negf %259 : vector<8x128xf32>
    %261 = math.exp %260 : vector<8x128xf32>
    %cst_74 = arith.constant 1.000000e+00 : f32
    %262 = vector.broadcast %cst_74 : f32 to vector<8x128xf32>
    %263 = arith.addf %262, %261 : vector<8x128xf32>
    %264 = arith.divf %262, %263 : vector<8x128xf32>
    %265 = vector.extract_strided_slice %252 {offsets = [0, 256], sizes = [8, 128], strides = [1, 1]} : vector<8x512xf32> to vector<8x128xf32>
    %266 = math.tanh %265 : vector<8x128xf32>
    %267 = vector.extract_strided_slice %252 {offsets = [0, 384], sizes = [8, 128], strides = [1, 1]} : vector<8x512xf32> to vector<8x128xf32>
    %268 = arith.negf %267 : vector<8x128xf32>
    %269 = math.exp %268 : vector<8x128xf32>
    %cst_75 = arith.constant 1.000000e+00 : f32
    %270 = vector.broadcast %cst_75 : f32 to vector<8x128xf32>
    %271 = arith.addf %270, %269 : vector<8x128xf32>
    %272 = arith.divf %270, %271 : vector<8x128xf32>
    %273 = arith.mulf %264, %242 : vector<8x128xf32>
    %274 = arith.mulf %258, %266 : vector<8x128xf32>
    %275 = arith.addf %273, %274 : vector<8x128xf32>
    %276 = math.tanh %275 : vector<8x128xf32>
    %277 = arith.mulf %272, %276 : vector<8x128xf32>
    %c8_i32 = arith.constant 8 : i32
    %c0_i32_76 = arith.constant 0 : i32
    %278 = arith.index_cast %c0_i32_76 : i32 to index
    %c0_77 = arith.constant 0 : index
    %c0_78 = arith.constant 0 : index
    %279 = vector.load %arg2[%278, %c0_77, %c0_78] : memref<7x8x128xf32, #tpu.memory_space<vmem>>, vector<1x8x128xf32>
    %280 = vector.shape_cast %279 : vector<1x8x128xf32> to vector<8x128xf32>
    %cst_79 = arith.constant dense<0.000000e+00> : vector<8x512xf32>
    %281 = tpu.matmul %280, %3, %cst_79 {dimension_numbers = #tpu.dot_dimension_numbers<[1], [0], [0], [1], [0, 0, 1, 1], [], []>} : vector<8x128xf32>, vector<128x512xf32>, vector<8x512xf32> -> vector<8x512xf32>
    %cst_80 = arith.constant dense<0.000000e+00> : vector<8x512xf32>
    %282 = tpu.matmul %277, %4, %cst_80 {dimension_numbers = #tpu.dot_dimension_numbers<[1], [0], [0], [1], [0, 0, 1, 1], [], []>} : vector<8x128xf32>, vector<128x512xf32>, vector<8x512xf32> -> vector<8x512xf32>
    %283 = arith.addf %281, %282 : vector<8x512xf32>
    %284 = vector.broadcast %5 : vector<1x512xf32> to vector<8x512xf32>
    %285 = arith.addf %283, %284 : vector<8x512xf32>
    %286 = vector.extract_strided_slice %285 {offsets = [0, 0], sizes = [8, 128], strides = [1, 1]} : vector<8x512xf32> to vector<8x128xf32>
    %287 = arith.negf %286 : vector<8x128xf32>
    %288 = math.exp %287 : vector<8x128xf32>
    %cst_81 = arith.constant 1.000000e+00 : f32
    %289 = vector.broadcast %cst_81 : f32 to vector<8x128xf32>
    %290 = arith.addf %289, %288 : vector<8x128xf32>
    %291 = arith.divf %289, %290 : vector<8x128xf32>
    %292 = vector.extract_strided_slice %285 {offsets = [0, 128], sizes = [8, 128], strides = [1, 1]} : vector<8x512xf32> to vector<8x128xf32>
    %293 = arith.negf %292 : vector<8x128xf32>
    %294 = math.exp %293 : vector<8x128xf32>
    %cst_82 = arith.constant 1.000000e+00 : f32
    %295 = vector.broadcast %cst_82 : f32 to vector<8x128xf32>
    %296 = arith.addf %295, %294 : vector<8x128xf32>
    %297 = arith.divf %295, %296 : vector<8x128xf32>
    %298 = vector.extract_strided_slice %285 {offsets = [0, 256], sizes = [8, 128], strides = [1, 1]} : vector<8x512xf32> to vector<8x128xf32>
    %299 = math.tanh %298 : vector<8x128xf32>
    %300 = vector.extract_strided_slice %285 {offsets = [0, 384], sizes = [8, 128], strides = [1, 1]} : vector<8x512xf32> to vector<8x128xf32>
    %301 = arith.negf %300 : vector<8x128xf32>
    %302 = math.exp %301 : vector<8x128xf32>
    %cst_83 = arith.constant 1.000000e+00 : f32
    %303 = vector.broadcast %cst_83 : f32 to vector<8x128xf32>
    %304 = arith.addf %303, %302 : vector<8x128xf32>
    %305 = arith.divf %303, %304 : vector<8x128xf32>
    %306 = arith.mulf %297, %275 : vector<8x128xf32>
    %307 = arith.mulf %291, %299 : vector<8x128xf32>
    %308 = arith.addf %306, %307 : vector<8x128xf32>
    %309 = math.tanh %308 : vector<8x128xf32>
    %310 = arith.mulf %305, %309 : vector<8x128xf32>
    %cst_84 = arith.constant dense<0.000000e+00> : vector<8x128xf32>
    %311 = tpu.matmul %310, %6, %cst_84 {dimension_numbers = #tpu.dot_dimension_numbers<[1], [0], [0], [1], [0, 0, 1, 1], [], []>} : vector<8x128xf32>, vector<128x128xf32>, vector<8x128xf32> -> vector<8x128xf32>
    %312 = vector.broadcast %7 : vector<1x128xf32> to vector<8x128xf32>
    %313 = arith.addf %311, %312 : vector<8x128xf32>
    %c1_i32_85 = arith.constant 1 : i32
    %314 = arith.addi %c0_i32_76, %c1_i32_85 : i32
    %315 = arith.index_cast %314 : i32 to index
    %c0_86 = arith.constant 0 : index
    %c0_87 = arith.constant 0 : index
    %316 = vector.load %arg11[%315, %c0_86, %c0_87] : memref<8x8x128xf32, #tpu.memory_space<vmem>>, vector<1x8x128xf32>
    %317 = vector.shape_cast %316 : vector<1x8x128xf32> to vector<8x128xf32>
    %318 = vector.shape_cast %313 : vector<8x128xf32> to vector<1x8x128xf32>
    tpu.vector_store %arg11[%315, %c0_86, %c0_87], %318 {strides = array<i32>} : memref<8x8x128xf32, #tpu.memory_space<vmem>>, vector<1x8x128xf32>,
    %c1_i32_88 = arith.constant 1 : i32
    %319 = arith.index_cast %c1_i32_88 : i32 to index
    %c0_89 = arith.constant 0 : index
    %c0_90 = arith.constant 0 : index
    %320 = vector.load %arg2[%319, %c0_89, %c0_90] : memref<7x8x128xf32, #tpu.memory_space<vmem>>, vector<1x8x128xf32>
    %321 = vector.shape_cast %320 : vector<1x8x128xf32> to vector<8x128xf32>
    %cst_91 = arith.constant dense<0.000000e+00> : vector<8x512xf32>
    %322 = tpu.matmul %321, %3, %cst_91 {dimension_numbers = #tpu.dot_dimension_numbers<[1], [0], [0], [1], [0, 0, 1, 1], [], []>} : vector<8x128xf32>, vector<128x512xf32>, vector<8x512xf32> -> vector<8x512xf32>
    %cst_92 = arith.constant dense<0.000000e+00> : vector<8x512xf32>
    %323 = tpu.matmul %310, %4, %cst_92 {dimension_numbers = #tpu.dot_dimension_numbers<[1], [0], [0], [1], [0, 0, 1, 1], [], []>} : vector<8x128xf32>, vector<128x512xf32>, vector<8x512xf32> -> vector<8x512xf32>
    %324 = arith.addf %322, %323 : vector<8x512xf32>
    %325 = vector.broadcast %5 : vector<1x512xf32> to vector<8x512xf32>
    %326 = arith.addf %324, %325 : vector<8x512xf32>
    %327 = vector.extract_strided_slice %326 {offsets = [0, 0], sizes = [8, 128], strides = [1, 1]} : vector<8x512xf32> to vector<8x128xf32>
    %328 = arith.negf %327 : vector<8x128xf32>
    %329 = math.exp %328 : vector<8x128xf32>
    %cst_93 = arith.constant 1.000000e+00 : f32
    %330 = vector.broadcast %cst_93 : f32 to vector<8x128xf32>
    %331 = arith.addf %330, %329 : vector<8x128xf32>
    %332 = arith.divf %330, %331 : vector<8x128xf32>
    %333 = vector.extract_strided_slice %326 {offsets = [0, 128], sizes = [8, 128], strides = [1, 1]} : vector<8x512xf32> to vector<8x128xf32>
    %334 = arith.negf %333 : vector<8x128xf32>
    %335 = math.exp %334 : vector<8x128xf32>
    %cst_94 = arith.constant 1.000000e+00 : f32
    %336 = vector.broadcast %cst_94 : f32 to vector<8x128xf32>
    %337 = arith.addf %336, %335 : vector<8x128xf32>
    %338 = arith.divf %336, %337 : vector<8x128xf32>
    %339 = vector.extract_strided_slice %326 {offsets = [0, 256], sizes = [8, 128], strides = [1, 1]} : vector<8x512xf32> to vector<8x128xf32>
    %340 = math.tanh %339 : vector<8x128xf32>
    %341 = vector.extract_strided_slice %326 {offsets = [0, 384], sizes = [8, 128], strides = [1, 1]} : vector<8x512xf32> to vector<8x128xf32>
    %342 = arith.negf %341 : vector<8x128xf32>
    %343 = math.exp %342 : vector<8x128xf32>
    %cst_95 = arith.constant 1.000000e+00 : f32
    %344 = vector.broadcast %cst_95 : f32 to vector<8x128xf32>
    %345 = arith.addf %344, %343 : vector<8x128xf32>
    %346 = arith.divf %344, %345 : vector<8x128xf32>
    %347 = arith.mulf %338, %308 : vector<8x128xf32>
    %348 = arith.mulf %332, %340 : vector<8x128xf32>
    %349 = arith.addf %347, %348 : vector<8x128xf32>
    %350 = math.tanh %349 : vector<8x128xf32>
    %351 = arith.mulf %346, %350 : vector<8x128xf32>
    %cst_96 = arith.constant dense<0.000000e+00> : vector<8x128xf32>
    %352 = tpu.matmul %351, %6, %cst_96 {dimension_numbers = #tpu.dot_dimension_numbers<[1], [0], [0], [1], [0, 0, 1, 1], [], []>} : vector<8x128xf32>, vector<128x128xf32>, vector<8x128xf32> -> vector<8x128xf32>
    %353 = vector.broadcast %7 : vector<1x128xf32> to vector<8x128xf32>
    %354 = arith.addf %352, %353 : vector<8x128xf32>
    %c1_i32_97 = arith.constant 1 : i32
    %355 = arith.addi %c1_i32_88, %c1_i32_97 : i32
    %356 = arith.index_cast %355 : i32 to index
    %c0_98 = arith.constant 0 : index
    %c0_99 = arith.constant 0 : index
    %357 = vector.load %arg11[%356, %c0_98, %c0_99] : memref<8x8x128xf32, #tpu.memory_space<vmem>>, vector<1x8x128xf32>
    %358 = vector.shape_cast %357 : vector<1x8x128xf32> to vector<8x128xf32>
    %359 = vector.shape_cast %354 : vector<8x128xf32> to vector<1x8x128xf32>
    tpu.vector_store %arg11[%356, %c0_98, %c0_99], %359 {strides = array<i32>} : memref<8x8x128xf32, #tpu.memory_space<vmem>>, vector<1x8x128xf32>,
    %c2_i32_100 = arith.constant 2 : i32
    %360 = arith.index_cast %c2_i32_100 : i32 to index
    %c0_101 = arith.constant 0 : index
    %c0_102 = arith.constant 0 : index
    %361 = vector.load %arg2[%360, %c0_101, %c0_102] : memref<7x8x128xf32, #tpu.memory_space<vmem>>, vector<1x8x128xf32>
    %362 = vector.shape_cast %361 : vector<1x8x128xf32> to vector<8x128xf32>
    %cst_103 = arith.constant dense<0.000000e+00> : vector<8x512xf32>
    %363 = tpu.matmul %362, %3, %cst_103 {dimension_numbers = #tpu.dot_dimension_numbers<[1], [0], [0], [1], [0, 0, 1, 1], [], []>} : vector<8x128xf32>, vector<128x512xf32>, vector<8x512xf32> -> vector<8x512xf32>
    %cst_104 = arith.constant dense<0.000000e+00> : vector<8x512xf32>
    %364 = tpu.matmul %351, %4, %cst_104 {dimension_numbers = #tpu.dot_dimension_numbers<[1], [0], [0], [1], [0, 0, 1, 1], [], []>} : vector<8x128xf32>, vector<128x512xf32>, vector<8x512xf32> -> vector<8x512xf32>
    %365 = arith.addf %363, %364 : vector<8x512xf32>
    %366 = vector.broadcast %5 : vector<1x512xf32> to vector<8x512xf32>
    %367 = arith.addf %365, %366 : vector<8x512xf32>
    %368 = vector.extract_strided_slice %367 {offsets = [0, 0], sizes = [8, 128], strides = [1, 1]} : vector<8x512xf32> to vector<8x128xf32>
    %369 = arith.negf %368 : vector<8x128xf32>
    %370 = math.exp %369 : vector<8x128xf32>
    %cst_105 = arith.constant 1.000000e+00 : f32
    %371 = vector.broadcast %cst_105 : f32 to vector<8x128xf32>
    %372 = arith.addf %371, %370 : vector<8x128xf32>
    %373 = arith.divf %371, %372 : vector<8x128xf32>
    %374 = vector.extract_strided_slice %367 {offsets = [0, 128], sizes = [8, 128], strides = [1, 1]} : vector<8x512xf32> to vector<8x128xf32>
    %375 = arith.negf %374 : vector<8x128xf32>
    %376 = math.exp %375 : vector<8x128xf32>
    %cst_106 = arith.constant 1.000000e+00 : f32
    %377 = vector.broadcast %cst_106 : f32 to vector<8x128xf32>
    %378 = arith.addf %377, %376 : vector<8x128xf32>
    %379 = arith.divf %377, %378 : vector<8x128xf32>
    %380 = vector.extract_strided_slice %367 {offsets = [0, 256], sizes = [8, 128], strides = [1, 1]} : vector<8x512xf32> to vector<8x128xf32>
    %381 = math.tanh %380 : vector<8x128xf32>
    %382 = vector.extract_strided_slice %367 {offsets = [0, 384], sizes = [8, 128], strides = [1, 1]} : vector<8x512xf32> to vector<8x128xf32>
    %383 = arith.negf %382 : vector<8x128xf32>
    %384 = math.exp %383 : vector<8x128xf32>
    %cst_107 = arith.constant 1.000000e+00 : f32
    %385 = vector.broadcast %cst_107 : f32 to vector<8x128xf32>
    %386 = arith.addf %385, %384 : vector<8x128xf32>
    %387 = arith.divf %385, %386 : vector<8x128xf32>
    %388 = arith.mulf %379, %349 : vector<8x128xf32>
    %389 = arith.mulf %373, %381 : vector<8x128xf32>
    %390 = arith.addf %388, %389 : vector<8x128xf32>
    %391 = math.tanh %390 : vector<8x128xf32>
    %392 = arith.mulf %387, %391 : vector<8x128xf32>
    %cst_108 = arith.constant dense<0.000000e+00> : vector<8x128xf32>
    %393 = tpu.matmul %392, %6, %cst_108 {dimension_numbers = #tpu.dot_dimension_numbers<[1], [0], [0], [1], [0, 0, 1, 1], [], []>} : vector<8x128xf32>, vector<128x128xf32>, vector<8x128xf32> -> vector<8x128xf32>
    %394 = vector.broadcast %7 : vector<1x128xf32> to vector<8x128xf32>
    %395 = arith.addf %393, %394 : vector<8x128xf32>
    %c1_i32_109 = arith.constant 1 : i32
    %396 = arith.addi %c2_i32_100, %c1_i32_109 : i32
    %397 = arith.index_cast %396 : i32 to index
    %c0_110 = arith.constant 0 : index
    %c0_111 = arith.constant 0 : index
    %398 = vector.load %arg11[%397, %c0_110, %c0_111] : memref<8x8x128xf32, #tpu.memory_space<vmem>>, vector<1x8x128xf32>
    %399 = vector.shape_cast %398 : vector<1x8x128xf32> to vector<8x128xf32>
    %400 = vector.shape_cast %395 : vector<8x128xf32> to vector<1x8x128xf32>
    tpu.vector_store %arg11[%397, %c0_110, %c0_111], %400 {strides = array<i32>} : memref<8x8x128xf32, #tpu.memory_space<vmem>>, vector<1x8x128xf32>,
    %c3_i32_112 = arith.constant 3 : i32
    %401 = arith.index_cast %c3_i32_112 : i32 to index
    %c0_113 = arith.constant 0 : index
    %c0_114 = arith.constant 0 : index
    %402 = vector.load %arg2[%401, %c0_113, %c0_114] : memref<7x8x128xf32, #tpu.memory_space<vmem>>, vector<1x8x128xf32>
    %403 = vector.shape_cast %402 : vector<1x8x128xf32> to vector<8x128xf32>
    %cst_115 = arith.constant dense<0.000000e+00> : vector<8x512xf32>
    %404 = tpu.matmul %403, %3, %cst_115 {dimension_numbers = #tpu.dot_dimension_numbers<[1], [0], [0], [1], [0, 0, 1, 1], [], []>} : vector<8x128xf32>, vector<128x512xf32>, vector<8x512xf32> -> vector<8x512xf32>
    %cst_116 = arith.constant dense<0.000000e+00> : vector<8x512xf32>
    %405 = tpu.matmul %392, %4, %cst_116 {dimension_numbers = #tpu.dot_dimension_numbers<[1], [0], [0], [1], [0, 0, 1, 1], [], []>} : vector<8x128xf32>, vector<128x512xf32>, vector<8x512xf32> -> vector<8x512xf32>
    %406 = arith.addf %404, %405 : vector<8x512xf32>
    %407 = vector.broadcast %5 : vector<1x512xf32> to vector<8x512xf32>
    %408 = arith.addf %406, %407 : vector<8x512xf32>
    %409 = vector.extract_strided_slice %408 {offsets = [0, 0], sizes = [8, 128], strides = [1, 1]} : vector<8x512xf32> to vector<8x128xf32>
    %410 = arith.negf %409 : vector<8x128xf32>
    %411 = math.exp %410 : vector<8x128xf32>
    %cst_117 = arith.constant 1.000000e+00 : f32
    %412 = vector.broadcast %cst_117 : f32 to vector<8x128xf32>
    %413 = arith.addf %412, %411 : vector<8x128xf32>
    %414 = arith.divf %412, %413 : vector<8x128xf32>
    %415 = vector.extract_strided_slice %408 {offsets = [0, 128], sizes = [8, 128], strides = [1, 1]} : vector<8x512xf32> to vector<8x128xf32>
    %416 = arith.negf %415 : vector<8x128xf32>
    %417 = math.exp %416 : vector<8x128xf32>
    %cst_118 = arith.constant 1.000000e+00 : f32
    %418 = vector.broadcast %cst_118 : f32 to vector<8x128xf32>
    %419 = arith.addf %418, %417 : vector<8x128xf32>
    %420 = arith.divf %418, %419 : vector<8x128xf32>
    %421 = vector.extract_strided_slice %408 {offsets = [0, 256], sizes = [8, 128], strides = [1, 1]} : vector<8x512xf32> to vector<8x128xf32>
    %422 = math.tanh %421 : vector<8x128xf32>
    %423 = vector.extract_strided_slice %408 {offsets = [0, 384], sizes = [8, 128], strides = [1, 1]} : vector<8x512xf32> to vector<8x128xf32>
    %424 = arith.negf %423 : vector<8x128xf32>
    %425 = math.exp %424 : vector<8x128xf32>
    %cst_119 = arith.constant 1.000000e+00 : f32
    %426 = vector.broadcast %cst_119 : f32 to vector<8x128xf32>
    %427 = arith.addf %426, %425 : vector<8x128xf32>
    %428 = arith.divf %426, %427 : vector<8x128xf32>
    %429 = arith.mulf %420, %390 : vector<8x128xf32>
    %430 = arith.mulf %414, %422 : vector<8x128xf32>
    %431 = arith.addf %429, %430 : vector<8x128xf32>
    %432 = math.tanh %431 : vector<8x128xf32>
    %433 = arith.mulf %428, %432 : vector<8x128xf32>
    %cst_120 = arith.constant dense<0.000000e+00> : vector<8x128xf32>
    %434 = tpu.matmul %433, %6, %cst_120 {dimension_numbers = #tpu.dot_dimension_numbers<[1], [0], [0], [1], [0, 0, 1, 1], [], []>} : vector<8x128xf32>, vector<128x128xf32>, vector<8x128xf32> -> vector<8x128xf32>
    %435 = vector.broadcast %7 : vector<1x128xf32> to vector<8x128xf32>
    %436 = arith.addf %434, %435 : vector<8x128xf32>
    %c1_i32_121 = arith.constant 1 : i32
    %437 = arith.addi %c3_i32_112, %c1_i32_121 : i32
    %438 = arith.index_cast %437 : i32 to index
    %c0_122 = arith.constant 0 : index
    %c0_123 = arith.constant 0 : index
    %439 = vector.load %arg11[%438, %c0_122, %c0_123] : memref<8x8x128xf32, #tpu.memory_space<vmem>>, vector<1x8x128xf32>
    %440 = vector.shape_cast %439 : vector<1x8x128xf32> to vector<8x128xf32>
    %441 = vector.shape_cast %436 : vector<8x128xf32> to vector<1x8x128xf32>
    tpu.vector_store %arg11[%438, %c0_122, %c0_123], %441 {strides = array<i32>} : memref<8x8x128xf32, #tpu.memory_space<vmem>>, vector<1x8x128xf32>,
    %c4_i32_124 = arith.constant 4 : i32
    %442 = arith.index_cast %c4_i32_124 : i32 to index
    %c0_125 = arith.constant 0 : index
    %c0_126 = arith.constant 0 : index
    %443 = vector.load %arg2[%442, %c0_125, %c0_126] : memref<7x8x128xf32, #tpu.memory_space<vmem>>, vector<1x8x128xf32>
    %444 = vector.shape_cast %443 : vector<1x8x128xf32> to vector<8x128xf32>
    %cst_127 = arith.constant dense<0.000000e+00> : vector<8x512xf32>
    %445 = tpu.matmul %444, %3, %cst_127 {dimension_numbers = #tpu.dot_dimension_numbers<[1], [0], [0], [1], [0, 0, 1, 1], [], []>} : vector<8x128xf32>, vector<128x512xf32>, vector<8x512xf32> -> vector<8x512xf32>
    %cst_128 = arith.constant dense<0.000000e+00> : vector<8x512xf32>
    %446 = tpu.matmul %433, %4, %cst_128 {dimension_numbers = #tpu.dot_dimension_numbers<[1], [0], [0], [1], [0, 0, 1, 1], [], []>} : vector<8x128xf32>, vector<128x512xf32>, vector<8x512xf32> -> vector<8x512xf32>
    %447 = arith.addf %445, %446 : vector<8x512xf32>
    %448 = vector.broadcast %5 : vector<1x512xf32> to vector<8x512xf32>
    %449 = arith.addf %447, %448 : vector<8x512xf32>
    %450 = vector.extract_strided_slice %449 {offsets = [0, 0], sizes = [8, 128], strides = [1, 1]} : vector<8x512xf32> to vector<8x128xf32>
    %451 = arith.negf %450 : vector<8x128xf32>
    %452 = math.exp %451 : vector<8x128xf32>
    %cst_129 = arith.constant 1.000000e+00 : f32
    %453 = vector.broadcast %cst_129 : f32 to vector<8x128xf32>
    %454 = arith.addf %453, %452 : vector<8x128xf32>
    %455 = arith.divf %453, %454 : vector<8x128xf32>
    %456 = vector.extract_strided_slice %449 {offsets = [0, 128], sizes = [8, 128], strides = [1, 1]} : vector<8x512xf32> to vector<8x128xf32>
    %457 = arith.negf %456 : vector<8x128xf32>
    %458 = math.exp %457 : vector<8x128xf32>
    %cst_130 = arith.constant 1.000000e+00 : f32
    %459 = vector.broadcast %cst_130 : f32 to vector<8x128xf32>
    %460 = arith.addf %459, %458 : vector<8x128xf32>
    %461 = arith.divf %459, %460 : vector<8x128xf32>
    %462 = vector.extract_strided_slice %449 {offsets = [0, 256], sizes = [8, 128], strides = [1, 1]} : vector<8x512xf32> to vector<8x128xf32>
    %463 = math.tanh %462 : vector<8x128xf32>
    %464 = vector.extract_strided_slice %449 {offsets = [0, 384], sizes = [8, 128], strides = [1, 1]} : vector<8x512xf32> to vector<8x128xf32>
    %465 = arith.negf %464 : vector<8x128xf32>
    %466 = math.exp %465 : vector<8x128xf32>
    %cst_131 = arith.constant 1.000000e+00 : f32
    %467 = vector.broadcast %cst_131 : f32 to vector<8x128xf32>
    %468 = arith.addf %467, %466 : vector<8x128xf32>
    %469 = arith.divf %467, %468 : vector<8x128xf32>
    %470 = arith.mulf %461, %431 : vector<8x128xf32>
    %471 = arith.mulf %455, %463 : vector<8x128xf32>
    %472 = arith.addf %470, %471 : vector<8x128xf32>
    %473 = math.tanh %472 : vector<8x128xf32>
    %474 = arith.mulf %469, %473 : vector<8x128xf32>
    %cst_132 = arith.constant dense<0.000000e+00> : vector<8x128xf32>
    %475 = tpu.matmul %474, %6, %cst_132 {dimension_numbers = #tpu.dot_dimension_numbers<[1], [0], [0], [1], [0, 0, 1, 1], [], []>} : vector<8x128xf32>, vector<128x128xf32>, vector<8x128xf32> -> vector<8x128xf32>
    %476 = vector.broadcast %7 : vector<1x128xf32> to vector<8x128xf32>
    %477 = arith.addf %475, %476 : vector<8x128xf32>
    %c1_i32_133 = arith.constant 1 : i32
    %478 = arith.addi %c4_i32_124, %c1_i32_133 : i32
    %479 = arith.index_cast %478 : i32 to index
    %c0_134 = arith.constant 0 : index
    %c0_135 = arith.constant 0 : index
    %480 = vector.load %arg11[%479, %c0_134, %c0_135] : memref<8x8x128xf32, #tpu.memory_space<vmem>>, vector<1x8x128xf32>
    %481 = vector.shape_cast %480 : vector<1x8x128xf32> to vector<8x128xf32>
    %482 = vector.shape_cast %477 : vector<8x128xf32> to vector<1x8x128xf32>
    tpu.vector_store %arg11[%479, %c0_134, %c0_135], %482 {strides = array<i32>} : memref<8x8x128xf32, #tpu.memory_space<vmem>>, vector<1x8x128xf32>,
    %c5_i32_136 = arith.constant 5 : i32
    %483 = arith.index_cast %c5_i32_136 : i32 to index
    %c0_137 = arith.constant 0 : index
    %c0_138 = arith.constant 0 : index
    %484 = vector.load %arg2[%483, %c0_137, %c0_138] : memref<7x8x128xf32, #tpu.memory_space<vmem>>, vector<1x8x128xf32>
    %485 = vector.shape_cast %484 : vector<1x8x128xf32> to vector<8x128xf32>
    %cst_139 = arith.constant dense<0.000000e+00> : vector<8x512xf32>
    %486 = tpu.matmul %485, %3, %cst_139 {dimension_numbers = #tpu.dot_dimension_numbers<[1], [0], [0], [1], [0, 0, 1, 1], [], []>} : vector<8x128xf32>, vector<128x512xf32>, vector<8x512xf32> -> vector<8x512xf32>
    %cst_140 = arith.constant dense<0.000000e+00> : vector<8x512xf32>
    %487 = tpu.matmul %474, %4, %cst_140 {dimension_numbers = #tpu.dot_dimension_numbers<[1], [0], [0], [1], [0, 0, 1, 1], [], []>} : vector<8x128xf32>, vector<128x512xf32>, vector<8x512xf32> -> vector<8x512xf32>
    %488 = arith.addf %486, %487 : vector<8x512xf32>
    %489 = vector.broadcast %5 : vector<1x512xf32> to vector<8x512xf32>
    %490 = arith.addf %488, %489 : vector<8x512xf32>
    %491 = vector.extract_strided_slice %490 {offsets = [0, 0], sizes = [8, 128], strides = [1, 1]} : vector<8x512xf32> to vector<8x128xf32>
    %492 = arith.negf %491 : vector<8x128xf32>
    %493 = math.exp %492 : vector<8x128xf32>
    %cst_141 = arith.constant 1.000000e+00 : f32
    %494 = vector.broadcast %cst_141 : f32 to vector<8x128xf32>
    %495 = arith.addf %494, %493 : vector<8x128xf32>
    %496 = arith.divf %494, %495 : vector<8x128xf32>
    %497 = vector.extract_strided_slice %490 {offsets = [0, 128], sizes = [8, 128], strides = [1, 1]} : vector<8x512xf32> to vector<8x128xf32>
    %498 = arith.negf %497 : vector<8x128xf32>
    %499 = math.exp %498 : vector<8x128xf32>
    %cst_142 = arith.constant 1.000000e+00 : f32
    %500 = vector.broadcast %cst_142 : f32 to vector<8x128xf32>
    %501 = arith.addf %500, %499 : vector<8x128xf32>
    %502 = arith.divf %500, %501 : vector<8x128xf32>
    %503 = vector.extract_strided_slice %490 {offsets = [0, 256], sizes = [8, 128], strides = [1, 1]} : vector<8x512xf32> to vector<8x128xf32>
    %504 = math.tanh %503 : vector<8x128xf32>
    %505 = vector.extract_strided_slice %490 {offsets = [0, 384], sizes = [8, 128], strides = [1, 1]} : vector<8x512xf32> to vector<8x128xf32>
    %506 = arith.negf %505 : vector<8x128xf32>
    %507 = math.exp %506 : vector<8x128xf32>
    %cst_143 = arith.constant 1.000000e+00 : f32
    %508 = vector.broadcast %cst_143 : f32 to vector<8x128xf32>
    %509 = arith.addf %508, %507 : vector<8x128xf32>
    %510 = arith.divf %508, %509 : vector<8x128xf32>
    %511 = arith.mulf %502, %472 : vector<8x128xf32>
    %512 = arith.mulf %496, %504 : vector<8x128xf32>
    %513 = arith.addf %511, %512 : vector<8x128xf32>
    %514 = math.tanh %513 : vector<8x128xf32>
    %515 = arith.mulf %510, %514 : vector<8x128xf32>
    %cst_144 = arith.constant dense<0.000000e+00> : vector<8x128xf32>
    %516 = tpu.matmul %515, %6, %cst_144 {dimension_numbers = #tpu.dot_dimension_numbers<[1], [0], [0], [1], [0, 0, 1, 1], [], []>} : vector<8x128xf32>, vector<128x128xf32>, vector<8x128xf32> -> vector<8x128xf32>
    %517 = vector.broadcast %7 : vector<1x128xf32> to vector<8x128xf32>
    %518 = arith.addf %516, %517 : vector<8x128xf32>
    %c1_i32_145 = arith.constant 1 : i32
    %519 = arith.addi %c5_i32_136, %c1_i32_145 : i32
    %520 = arith.index_cast %519 : i32 to index
    %c0_146 = arith.constant 0 : index
    %c0_147 = arith.constant 0 : index
    %521 = vector.load %arg11[%520, %c0_146, %c0_147] : memref<8x8x128xf32, #tpu.memory_space<vmem>>, vector<1x8x128xf32>
    %522 = vector.shape_cast %521 : vector<1x8x128xf32> to vector<8x128xf32>
    %523 = vector.shape_cast %518 : vector<8x128xf32> to vector<1x8x128xf32>
    tpu.vector_store %arg11[%520, %c0_146, %c0_147], %523 {strides = array<i32>} : memref<8x8x128xf32, #tpu.memory_space<vmem>>, vector<1x8x128xf32>,
    %c6_i32_148 = arith.constant 6 : i32
    %524 = arith.index_cast %c6_i32_148 : i32 to index
    %c0_149 = arith.constant 0 : index
    %c0_150 = arith.constant 0 : index
    %525 = vector.load %arg2[%524, %c0_149, %c0_150] : memref<7x8x128xf32, #tpu.memory_space<vmem>>, vector<1x8x128xf32>
    %526 = vector.shape_cast %525 : vector<1x8x128xf32> to vector<8x128xf32>
    %cst_151 = arith.constant dense<0.000000e+00> : vector<8x512xf32>
    %527 = tpu.matmul %526, %3, %cst_151 {dimension_numbers = #tpu.dot_dimension_numbers<[1], [0], [0], [1], [0, 0, 1, 1], [], []>} : vector<8x128xf32>, vector<128x512xf32>, vector<8x512xf32> -> vector<8x512xf32>
    %cst_152 = arith.constant dense<0.000000e+00> : vector<8x512xf32>
    %528 = tpu.matmul %515, %4, %cst_152 {dimension_numbers = #tpu.dot_dimension_numbers<[1], [0], [0], [1], [0, 0, 1, 1], [], []>} : vector<8x128xf32>, vector<128x512xf32>, vector<8x512xf32> -> vector<8x512xf32>
    %529 = arith.addf %527, %528 : vector<8x512xf32>
    %530 = vector.broadcast %5 : vector<1x512xf32> to vector<8x512xf32>
    %531 = arith.addf %529, %530 : vector<8x512xf32>
    %532 = vector.extract_strided_slice %531 {offsets = [0, 0], sizes = [8, 128], strides = [1, 1]} : vector<8x512xf32> to vector<8x128xf32>
    %533 = arith.negf %532 : vector<8x128xf32>
    %534 = math.exp %533 : vector<8x128xf32>
    %cst_153 = arith.constant 1.000000e+00 : f32
    %535 = vector.broadcast %cst_153 : f32 to vector<8x128xf32>
    %536 = arith.addf %535, %534 : vector<8x128xf32>
    %537 = arith.divf %535, %536 : vector<8x128xf32>
    %538 = vector.extract_strided_slice %531 {offsets = [0, 128], sizes = [8, 128], strides = [1, 1]} : vector<8x512xf32> to vector<8x128xf32>
    %539 = arith.negf %538 : vector<8x128xf32>
    %540 = math.exp %539 : vector<8x128xf32>
    %cst_154 = arith.constant 1.000000e+00 : f32
    %541 = vector.broadcast %cst_154 : f32 to vector<8x128xf32>
    %542 = arith.addf %541, %540 : vector<8x128xf32>
    %543 = arith.divf %541, %542 : vector<8x128xf32>
    %544 = vector.extract_strided_slice %531 {offsets = [0, 256], sizes = [8, 128], strides = [1, 1]} : vector<8x512xf32> to vector<8x128xf32>
    %545 = math.tanh %544 : vector<8x128xf32>
    %546 = vector.extract_strided_slice %531 {offsets = [0, 384], sizes = [8, 128], strides = [1, 1]} : vector<8x512xf32> to vector<8x128xf32>
    %547 = arith.negf %546 : vector<8x128xf32>
    %548 = math.exp %547 : vector<8x128xf32>
    %cst_155 = arith.constant 1.000000e+00 : f32
    %549 = vector.broadcast %cst_155 : f32 to vector<8x128xf32>
    %550 = arith.addf %549, %548 : vector<8x128xf32>
    %551 = arith.divf %549, %550 : vector<8x128xf32>
    %552 = arith.mulf %543, %513 : vector<8x128xf32>
    %553 = arith.mulf %537, %545 : vector<8x128xf32>
    %554 = arith.addf %552, %553 : vector<8x128xf32>
    %555 = math.tanh %554 : vector<8x128xf32>
    %556 = arith.mulf %551, %555 : vector<8x128xf32>
    %cst_156 = arith.constant dense<0.000000e+00> : vector<8x128xf32>
    %557 = tpu.matmul %556, %6, %cst_156 {dimension_numbers = #tpu.dot_dimension_numbers<[1], [0], [0], [1], [0, 0, 1, 1], [], []>} : vector<8x128xf32>, vector<128x128xf32>, vector<8x128xf32> -> vector<8x128xf32>
    %558 = vector.broadcast %7 : vector<1x128xf32> to vector<8x128xf32>
    %559 = arith.addf %557, %558 : vector<8x128xf32>
    %c1_i32_157 = arith.constant 1 : i32
    %560 = arith.addi %c6_i32_148, %c1_i32_157 : i32
    %561 = arith.index_cast %560 : i32 to index
    %c0_158 = arith.constant 0 : index
    %c0_159 = arith.constant 0 : index
    %562 = vector.load %arg11[%561, %c0_158, %c0_159] : memref<8x8x128xf32, #tpu.memory_space<vmem>>, vector<1x8x128xf32>
    %563 = vector.shape_cast %562 : vector<1x8x128xf32> to vector<8x128xf32>
    %564 = vector.shape_cast %559 : vector<8x128xf32> to vector<1x8x128xf32>
    tpu.vector_store %arg11[%561, %c0_158, %c0_159], %564 {strides = array<i32>} : memref<8x8x128xf32, #tpu.memory_space<vmem>>, vector<1x8x128xf32>,
    %c7_i32_160 = arith.constant 7 : i32
    return
  }
  func.func @transform_0(%arg0: i32) -> (i32, i32, i32) {
    %c0_i32 = arith.constant 0 : i32
    %c0_i32_0 = arith.constant 0 : i32
    %c0_i32_1 = arith.constant 0 : i32
    %c0_i32_2 = arith.constant 0 : i32
    return %c0_i32, %c0_i32_0, %c0_i32_1 : i32, i32, i32
  }
  func.func @transform_1(%arg0: i32) -> (i32, i32, i32) {
    %c0_i32 = arith.constant 0 : i32
    %c0_i32_0 = arith.constant 0 : i32
    %c0_i32_1 = arith.constant 0 : i32
    %c0_i32_2 = arith.constant 0 : i32
    return %c0_i32, %c0_i32_0, %c0_i32_1 : i32, i32, i32
  }
  func.func @transform_2(%arg0: i32) -> (i32, i32) {
    %c0_i32 = arith.constant 0 : i32
    %c0_i32_0 = arith.constant 0 : i32
    %c0_i32_1 = arith.constant 0 : i32
    return %c0_i32, %c0_i32_0 : i32, i32
  }
  func.func @transform_3(%arg0: i32) -> (i32, i32) {
    %c0_i32 = arith.constant 0 : i32
    %c0_i32_0 = arith.constant 0 : i32
    %c0_i32_1 = arith.constant 0 : i32
    return %c0_i32, %c0_i32_0 : i32, i32
  }
  func.func @transform_4(%arg0: i32) -> (i32, i32) {
    %c0_i32 = arith.constant 0 : i32
    %c0_i32_0 = arith.constant 0 : i32
    %c0_i32_1 = arith.constant 0 : i32
    return %c0_i32, %c0_i32_0 : i32, i32
  }
  func.func @transform_5(%arg0: i32) -> (i32, i32) {
    %c0_i32 = arith.constant 0 : i32
    %c0_i32_0 = arith.constant 0 : i32
    %c0_i32_1 = arith.constant 0 : i32
    return %c0_i32, %c0_i32_0 : i32, i32
  }
  func.func @transform_6(%arg0: i32) -> (i32, i32) {
    %c0_i32 = arith.constant 0 : i32
    %c0_i32_0 = arith.constant 0 : i32
    %c0_i32_1 = arith.constant 0 : i32
    return %c0_i32, %c0_i32_0 : i32, i32
  }
  func.func @transform_7(%arg0: i32) -> (i32, i32) {
    %c0_i32 = arith.constant 0 : i32
    %c0_i32_0 = arith.constant 0 : i32
    %c0_i32_1 = arith.constant 0 : i32
    return %c0_i32, %c0_i32_0 : i32, i32
  }
  func.func @transform_8(%arg0: i32) -> (i32, i32) {
    %c0_i32 = arith.constant 0 : i32
    %c0_i32_0 = arith.constant 0 : i32
    %c0_i32_1 = arith.constant 0 : i32
    return %c0_i32, %c0_i32_0 : i32, i32
  }
  func.func @transform_9(%arg0: i32) -> (i32, i32) {
    %c0_i32 = arith.constant 0 : i32
    %c0_i32_0 = arith.constant 0 : i32
    %c0_i32_1 = arith.constant 0 : i32
    return %c0_i32, %c0_i32_0 : i32, i32
  }
  func.func @transform_10(%arg0: i32) -> (i32, i32, i32) {
    %c0_i32 = arith.constant 0 : i32
    %c0_i32_0 = arith.constant 0 : i32
    %c0_i32_1 = arith.constant 0 : i32
    %c0_i32_2 = arith.constant 0 : i32
    return %c0_i32, %c0_i32_0, %c0_i32_1 : i32, i32, i32
  }
}

</mosaic_0001>

<bundles_post_ra>
// kernel: seq2seq_forward.1
= control target key start
LH: loop header
LB: loop body
LE: loop exit
PB: predicated region body
PF: predicated region fallthrough
CT: control target
= control target key end

     0   :  { %15 = vsyncpa [#allocation3], 0  ;;  %s10697_s0 = inlined_call_operand.vmem [shape: f32[8,8,128], index: 0, kind: input, shape index: {}]   ;;  %s10698_s1 = inlined_call_operand.vmem [shape: f32[7,8,128], index: 1, kind: input, shape index: {}]   ;;  %s10699_s2 = inlined_call_operand.vmem [shape: f32[128,512], index: 2, kind: input, shape index: {}]   ;;  %s10700_s3 = inlined_call_operand.vmem [shape: f32[128,512], index: 3, kind: input, shape index: {}]   ;;  %s10701_s4 = inlined_call_operand.vmem [shape: f32[1,512], index: 4, kind: input, shape index: {}]   ;;  %s10702_s5 = inlined_call_operand.hbm [shape: f32[128,512], index: 5, kind: input, shape index: {}]   ;;  %s10703_s6 = inlined_call_operand.hbm [shape: f32[128,512], index: 6, kind: input, shape index: {}]   ;;  %s10704_s7 = inlined_call_operand.vmem [shape: f32[1,512], index: 7, kind: input, shape index: {}]   ;;  %s10705_s8 = inlined_call_operand.vmem [shape: f32[128,128], index: 8, kind: input, shape index: {}]   ;;  %s10706_s9 = inlined_call_operand.vmem [shape: f32[1,128], index: 9, kind: input, shape index: {}]   ;;  %s10707_s10 = inlined_call_operand.hbm [shape: f32[8,8,128], index: 10, kind: output, shape index: {}]  }
   0x1   :  { %16 = vsyncpa [#allocation6], 0 }
   0x2   :  { %17 = vsyncpa [#allocation4], 0  ;;  %s8515_s13 = smov [#allocation2]   ;;  %s8443_s17 = scalar_lea.hbm %s10702_s5, 8192 }
   0x3   :  { %s33_s14 = sshll.u32 %s8515_s13, 4  ;;  %p8444_p0 = scmp.ne.s32.totalorder %s10702_s5, %s8443_s17  ;;  %s34_s14 = int_to_ptr.vmem [resolvable:$true] %s33_s14 }
   0x4   :  { %p8447_p1 = scmp.lt.u32.totalorder %s8443_s17, %s10702_s5 }
   0x6   :  { %p8449_p2 = pnand %p8447_p1, %p8444_p0 }
   0x8   :  { %8452 = shalt.err (!%p8449_p2)
}
   0x9   :  { %s8453_s22 = scalar_lea.vmem %s34_s14, 8192  ;;  %p8458_p4 = scmp.lt.s32.totalorder %s34_s14, %s34_s14 }
   0xa   :  { %p8454_p3 = scmp.ne.s32.totalorder %s34_s14, %s8453_s22  ;;  %p8459_p5 = scmp.lt.s32.totalorder %s8453_s22, %s8453_s22 }
   0xc   :  { %p8460_p6 = por %p8459_p5, %p8458_p4 }
   0xe   :  { %p8461_p7 = pnand %p8460_p6, %p8454_p3 }
  0x10   :  { %8464 = shalt.err (!%p8461_p7)
}
  0x11   :  { %s8516_s23 = smov 512   ;;  %s8517_s24 = smov 32  }
  0x12   :  { %39 = dma.hbm_to_vmem [thread:$0]  %s10702_s5, 8192, %s34_s14, [#allocation3], %s8516_s23, %s8516_s23, %s8517_s24  }
  0x13   :  { %s8518_s27 = smov [#allocation5]   ;;  %s8465_s11 = scalar_lea.hbm %s10703_s6, 8192 }
  0x14   :  { %s45_s28 = sshll.u32 %s8518_s27, 4  ;;  %p8466_p8 = scmp.ne.s32.totalorder %s10703_s6, %s8465_s11  ;;  %s46_s28 = int_to_ptr.vmem [resolvable:$true] %s45_s28 }
  0x15   :  { %p8469_p9 = scmp.lt.u32.totalorder %s8465_s11, %s10703_s6 }
  0x17   :  { %p8471_p10 = pnand %p8469_p9, %p8466_p8 }
  0x19   :  { %8474 = shalt.err (!%p8471_p10)
}
  0x1a   :  { %s8475_s17 = scalar_lea.vmem %s46_s28, 8192  ;;  %p8480_p12 = scmp.lt.s32.totalorder %s46_s28, %s46_s28 }
  0x1b   :  { %p8476_p11 = scmp.ne.s32.totalorder %s46_s28, %s8475_s17  ;;  %p8481_p13 = scmp.lt.s32.totalorder %s8475_s17, %s8475_s17 }
  0x1d   :  { %p8482_p0 = por %p8481_p13, %p8480_p12 }
  0x1f   :  { %p8483_p1 = pnand %p8482_p0, %p8476_p11 }
  0x21   :  { %8486 = shalt.err (!%p8483_p1)
}
  0x22   :  { %51 = dma.hbm_to_vmem [thread:$0]  %s10703_s6, 8192, %s46_s28, [#allocation6], %s8516_s23, %s8516_s23, %s8517_s24  }
  0x23   :  { %8509 = dma.done.wait [#allocation3], 8192  }
  0x24   :  { %8510 = vsyncadd [#allocation3], 4294959104 }
  0x25   :  { %8511 = dma.done.wait [#allocation6], 8192  }
  0x26   :  { %8512 = vsyncadd [#allocation6], 4294959104  ;;  %v10708_v0 = vmov 0.0   ;;  %v129_v1 = vld [vmem:[%s10700_s3 + $0x8] sm:$0xff]  ;;  %v131_v3 = vld [vmem:[%s10700_s3 + $0x18] sm:$0xff]  ;;  %vm8521_vm0 = vmmov 0  }
  0x27   :  { %405 = vmatprep.mubr.f32.mxu0 %v10708_v0  ;;  %339 = vst [vmem:[#allocation7] sm:$0xff] %v10708_v0  ;;  %476 = vmatprep.mubr.f32.mxu1 %v10708_v0  ;;  %v133_v2 = vld [vmem:[%s10700_s3 + $0x28] sm:$0xff]  ;;  %v135_v5 = vld [vmem:[%s10700_s3 + $0x38] sm:$0xff]  ;;  %v128_v6 = vld [vmem:[%s10700_s3] sm:$0xff] }
  0x28   :  { %v8616_v4 = vpack.c.bf16 %v133_v2, %v129_v1  ;;  %v132_v7 = vld [vmem:[%s10700_s3 + $0x20] sm:$0xff]  ;;  %v8627_v8 = vpack.c.bf16 %v135_v5, %v131_v3  ;;  %v130_v10 = vld [vmem:[%s10700_s3 + $0x10] sm:$0xff]  ;;  %v137_v12 = vld [vmem:[%s10700_s3 + $0x48] sm:$0xff] }
  0x29   :  { %v8629_v9 = vpack.c.bf16 %v132_v7, %v128_v6  ;;  %v134_v11 = vld [vmem:[%s10700_s3 + $0x30] sm:$0xff]  ;;  %v141_v14 = vld [vmem:[%s10700_s3 + $0x68] sm:$0xff]  ;;  %v139_v15 = vld [vmem:[%s10700_s3 + $0x58] sm:$0xff] }
  0x2a   :  { %6042 = vmatprep.subr.bf16.mxu0 %v8616_v4  ;;  %v8641_v13 = vpack.c.bf16 %v134_v11, %v130_v10  ;;  %v143_v16 = vld [vmem:[%s10700_s3 + $0x78] sm:$0xff]  ;;  %6074 = vmatprep.subr.bf16.mxu1 %v8627_v8  ;;  %v8654_v17 = vpack.c.bf16 %v141_v14, %v137_v12  ;;  %v136_v19 = vld [vmem:[%s10700_s3 + $0x40] sm:$0xff]  ;;  %v138_v21 = vld [vmem:[%s10700_s3 + $0x50] sm:$0xff] }
  0x2b   :  { %6044 = vmatpush1.bf16.msra.mxu0 %v8629_v9  ;;  %v8656_v18 = vpack.c.bf16 %v143_v16, %v139_v15  ;;  %v140_v20 = vld [vmem:[%s10700_s3 + $0x60] sm:$0xff]  ;;  %v142_v23 = vld [vmem:[%s10700_s3 + $0x70] sm:$0xff]  ;;  %v145_v24 = vld [vmem:[%s10700_s3 + $0x88] sm:$0xff] }
  0x2c   :  { %6076 = vmatpush1.bf16.msra.mxu1 %v8641_v13  ;;  %v8668_v22 = vpack.c.bf16 %v140_v20, %v136_v19  ;;  %v149_v25 = vld [vmem:[%s10700_s3 + $0xa8] sm:$0xff]  ;;  %6046 = vmatprep.subr.bf16.mxu0 %v8654_v17  ;;  %v8681_v26 = vpack.c.bf16 %v142_v23, %v138_v21  ;;  %v147_v28 = vld [vmem:[%s10700_s3 + $0x98] sm:$0xff]  ;;  %v144_v30 = vld [vmem:[%s10700_s3 + $0x80] sm:$0xff] }
  0x2d   :  { %6078 = vmatprep.subr.bf16.mxu1 %v8656_v18  ;;  %v8683_v27 = vpack.c.bf16 %v149_v25, %v145_v24  ;;  %v151_v29 = vld [vmem:[%s10700_s3 + $0xb8] sm:$0xff]  ;;  %v148_v32 = vld [vmem:[%s10700_s3 + $0xa0] sm:$0xff]  ;;  %v146_v33 = vld [vmem:[%s10700_s3 + $0x90] sm:$0xff] }
  0x2e   :  { %v8694_v31 = vpack.c.bf16 %v151_v29, %v147_v28  ;;  %v150_v34 = vld [vmem:[%s10700_s3 + $0xb0] sm:$0xff]  ;;  %v8706_v35 = vpack.c.bf16 %v148_v32, %v144_v30  ;;  %v153_v36 = vld [vmem:[%s10700_s3 + $0xc8] sm:$0xff]  ;;  %v155_v38 = vld [vmem:[%s10700_s3 + $0xd8] sm:$0xff] }
  0x2f   :  { %6048 = vmatpush1.bf16.msra.mxu0 %v8668_v22  ;;  %v157_v37 = vld [vmem:[%s10700_s3 + $0xe8] sm:$0xff]  ;;  %v8719_v39 = vpack.c.bf16 %v150_v34, %v146_v33  ;;  %v159_v41 = vld [vmem:[%s10700_s3 + $0xf8] sm:$0xff]  ;;  %v152_v42 = vld [vmem:[%s10700_s3 + $0xc0] sm:$0xff] }
  0x30   :  { %6080 = vmatpush1.bf16.msra.mxu1 %v8681_v26  ;;  %6050 = vmatprep.subr.bf16.mxu0 %v8683_v27  ;;  %v8721_v40 = vpack.c.bf16 %v157_v37, %v153_v36  ;;  %v156_v43 = vld [vmem:[%s10700_s3 + $0xe0] sm:$0xff]  ;;  %v8733_v44 = vpack.c.bf16 %v159_v41, %v155_v38  ;;  %v154_v45 = vld [vmem:[%s10700_s3 + $0xd0] sm:$0xff]  ;;  %v161_v47 = vld [vmem:[%s10700_s3 + $0x108] sm:$0xff] }
  0x31   :  { %6082 = vmatprep.subr.bf16.mxu1 %v8694_v31  ;;  %v158_v46 = vld [vmem:[%s10700_s3 + $0xf0] sm:$0xff]  ;;  %v165_v48 = vld [vmem:[%s10700_s3 + $0x128] sm:$0xff]  ;;  %v163_v49 = vld [vmem:[%s10700_s3 + $0x118] sm:$0xff]  ;;  %v8754_v51 = vpack.c.bf16 %v156_v43, %v152_v42 }
  0x32   :  { %10870 = vst [vmem:[#allocation11_spill] sm:$0xff] %v8733_v44  ;;  %v167_v50 = vld [vmem:[%s10700_s3 + $0x138] sm:$0xff]  ;;  %v8758_v52 = vpack.c.bf16 %v158_v46, %v154_v45  ;;  %v8760_v53 = vpack.c.bf16 %v165_v48, %v161_v47  ;;  %v160_v54 = vld [vmem:[%s10700_s3 + $0x100] sm:$0xff]  ;;  %v162_v56 = vld [vmem:[%s10700_s3 + $0x110] sm:$0xff] }
  0x33   :  { %6052 = vmatpush1.bf16.msra.mxu0 %v8706_v35  ;;  %10871 = vst [vmem:[#allocation12_spill] sm:$0xff] %v8754_v51  ;;  %v164_v55 = vld [vmem:[%s10700_s3 + $0x120] sm:$0xff]  ;;  %v8772_v57 = vpack.c.bf16 %v167_v50, %v163_v49  ;;  %v166_v58 = vld [vmem:[%s10700_s3 + $0x130] sm:$0xff]  ;;  %v169_v59 = vld [vmem:[%s10700_s3 + $0x148] sm:$0xff] }
  0x34   :  { %6084 = vmatpush1.bf16.msra.mxu1 %v8719_v39  ;;  %6054 = vmatprep.subr.bf16.mxu0 %v8721_v40  ;;  %10872 = vst [vmem:[#allocation13_spill] sm:$0xff] %v8758_v52  ;;  %10873 = vst [vmem:[#allocation14_spill] sm:$0xff] %v8760_v53  ;;  %v173_v60 = vld [vmem:[%s10700_s3 + $0x168] sm:$0xff]  ;;  %v171_v61 = vld [vmem:[%s10700_s3 + $0x158] sm:$0xff]  ;;  %v8790_v63 = vpack.c.bf16 %v164_v55, %v160_v54  ;;  %v8794_v1 = vpack.c.bf16 %v166_v58, %v162_v56 }
  0x35   :  { %6086 = vmatprep.subr.bf16.mxu1 %v8733_v44  ;;  %10874 = vst [vmem:[#allocation15_spill] sm:$0xff] %v8772_v57  ;;  %v175_v62 = vld [vmem:[%s10700_s3 + $0x178] sm:$0xff]  ;;  %v8796_v2 = vpack.c.bf16 %v173_v60, %v169_v59  ;;  %v168_v3 = vld [vmem:[%s10700_s3 + $0x140] sm:$0xff]  ;;  %v170_v6 = vld [vmem:[%s10700_s3 + $0x150] sm:$0xff] }
  0x36   :  { %10875 = vst [vmem:[#allocation16_spill] sm:$0xff] %v8790_v63  ;;  %10876 = vst [vmem:[#allocation17_spill] sm:$0xff] %v8794_v1  ;;  %v172_v5 = vld [vmem:[%s10700_s3 + $0x160] sm:$0xff]  ;;  %v8808_v7 = vpack.c.bf16 %v175_v62, %v171_v61  ;;  %v174_v10 = vld [vmem:[%s10700_s3 + $0x170] sm:$0xff] }
  0x37   :  { %6056 = vmatpush1.bf16.msra.mxu0 %v8754_v51  ;;  %10877 = vst [vmem:[#allocation18_spill] sm:$0xff] %v8796_v2  ;;  %v177_v11 = vld [vmem:[%s10700_s3 + $0x188] sm:$0xff]  ;;  %v179_v14 = vld [vmem:[%s10700_s3 + $0x198] sm:$0xff]  ;;  %v8826_v16 = vpack.c.bf16 %v172_v5, %v168_v3  ;;  %v8830_v19 = vpack.c.bf16 %v174_v10, %v170_v6  ;;  %v176_v21 = vld [vmem:[%s10700_s3 + $0x180] sm:$0xff] }
  0x38   :  { %6088 = vmatpush1.bf16.msra.mxu1 %v8758_v52  ;;  %6058 = vmatprep.subr.bf16.mxu0 %v8760_v53  ;;  %10878 = vst [vmem:[#allocation19_spill] sm:$0xff] %v8808_v7  ;;  %v181_v12 = vld [vmem:[%s10700_s3 + $0x1a8] sm:$0xff]  ;;  %v183_v15 = vld [vmem:[%s10700_s3 + $0x1b8] sm:$0xff]  ;;  %v180_v23 = vld [vmem:[%s10700_s3 + $0x1a0] sm:$0xff] }
  0x39   :  { %6090 = vmatprep.subr.bf16.mxu1 %v8772_v57  ;;  %10879 = vst [vmem:[#allocation20_spill] sm:$0xff] %v8826_v16  ;;  %10880 = vst [vmem:[#allocation21_spill] sm:$0xff] %v8830_v19  ;;  %v8832_v20 = vpack.c.bf16 %v181_v12, %v177_v11  ;;  %v178_v24 = vld [vmem:[%s10700_s3 + $0x190] sm:$0xff]  ;;  %v8844_v25 = vpack.c.bf16 %v183_v15, %v179_v14  ;;  %v185_v29 = vld [vmem:[%s10700_s3 + $0x1c8] sm:$0xff]  ;;  %v8862_v34 = vpack.c.bf16 %v180_v23, %v176_v21 }
  0x3a   :  { %v182_v28 = vld [vmem:[%s10700_s3 + $0x1b0] sm:$0xff]  ;;  %v189_v30 = vld [vmem:[%s10700_s3 + $0x1e8] sm:$0xff]  ;;  %v187_v32 = vld [vmem:[%s10700_s3 + $0x1d8] sm:$0xff] }
  0x3b   :  { %6060 = vmatpush1.bf16.msra.mxu0 %v8790_v63  ;;  %10881 = vst [vmem:[#allocation22_spill] sm:$0xff] %v8832_v20  ;;  %10882 = vst [vmem:[#allocation23_spill] sm:$0xff] %v8844_v25  ;;  %v191_v33 = vld [vmem:[%s10700_s3 + $0x1f8] sm:$0xff]  ;;  %v8866_v36 = vpack.c.bf16 %v182_v28, %v178_v24  ;;  %v8868_v37 = vpack.c.bf16 %v189_v30, %v185_v29  ;;  %v184_v38 = vld [vmem:[%s10700_s3 + $0x1c0] sm:$0xff] }
  0x3c   :  { %6092 = vmatpush1.bf16.msra.mxu1 %v8794_v1  ;;  %6062 = vmatprep.subr.bf16.mxu0 %v8796_v2  ;;  %10883 = vst [vmem:[#allocation24_spill] sm:$0xff] %v8862_v34  ;;  %v188_v41 = vld [vmem:[%s10700_s3 + $0x1e0] sm:$0xff]  ;;  %v186_v42 = vld [vmem:[%s10700_s3 + $0x1d0] sm:$0xff]  ;;  %v8880_v43 = vpack.c.bf16 %v191_v33, %v187_v32  ;;  %v65_v46 = vld [vmem:[%s10699_s2 + $0x8] sm:$0xff] }
  0x3d   :  { %6094 = vmatprep.subr.bf16.mxu1 %v8808_v7  ;;  %10884 = vst [vmem:[#allocation25_spill] sm:$0xff] %v8866_v36  ;;  %10885 = vst [vmem:[#allocation26_spill] sm:$0xff] %v8868_v37  ;;  %v190_v45 = vld [vmem:[%s10700_s3 + $0x1f0] sm:$0xff]  ;;  %v69_v47 = vld [vmem:[%s10699_s2 + $0x28] sm:$0xff]  ;;  %v8898_v50 = vpack.c.bf16 %v188_v41, %v184_v38 }
  0x3e   :  { %10886 = vst [vmem:[#allocation27_spill] sm:$0xff] %v8880_v43  ;;  %v67_v48 = vld [vmem:[%s10699_s2 + $0x18] sm:$0xff]  ;;  %v8902_v54 = vpack.c.bf16 %v190_v45, %v186_v42  ;;  %v8904_v55 = vpack.c.bf16 %v69_v47, %v65_v46  ;;  %v64_v56 = vld [vmem:[%s10699_s2] sm:$0xff]  ;;  %v66_v59 = vld [vmem:[%s10699_s2 + $0x10] sm:$0xff] }
  0x3f   :  { %6064 = vmatpush1.bf16.msra.mxu0 %v8826_v16  ;;  %v71_v49 = vld [vmem:[%s10699_s2 + $0x38] sm:$0xff]  ;;  %10887 = vst [vmem:[#allocation28_spill] sm:$0xff] %v8898_v50  ;;  %v68_v58 = vld [vmem:[%s10699_s2 + $0x20] sm:$0xff]  ;;  %v70_v61 = vld [vmem:[%s10699_s2 + $0x30] sm:$0xff] }
  0x40   :  { %6096 = vmatpush1.bf16.msra.mxu1 %v8830_v19  ;;  %6066 = vmatprep.subr.bf16.mxu0 %v8832_v20  ;;  %10888 = vst [vmem:[#allocation29_spill] sm:$0xff] %v8902_v54  ;;  %10889 = vst [vmem:[#allocation30_spill] sm:$0xff] %v8904_v55  ;;  %v8916_v60 = vpack.c.bf16 %v71_v49, %v67_v48  ;;  %v73_v62 = vld [vmem:[%s10699_s2 + $0x48] sm:$0xff]  ;;  %v75_v5 = vld [vmem:[%s10699_s2 + $0x58] sm:$0xff]  ;;  %v8934_v10 = vpack.c.bf16 %v68_v58, %v64_v56 }
  0x41   :  { %6098 = vmatprep.subr.bf16.mxu1 %v8844_v25  ;;  %v77_v3 = vld [vmem:[%s10699_s2 + $0x68] sm:$0xff]  ;;  %v79_v6 = vld [vmem:[%s10699_s2 + $0x78] sm:$0xff]  ;;  %v8938_v11 = vpack.c.bf16 %v70_v61, %v66_v59  ;;  %v72_v14 = vld [vmem:[%s10699_s2 + $0x40] sm:$0xff] }
  0x42   :  { %10890 = vst [vmem:[#allocation31_spill] sm:$0xff] %v8916_v60  ;;  %v8940_v12 = vpack.c.bf16 %v77_v3, %v73_v62  ;;  %v76_v15 = vld [vmem:[%s10699_s2 + $0x60] sm:$0xff]  ;;  %v74_v21 = vld [vmem:[%s10699_s2 + $0x50] sm:$0xff]  ;;  %v8952_v23 = vpack.c.bf16 %v79_v6, %v75_v5  ;;  %v81_v28 = vld [vmem:[%s10699_s2 + $0x88] sm:$0xff] }
  0x43   :  { %6068 = vmatpush1.bf16.msra.mxu0 %v8862_v34  ;;  %v78_v24 = vld [vmem:[%s10699_s2 + $0x70] sm:$0xff]  ;;  %v85_v29 = vld [vmem:[%s10699_s2 + $0xa8] sm:$0xff]  ;;  %v83_v30 = vld [vmem:[%s10699_s2 + $0x98] sm:$0xff]  ;;  %v8972_v33 = vpack.c.bf16 %v76_v15, %v72_v14 }
  0x44   :  { %6100 = vmatpush1.bf16.msra.mxu1 %v8866_v36  ;;  %6070 = vmatprep.subr.bf16.mxu0 %v8868_v37  ;;  %v87_v32 = vld [vmem:[%s10699_s2 + $0xb8] sm:$0xff]  ;;  %v8976_v38 = vpack.c.bf16 %v78_v24, %v74_v21  ;;  %v8978_v41 = vpack.c.bf16 %v85_v29, %v81_v28  ;;  %v80_v42 = vld [vmem:[%s10699_s2 + $0x80] sm:$0xff]  ;;  %v82_v46 = vld [vmem:[%s10699_s2 + $0x90] sm:$0xff] }
  0x45   :  { %6102 = vmatprep.subr.bf16.mxu1 %v8880_v43  ;;  %v84_v45 = vld [vmem:[%s10699_s2 + $0xa0] sm:$0xff]  ;;  %v8990_v47 = vpack.c.bf16 %v87_v32, %v83_v30  ;;  %v86_v48 = vld [vmem:[%s10699_s2 + $0xb0] sm:$0xff]  ;;  %v89_v49 = vld [vmem:[%s10699_s2 + $0xc8] sm:$0xff] }
  0x46   :  { %v93_v56 = vld [vmem:[%s10699_s2 + $0xe8] sm:$0xff]  ;;  %v91_v58 = vld [vmem:[%s10699_s2 + $0xd8] sm:$0xff]  ;;  %v9010_v61 = vpack.c.bf16 %v84_v45, %v80_v42  ;;  %v9014_v62 = vpack.c.bf16 %v86_v48, %v82_v46  ;;  %v88_v5 = vld [vmem:[%s10699_s2 + $0xc0] sm:$0xff] }
  0x47   :  { %6072 = vmatpush1.bf16.msra.mxu0 %v8898_v50  ;;  %v95_v59 = vld [vmem:[%s10699_s2 + $0xf8] sm:$0xff]  ;;  %v9016_v3 = vpack.c.bf16 %v93_v56, %v89_v49  ;;  %v92_v6 = vld [vmem:[%s10699_s2 + $0xe0] sm:$0xff]  ;;  %v90_v14 = vld [vmem:[%s10699_s2 + $0xd0] sm:$0xff] }
  0x48   :  { %6104 = vmatpush1.bf16.msra.mxu1 %v8902_v54  ;;  %6106 = vmatprep.subr.bf16.mxu0 %v8904_v55  ;;  %v9028_v15 = vpack.c.bf16 %v95_v59, %v91_v58  ;;  %v94_v21 = vld [vmem:[%s10699_s2 + $0xf0] sm:$0xff]  ;;  %v97_v24 = vld [vmem:[%s10699_s2 + $0x108] sm:$0xff]  ;;  %v99_v29 = vld [vmem:[%s10699_s2 + $0x118] sm:$0xff]  ;;  %v9046_v32 = vpack.c.bf16 %v92_v6, %v88_v5 }
  0x49   :  { %6138 = vmatprep.subr.bf16.mxu1 %v8916_v60  ;;  %v101_v28 = vld [vmem:[%s10699_s2 + $0x128] sm:$0xff]  ;;  %v103_v30 = vld [vmem:[%s10699_s2 + $0x138] sm:$0xff]  ;;  %v9050_v42 = vpack.c.bf16 %v94_v21, %v90_v14  ;;  %v96_v46 = vld [vmem:[%s10699_s2 + $0x100] sm:$0xff] }
  0x4a   :  { %406 = vmatmul.mubr.f32.vlgmr.msra.gmra.mrb[0].mxu0 %v10708_v0  ;;  %v9052_v45 = vpack.c.bf16 %v101_v28, %v97_v24  ;;  %v100_v48 = vld [vmem:[%s10699_s2 + $0x120] sm:$0xff]  ;;  %v98_v49 = vld [vmem:[%s10699_s2 + $0x110] sm:$0xff]  ;;  %v9064_v56 = vpack.c.bf16 %v103_v30, %v99_v29  ;;  %v105_v59 = vld [vmem:[%s10699_s2 + $0x148] sm:$0xff] }
  0x4b   :  { %477 = vmatmul.mubr.f32.vlgmr.msra.gmra.mrb[0].mxu1 %v10708_v0  ;;  %6108 = vmatpush1.bf16.msra.mxu0 %v8934_v10  ;;  %10891 = vst [vmem:[#allocation32_spill] sm:$0xff] %v9050_v42  ;;  %v102_v58 = vld [vmem:[%s10699_s2 + $0x130] sm:$0xff]  ;;  %v109_v5 = vld [vmem:[%s10699_s2 + $0x168] sm:$0xff]  ;;  %v107_v6 = vld [vmem:[%s10699_s2 + $0x158] sm:$0xff]  ;;  %v9082_v21 = vpack.c.bf16 %v100_v48, %v96_v46 }
  0x4c   :  { %6140 = vmatpush1.bf16.msra.mxu1 %v8938_v11  ;;  %6110 = vmatprep.subr.bf16.mxu0 %v8940_v12  ;;  %10892 = vst [vmem:[#allocation33_spill] sm:$0xff] %v9052_v45  ;;  %10893 = vst [vmem:[#allocation34_spill] sm:$0xff] %v9064_v56  ;;  %v111_v14 = vld [vmem:[%s10699_s2 + $0x178] sm:$0xff]  ;;  %v9086_v24 = vpack.c.bf16 %v102_v58, %v98_v49  ;;  %v9088_v28 = vpack.c.bf16 %v109_v5, %v105_v59  ;;  %v104_v29 = vld [vmem:[%s10699_s2 + $0x140] sm:$0xff] }
  0x4d   :  { %6142 = vmatprep.subr.bf16.mxu1 %v8952_v23  ;;  %547 = vmatprep.mubr.f32.mxu0 %v10708_v0  ;;  %10894 = vst [vmem:[#allocation35_spill] sm:$0xff] %v9082_v21  ;;  %v108_v30 = vld [vmem:[%s10699_s2 + $0x160] sm:$0xff]  ;;  %v106_v46 = vld [vmem:[%s10699_s2 + $0x150] sm:$0xff]  ;;  %v9100_v48 = vpack.c.bf16 %v111_v14, %v107_v6  ;;  %v113_v58 = vld [vmem:[%s10699_s2 + $0x188] sm:$0xff] }
  0x4e   :  { %618 = vmatprep.mubr.f32.mxu1 %v10708_v0  ;;  %10895 = vst [vmem:[#allocation36_spill] sm:$0xff] %v9086_v24  ;;  %10896 = vst [vmem:[#allocation37_spill] sm:$0xff] %v9088_v28  ;;  %v110_v49 = vld [vmem:[%s10699_s2 + $0x170] sm:$0xff]  ;;  %v117_v59 = vld [vmem:[%s10699_s2 + $0x1a8] sm:$0xff]  ;;  %v9118_v14 = vpack.c.bf16 %v108_v30, %v104_v29 }
  0x4f   :  { %6112 = vmatpush1.bf16.msra.mxu0 %v8972_v33  ;;  %10897 = vst [vmem:[#allocation38_spill] sm:$0xff] %v9100_v48  ;;  %v115_v5 = vld [vmem:[%s10699_s2 + $0x198] sm:$0xff]  ;;  %v9122_v0 = vpack.c.bf16 %v110_v49, %v106_v46  ;;  %v114_v29 = vld [vmem:[%s10699_s2 + $0x190] sm:$0xff]  ;;  %v121_v49 = vld [vmem:[%s10699_s2 + $0x1c8] sm:$0xff] }
  0x50   :  { %6144 = vmatpush1.bf16.msra.mxu1 %v8976_v38  ;;  %6114 = vmatprep.subr.bf16.mxu0 %v8978_v41  ;;  %v119_v6 = vld [vmem:[%s10699_s2 + $0x1b8] sm:$0xff]  ;;  %v118_v46 = vld [vmem:[%s10699_s2 + $0x1b0] sm:$0xff] }
  0x51   :  { %6146 = vmatprep.subr.bf16.mxu1 %v8990_v47  ;;  %v9136_v30 = vpack.c.bf16 %v119_v6, %v115_v5  ;;  %v127_v5 = vld [vmem:[%s10699_s2 + $0x1f8] sm:$0xff] }
  0x53   :  { %6116 = vmatpush1.bf16.msra.mxu0 %v9010_v61 }
  0x54   :  { %6148 = vmatpush1.bf16.msra.mxu1 %v9014_v62  ;;  %6118 = vmatprep.subr.bf16.mxu0 %v9016_v3 }
  0x55   :  { %6150 = vmatprep.subr.bf16.mxu1 %v9028_v15 }
  0x57   :  { %6120 = vmatpush1.bf16.msra.mxu0 %v9046_v32 }
  0x58   :  { %6152 = vmatpush1.bf16.msra.mxu1 %v9050_v42  ;;  %6122 = vmatprep.subr.bf16.mxu0 %v9052_v45  ;;  %v112_v45 = vld [vmem:[%s10699_s2 + $0x180] sm:$0xff] }
  0x59   :  { %6154 = vmatprep.subr.bf16.mxu1 %v9064_v56  ;;  %v9124_v56 = vpack.c.bf16 %v117_v59, %v113_v58  ;;  %v116_v42 = vld [vmem:[%s10699_s2 + $0x1a0] sm:$0xff]  ;;  %v125_v58 = vld [vmem:[%s10699_s2 + $0x1e8] sm:$0xff]  ;;  %v123_v59 = vld [vmem:[%s10699_s2 + $0x1d8] sm:$0xff] }
  0x5a   :  { %v9154_v6 = vpack.c.bf16 %v116_v42, %v112_v45  ;;  %v9169_v42 = vpack.c.bf16 %v127_v5, %v123_v59  ;;  %v122_v45 = vld [vmem:[%s10699_s2 + $0x1d0] sm:$0xff] }
  0x5b   :  { %6124 = vmatpush1.bf16.msra.mxu0 %v9082_v21  ;;  %v124_v21 = vld [vmem:[%s10699_s2 + $0x1e0] sm:$0xff] }
  0x5c   :  { %6156 = vmatpush1.bf16.msra.mxu1 %v9086_v24  ;;  %6126 = vmatprep.subr.bf16.mxu0 %v9088_v28  ;;  %v9160_v28 = vpack.c.bf16 %v125_v58, %v121_v49  ;;  %v120_v24 = vld [vmem:[%s10699_s2 + $0x1c0] sm:$0xff] }
  0x5d   :  { %6158 = vmatprep.subr.bf16.mxu1 %v9100_v48  ;;  %v9158_v48 = vpack.c.bf16 %v118_v46, %v114_v29  ;;  %v126_v29 = vld [vmem:[%s10699_s2 + $0x1f0] sm:$0xff]  ;;  %v9178_v46 = vpack.c.bf16 %v124_v21, %v120_v24  ;;  %v340_v58 = vld [vmem:[%s10697_s0] sm:$0xff]  ;;  %v10898_v21 = vmov 0.0   ;;  %v626_v24 = vlaneseq }
  0x5e   :  { %v9182_v49 = vpack.c.bf16 %v126_v29, %v122_v45  ;;  %v192_v45 = vld [vmem:[%s10701_s4] sm:$0xf] }
  0x5f   :  { %6128 = vmatpush1.bf16.msra.mxu0 %v9118_v14  ;;  %v9226_v59 = vshrl.u32 %v626_v24, 7 }
  0x60   :  { %6160 = vmatpush1.bf16.msra.mxu1 %v9122_v0  ;;  %6130 = vmatprep.subr.bf16.mxu0 %v9124_v56 }
  0x61   :  { %6162 = vmatprep.subr.bf16.mxu1 %v9136_v30  ;;  %10899 = vst [vmem:[#allocation39_spill] sm:$0xff] %v9226_v59  ;;  %v10742_v5 = vsub.s32 0, %v9226_v59  ;;  %v10743_v29 = vsub.s32 1, %v9226_v59  ;;  %v10750_v24 = vsub.s32 3, %v9226_v59 }
  0x63   :  { %6132 = vmatpush1.bf16.msra.mxu0 %v9154_v6 }
  0x64   :  { %6164 = vmatpush1.bf16.msra.mxu1 %v9158_v48  ;;  %6134 = vmatprep.subr.bf16.mxu0 %v9160_v28 }
  0x65   :  { %6166 = vmatprep.subr.bf16.mxu1 %v9169_v42 }
  0x67   :  { %6136 = vmatpush1.bf16.msra.mxu0 %v9178_v46 }
  0x68   :  { %6168 = vmatpush1.bf16.msra.mxu1 %v9182_v49  ;;  %6170 = vmatprep.subr.bf16.mxu0 %v8616_v4 }
  0x69   :  { %6202 = vmatprep.subr.bf16.mxu1 %v8627_v8 }
  0x6a   :  { %548 = vmatmul.mubr.f32.vlgmr.msra.gmra.mrb[0].mxu0 %v340_v58 }
  0x6b   :  { %619 = vmatmul.mubr.f32.vlgmr.msra.gmra.mrb[0].mxu1 %v340_v58  ;;  %6172 = vmatpush1.bf16.msra.mxu0 %v8629_v9  ;;  %v9235_v58 = vrot.slane %v192_v45, %v10742_v5  ;;  %v9246_v5 = vrot.slane %v192_v45, %v10750_v24 }
  0x6c   :  { %6204 = vmatpush1.bf16.msra.mxu1 %v8641_v13  ;;  %6174 = vmatprep.subr.bf16.mxu0 %v8654_v17 }
  0x6d   :  { %6206 = vmatprep.subr.bf16.mxu1 %v8656_v18  ;;  %740 = vmatprep.mubr.f32.mxu0 %v10898_v21  ;;  %10900 = vst [vmem:[#allocation40_spill] sm:$0xff] %v9235_v58  ;;  %10902 = vst [vmem:[#allocation42_spill] sm:$0xff] %v9246_v5 }
  0x6e   :  { %811 = vmatprep.mubr.f32.mxu1 %v10898_v21 }
  0x6f   :  { %6176 = vmatpush1.bf16.msra.mxu0 %v8668_v22 }
  0x70   :  { %6208 = vmatpush1.bf16.msra.mxu1 %v8681_v26  ;;  %6178 = vmatprep.subr.bf16.mxu0 %v8683_v27 }
  0x71   :  { %6210 = vmatprep.subr.bf16.mxu1 %v8694_v31 }
  0x73   :  { %6180 = vmatpush1.bf16.msra.mxu0 %v8706_v35 }
  0x74   :  { %6212 = vmatpush1.bf16.msra.mxu1 %v8719_v39  ;;  %6182 = vmatprep.subr.bf16.mxu0 %v8721_v40 }
  0x75   :  { %6214 = vmatprep.subr.bf16.mxu1 %v8733_v44 }
  0x77   :  { %6184 = vmatpush1.bf16.msra.mxu0 %v8754_v51 }
  0x78   :  { %6216 = vmatpush1.bf16.msra.mxu1 %v8758_v52  ;;  %6186 = vmatprep.subr.bf16.mxu0 %v8760_v53 }
  0x79   :  { %6218 = vmatprep.subr.bf16.mxu1 %v8772_v57 }
  0x7b   :  { %6188 = vmatpush1.bf16.msra.mxu0 %v8790_v63 }
  0x7c   :  { %6220 = vmatpush1.bf16.msra.mxu1 %v8794_v1  ;;  %6190 = vmatprep.subr.bf16.mxu0 %v8796_v2 }
  0x7d   :  { %6222 = vmatprep.subr.bf16.mxu1 %v8808_v7 }
  0x7f   :  { %6192 = vmatpush1.bf16.msra.mxu0 %v8826_v16 }
  0x80   :  { %6224 = vmatpush1.bf16.msra.mxu1 %v8830_v19  ;;  %6194 = vmatprep.subr.bf16.mxu0 %v8832_v20 }
  0x81   :  { %6226 = vmatprep.subr.bf16.mxu1 %v8844_v25 }
  0x83   :  { %6196 = vmatpush1.bf16.msra.mxu0 %v8862_v34 }
  0x84   :  { %6228 = vmatpush1.bf16.msra.mxu1 %v8866_v36  ;;  %6198 = vmatprep.subr.bf16.mxu0 %v8868_v37 }
  0x85   :  { %6230 = vmatprep.subr.bf16.mxu1 %v8880_v43 }
  0x87   :  { %6200 = vmatpush1.bf16.msra.mxu0 %v8898_v50 }
  0x88   :  { %6232 = vmatpush1.bf16.msra.mxu1 %v8902_v54  ;;  %6234 = vmatprep.subr.bf16.mxu0 %v8904_v55  ;;  %v9239_v55 = vrot.slane %v192_v45, %v10743_v29  ;;  %v10759_v29 = vsub.s32 2, %v9226_v59 }
  0x89   :  { %6266 = vmatprep.subr.bf16.mxu1 %v8916_v60 }
  0x8a   :  { %10901 = vst [vmem:[#allocation41_spill] sm:$0xff] %v9239_v55 }
 0x13d   :  { %v549_v60 = vpop.f32.mrb[0].mxu0 }
 0x13e   :  { %v646_v54 = vadd.f32 %v9235_v58, %v549_v60  ;;  %v620_v50 = vpop.f32.mrb[0].mxu1  ;;  %v551_v43 = vpop.f32.mrb[1].mxu0  ;;  %v9252_v60 = vrot.slane %v192_v45, %v10759_v29  ;;  %v10918_v29 = vld [vmem:[#allocation28_spill] sm:$0xff] }
 0x13f   :  { %v647_v37 = vadd.f32 %v9239_v55, %v551_v43  ;;  %v622_v36 = vpop.f32.mrb[1].mxu1 }
 0x140   :  { %v5618_v34 = vmul.f32 -1.442695, %v646_v54  ;;  %v649_v20 = vadd.f32 %v9246_v5, %v622_v36  ;;  %v648_v43 = vadd.f32 %v9252_v60, %v620_v50 }
 0x141   :  { %v5619_v25 = vmul.f32 -1.442695, %v647_v37 }
 0x142   :  { %8199 = vpow2.f32 %v5618_v34  ;;  %v5620_v58 = vmul.f32 -1.442695, %v649_v20 }
 0x143   :  { %8201 = vpow2.f32 %v5619_v25 }
 0x144   :  { %8203 = vpow2.f32 %v5620_v58  ;;  %v10907_v58 = vld [vmem:[#allocation36_spill] sm:$0xff] }
 0x145   :  { %8205 = vtanh.f32 %v648_v43  ;;  %v10909_v43 = vld [vmem:[#allocation38_spill] sm:$0xff] }
 0x14c   :  { %v8200_v55 = vpop.eup %8199 }
 0x14d   :  { %v8202_v54 = vpop.eup %8201  ;;  %v653_v37 = vadd.f32 1.0, %v8200_v55 }
 0x14e   :  { %v659_v24 = vadd.f32 1.0, %v8202_v54  ;;  %v8204_v34 = vpop.eup %8203  ;;  %v5621_v54 = vld [vmem:[%s10697_s0 + $0x8] sm:$0xff] }
 0x14f   :  { %8207 = vrcp.f32 %v653_v37  ;;  %v8206_v19 = vpop.eup %8205  ;;  %v666_v5 = vadd.f32 1.0, %v8204_v34  ;;  %v10910_v37 = vld [vmem:[#allocation20_spill] sm:$0xff]  ;;  %v10911_v34 = vld [vmem:[#allocation21_spill] sm:$0xff] }
 0x150   :  { %8209 = vrcp.f32 %v659_v24  ;;  %v10908_v24 = vld [vmem:[#allocation37_spill] sm:$0xff] }
 0x151   :  { %8211 = vrcp.f32 %v666_v5  ;;  %v10906_v5 = vld [vmem:[#allocation35_spill] sm:$0xff] }
 0x159   :  { %v8208_v25 = vpop.eup %8207 }
 0x15a   :  { %v8210_v16 = vpop.eup %8209  ;;  %v670_v36 = vmul.f32 %v8208_v25, %v8206_v19  ;;  %v10904_v19 = vld [vmem:[#allocation33_spill] sm:$0xff]  ;;  %v10912_v25 = vld [vmem:[#allocation22_spill] sm:$0xff] }
 0x15b   :  { %v669_v59 = vmul.f32 0.0, %v8210_v16  ;;  %v8212_v20 = vpop.eup %8211  ;;  %v10903_v16 = vld [vmem:[#allocation32_spill] sm:$0xff] }
 0x15d   :  { %v9255_v45 = vadd.f32 %v670_v36, %v669_v59  ;;  %v10905_v59 = vld [vmem:[#allocation34_spill] sm:$0xff]  ;;  %v10913_v36 = vld [vmem:[#allocation23_spill] sm:$0xff] }
 0x15f   :  { %8213 = vtanh.f32 %v9255_v45 }
 0x169   :  { %v8214_v50 = vpop.eup %8213 }
 0x16a   :  { %v673_v55 = vmul.f32 %v8214_v50, %v8212_v20  ;;  %v10914_v20 = vld [vmem:[#allocation24_spill] sm:$0xff]  ;;  %v10915_v50 = vld [vmem:[#allocation25_spill] sm:$0xff] }
 0x16c   :  { %741 = vmatmul.mubr.f32.vlgmr.msra.gmra.mrb[2].mxu0 %v673_v55  ;;  %812 = vmatmul.mubr.f32.vlgmr.msra.gmra.mrb[2].mxu1 %v673_v55  ;;  %v10916_v55 = vld [vmem:[#allocation26_spill] sm:$0xff] }
 0x16d   :  { %6236 = vmatpush1.bf16.msra.mxu0 %v8934_v10  ;;  %6268 = vmatpush1.bf16.msra.mxu1 %v8938_v11 }
 0x16e   :  { %6238 = vmatprep.subr.bf16.mxu0 %v8940_v12  ;;  %6270 = vmatprep.subr.bf16.mxu1 %v8952_v23 }
 0x16f   :  { %882 = vmatprep.mubr.f32.mxu0 %v10898_v21  ;;  %953 = vmatprep.mubr.f32.mxu1 %v10898_v21 }
 0x171   :  { %6240 = vmatpush1.bf16.msra.mxu0 %v8972_v33  ;;  %6272 = vmatpush1.bf16.msra.mxu1 %v8976_v38 }
 0x172   :  { %6242 = vmatprep.subr.bf16.mxu0 %v8978_v41  ;;  %6274 = vmatprep.subr.bf16.mxu1 %v8990_v47 }
 0x175   :  { %6244 = vmatpush1.bf16.msra.mxu0 %v9010_v61  ;;  %6276 = vmatpush1.bf16.msra.mxu1 %v9014_v62 }
 0x176   :  { %6246 = vmatprep.subr.bf16.mxu0 %v9016_v3  ;;  %6278 = vmatprep.subr.bf16.mxu1 %v9028_v15 }
 0x179   :  { %6248 = vmatpush1.bf16.msra.mxu0 %v9046_v32  ;;  %6280 = vmatpush1.bf16.msra.mxu1 %v10903_v16 }
 0x17a   :  { %6250 = vmatprep.subr.bf16.mxu0 %v10904_v19  ;;  %6282 = vmatprep.subr.bf16.mxu1 %v10905_v59 }
 0x17d   :  { %6252 = vmatpush1.bf16.msra.mxu0 %v10906_v5  ;;  %6284 = vmatpush1.bf16.msra.mxu1 %v10907_v58 }
 0x17e   :  { %6254 = vmatprep.subr.bf16.mxu0 %v10908_v24  ;;  %6286 = vmatprep.subr.bf16.mxu1 %v10909_v43 }
 0x181   :  { %6256 = vmatpush1.bf16.msra.mxu0 %v9118_v14  ;;  %6288 = vmatpush1.bf16.msra.mxu1 %v9122_v0 }
 0x182   :  { %6258 = vmatprep.subr.bf16.mxu0 %v9124_v56  ;;  %6290 = vmatprep.subr.bf16.mxu1 %v9136_v30 }
 0x185   :  { %6260 = vmatpush1.bf16.msra.mxu0 %v9154_v6  ;;  %6292 = vmatpush1.bf16.msra.mxu1 %v9158_v48 }
 0x186   :  { %6262 = vmatprep.subr.bf16.mxu0 %v9160_v28  ;;  %6294 = vmatprep.subr.bf16.mxu1 %v9169_v42 }
 0x189   :  { %6264 = vmatpush1.bf16.msra.mxu0 %v9178_v46  ;;  %6296 = vmatpush1.bf16.msra.mxu1 %v9182_v49 }
 0x18a   :  { %6298 = vmatprep.subr.bf16.mxu0 %v8616_v4  ;;  %6330 = vmatprep.subr.bf16.mxu1 %v8627_v8 }
 0x18c   :  { %883 = vmatmul.mubr.f32.vlgmr.msra.gmra.mrb[2].mxu0 %v5621_v54  ;;  %954 = vmatmul.mubr.f32.vlgmr.msra.gmra.mrb[2].mxu1 %v5621_v54  ;;  %v10917_v54 = vld [vmem:[#allocation27_spill] sm:$0xff] }
 0x18d   :  { %6300 = vmatpush1.bf16.msra.mxu0 %v8629_v9  ;;  %6332 = vmatpush1.bf16.msra.mxu1 %v8641_v13 }
 0x18e   :  { %6302 = vmatprep.subr.bf16.mxu0 %v8654_v17  ;;  %6334 = vmatprep.subr.bf16.mxu1 %v8656_v18 }
 0x18f   :  { %1054 = vmatprep.mubr.f32.mxu0 %v10898_v21  ;;  %1125 = vmatprep.mubr.f32.mxu1 %v10898_v21 }
 0x191   :  { %6304 = vmatpush1.bf16.msra.mxu0 %v8668_v22  ;;  %6336 = vmatpush1.bf16.msra.mxu1 %v8681_v26 }
 0x192   :  { %6306 = vmatprep.subr.bf16.mxu0 %v8683_v27  ;;  %6338 = vmatprep.subr.bf16.mxu1 %v8694_v31 }
 0x195   :  { %6308 = vmatpush1.bf16.msra.mxu0 %v8706_v35  ;;  %6340 = vmatpush1.bf16.msra.mxu1 %v8719_v39 }
 0x196   :  { %6310 = vmatprep.subr.bf16.mxu0 %v8721_v40  ;;  %6342 = vmatprep.subr.bf16.mxu1 %v8733_v44 }
 0x199   :  { %6312 = vmatpush1.bf16.msra.mxu0 %v8754_v51  ;;  %6344 = vmatpush1.bf16.msra.mxu1 %v8758_v52 }
 0x19a   :  { %6314 = vmatprep.subr.bf16.mxu0 %v8760_v53  ;;  %6346 = vmatprep.subr.bf16.mxu1 %v8772_v57  ;;  %v10923_v57 = vld [vmem:[#allocation41_spill] sm:$0xff] }
 0x19d   :  { %6316 = vmatpush1.bf16.msra.mxu0 %v8790_v63  ;;  %6348 = vmatpush1.bf16.msra.mxu1 %v8794_v1  ;;  %v10922_v1 = vld [vmem:[#allocation40_spill] sm:$0xff] }
 0x19e   :  { %6318 = vmatprep.subr.bf16.mxu0 %v8796_v2  ;;  %6350 = vmatprep.subr.bf16.mxu1 %v8808_v7  ;;  %v10919_v2 = vld [vmem:[#allocation29_spill] sm:$0xff]  ;;  %v10920_v7 = vld [vmem:[#allocation30_spill] sm:$0xff] }
 0x1a1   :  { %6320 = vmatpush1.bf16.msra.mxu0 %v10910_v37  ;;  %6352 = vmatpush1.bf16.msra.mxu1 %v10911_v34  ;;  %v10921_v37 = vld [vmem:[#allocation31_spill] sm:$0xff] }
 0x1a2   :  { %6322 = vmatprep.subr.bf16.mxu0 %v10912_v25  ;;  %6354 = vmatprep.subr.bf16.mxu1 %v10913_v36 }
 0x1a5   :  { %6324 = vmatpush1.bf16.msra.mxu0 %v10914_v20  ;;  %6356 = vmatpush1.bf16.msra.mxu1 %v10915_v50 }
 0x1a6   :  { %6326 = vmatprep.subr.bf16.mxu0 %v10916_v55  ;;  %6358 = vmatprep.subr.bf16.mxu1 %v10917_v54  ;;  %v10924_v54 = vld [vmem:[#allocation42_spill] sm:$0xff] }
 0x1a9   :  { %6328 = vmatpush1.bf16.msra.mxu0 %v10918_v29  ;;  %6360 = vmatpush1.bf16.msra.mxu1 %v10919_v2 }
 0x1aa   :  { %6362 = vmatprep.subr.bf16.mxu0 %v10920_v7  ;;  %6394 = vmatprep.subr.bf16.mxu1 %v10921_v37 }
 0x25f   :  { %v884_v34 = vpop.f32.mrb[2].mxu0  ;;  %v955_v25 = vpop.f32.mrb[2].mxu1 }
 0x260   :  { %v960_v36 = vadd.f32 %v884_v34, %v10922_v1  ;;  %v886_v63 = vpop.f32.mrb[3].mxu0  ;;  %v957_v20 = vpop.f32.mrb[3].mxu1  ;;  %v962_v2 = vadd.f32 %v955_v25, %v9252_v60  ;;  %v10931_v25 = vld [vmem:[#allocation17_spill] sm:$0xff] }
 0x261   :  { %v961_v50 = vadd.f32 %v886_v63, %v10923_v57  ;;  %v963_v29 = vadd.f32 %v957_v20, %v10924_v54 }
 0x262   :  { %v5622_v53 = vmul.f32 -1.442695, %v960_v36 }
 0x263   :  { %v5623_v55 = vmul.f32 -1.442695, %v961_v50  ;;  %v5624_v52 = vmul.f32 -1.442695, %v963_v29 }
 0x264   :  { %8215 = vpow2.f32 %v5622_v53 }
 0x265   :  { %8217 = vpow2.f32 %v5623_v55 }
 0x266   :  { %8219 = vpow2.f32 %v5624_v52 }
 0x267   :  { %8221 = vtanh.f32 %v962_v2  ;;  %v10927_v2 = vld [vmem:[#allocation13_spill] sm:$0xff] }
 0x26e   :  { %v8216_v7 = vpop.eup %8215 }
 0x26f   :  { %v8218_v51 = vpop.eup %8217  ;;  %v967_v37 = vadd.f32 1.0, %v8216_v7 }
 0x270   :  { %v973_v44 = vadd.f32 1.0, %v8218_v51  ;;  %v8220_v34 = vpop.eup %8219  ;;  %v10925_v51 = vld [vmem:[#allocation11_spill] sm:$0xff] }
 0x271   :  { %8223 = vrcp.f32 %v967_v37  ;;  %v8222_v1 = vpop.eup %8221  ;;  %v980_v53 = vadd.f32 1.0, %v8220_v34  ;;  %v10930_v37 = vld [vmem:[#allocation16_spill] sm:$0xff]  ;;  %v10932_v34 = vld [vmem:[#allocation18_spill] sm:$0xff] }
 0x272   :  { %8225 = vrcp.f32 %v973_v44  ;;  %v5625_v44 = vld [vmem:[%s10697_s0 + $0x10] sm:$0xff] }
 0x273   :  { %8227 = vrcp.f32 %v980_v53  ;;  %v10936_v53 = vld [vmem:[#allocation22_spill] sm:$0xff] }
 0x27b   :  { %v8224_v63 = vpop.eup %8223 }
 0x27c   :  { %v8226_v36 = vpop.eup %8225  ;;  %v984_v50 = vmul.f32 %v8224_v63, %v8222_v1  ;;  %v10926_v1 = vld [vmem:[#allocation12_spill] sm:$0xff]  ;;  %v10933_v63 = vld [vmem:[#allocation19_spill] sm:$0xff] }
 0x27d   :  { %v983_v55 = vmul.f32 %v8226_v36, %v9255_v45  ;;  %v8228_v29 = vpop.eup %8227  ;;  %v10929_v45 = vld [vmem:[#allocation15_spill] sm:$0xff]  ;;  %v10934_v36 = vld [vmem:[#allocation20_spill] sm:$0xff] }
 0x27f   :  { %v9334_v20 = vadd.f32 %v984_v50, %v983_v55  ;;  %v10935_v50 = vld [vmem:[#allocation21_spill] sm:$0xff]  ;;  %v10937_v55 = vld [vmem:[#allocation23_spill] sm:$0xff] }
 0x281   :  { %8229 = vtanh.f32 %v9334_v20 }
 0x28b   :  { %v8230_v7 = vpop.eup %8229 }
 0x28c   :  { %v987_v52 = vmul.f32 %v8230_v7, %v8228_v29  ;;  %v10938_v29 = vld [vmem:[#allocation24_spill] sm:$0xff]  ;;  %v10939_v7 = vld [vmem:[#allocation25_spill] sm:$0xff] }
 0x28e   :  { %1055 = vmatmul.mubr.f32.vlgmr.msra.gmra.mrb[4].mxu0 %v987_v52  ;;  %1126 = vmatmul.mubr.f32.vlgmr.msra.gmra.mrb[4].mxu1 %v987_v52  ;;  %v10940_v52 = vld [vmem:[#allocation26_spill] sm:$0xff] }
 0x28f   :  { %6364 = vmatpush1.bf16.msra.mxu0 %v8934_v10  ;;  %6396 = vmatpush1.bf16.msra.mxu1 %v8938_v11 }
 0x290   :  { %6366 = vmatprep.subr.bf16.mxu0 %v8940_v12  ;;  %6398 = vmatprep.subr.bf16.mxu1 %v8952_v23 }
 0x291   :  { %1196 = vmatprep.mubr.f32.mxu0 %v10898_v21  ;;  %1267 = vmatprep.mubr.f32.mxu1 %v10898_v21 }
 0x293   :  { %6368 = vmatpush1.bf16.msra.mxu0 %v8972_v33  ;;  %6400 = vmatpush1.bf16.msra.mxu1 %v8976_v38 }
 0x294   :  { %6370 = vmatprep.subr.bf16.mxu0 %v8978_v41  ;;  %6402 = vmatprep.subr.bf16.mxu1 %v8990_v47 }
 0x297   :  { %6372 = vmatpush1.bf16.msra.mxu0 %v9010_v61  ;;  %6404 = vmatpush1.bf16.msra.mxu1 %v9014_v62 }
 0x298   :  { %6374 = vmatprep.subr.bf16.mxu0 %v9016_v3  ;;  %6406 = vmatprep.subr.bf16.mxu1 %v9028_v15 }
 0x29b   :  { %6376 = vmatpush1.bf16.msra.mxu0 %v9046_v32  ;;  %6408 = vmatpush1.bf16.msra.mxu1 %v10903_v16 }
 0x29c   :  { %6378 = vmatprep.subr.bf16.mxu0 %v10904_v19  ;;  %6410 = vmatprep.subr.bf16.mxu1 %v10905_v59 }
 0x29f   :  { %6380 = vmatpush1.bf16.msra.mxu0 %v10906_v5  ;;  %6412 = vmatpush1.bf16.msra.mxu1 %v10907_v58 }
 0x2a0   :  { %6382 = vmatprep.subr.bf16.mxu0 %v10908_v24  ;;  %6414 = vmatprep.subr.bf16.mxu1 %v10909_v43 }
 0x2a3   :  { %6384 = vmatpush1.bf16.msra.mxu0 %v9118_v14  ;;  %6416 = vmatpush1.bf16.msra.mxu1 %v9122_v0 }
 0x2a4   :  { %6386 = vmatprep.subr.bf16.mxu0 %v9124_v56  ;;  %6418 = vmatprep.subr.bf16.mxu1 %v9136_v30 }
 0x2a7   :  { %6388 = vmatpush1.bf16.msra.mxu0 %v9154_v6  ;;  %6420 = vmatpush1.bf16.msra.mxu1 %v9158_v48 }
 0x2a8   :  { %6390 = vmatprep.subr.bf16.mxu0 %v9160_v28  ;;  %6422 = vmatprep.subr.bf16.mxu1 %v9169_v42 }
 0x2ab   :  { %6392 = vmatpush1.bf16.msra.mxu0 %v9178_v46  ;;  %6424 = vmatpush1.bf16.msra.mxu1 %v9182_v49 }
 0x2ac   :  { %6426 = vmatprep.subr.bf16.mxu0 %v8616_v4  ;;  %6458 = vmatprep.subr.bf16.mxu1 %v8627_v8 }
 0x2ae   :  { %1197 = vmatmul.mubr.f32.vlgmr.msra.gmra.mrb[4].mxu0 %v5625_v44  ;;  %1268 = vmatmul.mubr.f32.vlgmr.msra.gmra.mrb[4].mxu1 %v5625_v44  ;;  %v10941_v44 = vld [vmem:[#allocation27_spill] sm:$0xff] }
 0x2af   :  { %6428 = vmatpush1.bf16.msra.mxu0 %v8629_v9  ;;  %6460 = vmatpush1.bf16.msra.mxu1 %v8641_v13 }
 0x2b0   :  { %6430 = vmatprep.subr.bf16.mxu0 %v8654_v17  ;;  %6462 = vmatprep.subr.bf16.mxu1 %v8656_v18 }
 0x2b1   :  { %1368 = vmatprep.mubr.f32.mxu0 %v10898_v21  ;;  %1439 = vmatprep.mubr.f32.mxu1 %v10898_v21  ;;  %v10928_v21 = vld [vmem:[#allocation14_spill] sm:$0xff] }
 0x2b3   :  { %6432 = vmatpush1.bf16.msra.mxu0 %v8668_v22  ;;  %6464 = vmatpush1.bf16.msra.mxu1 %v8681_v26 }
 0x2b4   :  { %6434 = vmatprep.subr.bf16.mxu0 %v8683_v27  ;;  %6466 = vmatprep.subr.bf16.mxu1 %v8694_v31 }
 0x2b7   :  { %6436 = vmatpush1.bf16.msra.mxu0 %v8706_v35  ;;  %6468 = vmatpush1.bf16.msra.mxu1 %v8719_v39 }
 0x2b8   :  { %6438 = vmatprep.subr.bf16.mxu0 %v8721_v40  ;;  %6470 = vmatprep.subr.bf16.mxu1 %v10925_v51 }
 0x2bb   :  { %6440 = vmatpush1.bf16.msra.mxu0 %v10926_v1  ;;  %6472 = vmatpush1.bf16.msra.mxu1 %v10927_v2 }
 0x2bc   :  { %6442 = vmatprep.subr.bf16.mxu0 %v10928_v21  ;;  %6474 = vmatprep.subr.bf16.mxu1 %v10929_v45 }
 0x2bf   :  { %6444 = vmatpush1.bf16.msra.mxu0 %v10930_v37  ;;  %6476 = vmatpush1.bf16.msra.mxu1 %v10931_v25  ;;  %v10942_v25 = vld [vmem:[#allocation28_spill] sm:$0xff] }
 0x2c0   :  { %6446 = vmatprep.subr.bf16.mxu0 %v10932_v34  ;;  %6478 = vmatprep.subr.bf16.mxu1 %v10933_v63  ;;  %v10943_v34 = vld [vmem:[#allocation29_spill] sm:$0xff]  ;;  %v10944_v63 = vld [vmem:[#allocation30_spill] sm:$0xff]  ;;  %v10946_v37 = vld [vmem:[#allocation40_spill] sm:$0xff] }
 0x2c3   :  { %6448 = vmatpush1.bf16.msra.mxu0 %v10934_v36  ;;  %6480 = vmatpush1.bf16.msra.mxu1 %v10935_v50  ;;  %v10945_v36 = vld [vmem:[#allocation31_spill] sm:$0xff] }
 0x2c4   :  { %6450 = vmatprep.subr.bf16.mxu0 %v10936_v53  ;;  %6482 = vmatprep.subr.bf16.mxu1 %v10937_v55 }
 0x2c7   :  { %6452 = vmatpush1.bf16.msra.mxu0 %v10938_v29  ;;  %6484 = vmatpush1.bf16.msra.mxu1 %v10939_v7 }
 0x2c8   :  { %6454 = vmatprep.subr.bf16.mxu0 %v10940_v52  ;;  %6486 = vmatprep.subr.bf16.mxu1 %v10941_v44 }
 0x2cb   :  { %6456 = vmatpush1.bf16.msra.mxu0 %v10942_v25  ;;  %6488 = vmatpush1.bf16.msra.mxu1 %v10943_v34 }
 0x2cc   :  { %6490 = vmatprep.subr.bf16.mxu0 %v10944_v63  ;;  %6522 = vmatprep.subr.bf16.mxu1 %v10945_v36 }
 0x381   :  { %v1198_v50 = vpop.f32.mrb[4].mxu0  ;;  %v1269_v53 = vpop.f32.mrb[4].mxu1 }
 0x382   :  { %v1274_v55 = vadd.f32 %v1198_v50, %v10946_v37  ;;  %v1200_v45 = vpop.f32.mrb[5].mxu0  ;;  %v1271_v29 = vpop.f32.mrb[5].mxu1  ;;  %v1276_v34 = vadd.f32 %v1269_v53, %v9252_v60 }
 0x383   :  { %v1275_v7 = vadd.f32 %v1200_v45, %v10923_v57  ;;  %v1277_v25 = vadd.f32 %v1271_v29, %v10924_v54 }
 0x384   :  { %v5626_v21 = vmul.f32 -1.442695, %v1274_v55 }
 0x385   :  { %v5627_v52 = vmul.f32 -1.442695, %v1275_v7  ;;  %v5628_v44 = vmul.f32 -1.442695, %v1277_v25 }
 0x386   :  { %8231 = vpow2.f32 %v5626_v21 }
 0x387   :  { %8233 = vpow2.f32 %v5627_v52 }
 0x388   :  { %8235 = vpow2.f32 %v5628_v44  ;;  %v10951_v44 = vld [vmem:[#allocation16_spill] sm:$0xff] }
 0x389   :  { %8237 = vtanh.f32 %v1276_v34  ;;  %v10949_v34 = vld [vmem:[#allocation14_spill] sm:$0xff] }
 0x390   :  { %v8232_v63 = vpop.eup %8231 }
 0x391   :  { %v8234_v2 = vpop.eup %8233  ;;  %v1281_v36 = vadd.f32 1.0, %v8232_v63 }
 0x392   :  { %v1287_v1 = vadd.f32 1.0, %v8234_v2  ;;  %v8236_v50 = vpop.eup %8235  ;;  %v10947_v2 = vld [vmem:[#allocation12_spill] sm:$0xff] }
 0x393   :  { %8239 = vrcp.f32 %v1281_v36  ;;  %v8238_v37 = vpop.eup %8237  ;;  %v1294_v21 = vadd.f32 1.0, %v8236_v50  ;;  %v10950_v36 = vld [vmem:[#allocation15_spill] sm:$0xff]  ;;  %v10952_v50 = vld [vmem:[#allocation17_spill] sm:$0xff] }
 0x394   :  { %8241 = vrcp.f32 %v1287_v1  ;;  %v9420_v1 = vld [vmem:[#allocation7] sm:$0xff] }
 0x395   :  { %8243 = vrcp.f32 %v1294_v21  ;;  %v10956_v21 = vld [vmem:[#allocation21_spill] sm:$0xff] }
 0x39d   :  { %v8240_v45 = vpop.eup %8239 }
 0x39e   :  { %v8242_v55 = vpop.eup %8241  ;;  %v1298_v7 = vmul.f32 %v8240_v45, %v8238_v37  ;;  %v10948_v37 = vld [vmem:[#allocation13_spill] sm:$0xff]  ;;  %v10953_v45 = vld [vmem:[#allocation18_spill] sm:$0xff] }
 0x39f   :  { %v1297_v52 = vmul.f32 %v8242_v55, %v9334_v20  ;;  %v8244_v25 = vpop.eup %8243  ;;  %v5629_v20 = vld [vmem:[%s10697_s0 + $0x18] sm:$0xff]  ;;  %v10954_v55 = vld [vmem:[#allocation19_spill] sm:$0xff] }
 0x3a1   :  { %v9413_v29 = vadd.f32 %v1298_v7, %v1297_v52  ;;  %v10955_v7 = vld [vmem:[#allocation20_spill] sm:$0xff]  ;;  %v10957_v52 = vld [vmem:[#allocation22_spill] sm:$0xff] }
 0x3a3   :  { %8245 = vtanh.f32 %v9413_v29 }
 0x3ad   :  { %v8246_v63 = vpop.eup %8245 }
 0x3ae   :  { %v1301_v53 = vmul.f32 %v8246_v63, %v8244_v25  ;;  %v10958_v25 = vld [vmem:[#allocation23_spill] sm:$0xff]  ;;  %v10959_v63 = vld [vmem:[#allocation24_spill] sm:$0xff] }
 0x3b0   :  { %1369 = vmatmul.mubr.f32.vlgmr.msra.gmra.mrb[6].mxu0 %v1301_v53  ;;  %1440 = vmatmul.mubr.f32.vlgmr.msra.gmra.mrb[6].mxu1 %v1301_v53  ;;  %v10960_v53 = vld [vmem:[#allocation25_spill] sm:$0xff] }
 0x3b1   :  { %6492 = vmatpush1.bf16.msra.mxu0 %v8934_v10  ;;  %6524 = vmatpush1.bf16.msra.mxu1 %v8938_v11 }
 0x3b2   :  { %6494 = vmatprep.subr.bf16.mxu0 %v8940_v12  ;;  %6526 = vmatprep.subr.bf16.mxu1 %v8952_v23 }
 0x3b3   :  { %1510 = vmatprep.mubr.f32.mxu0 %v9420_v1  ;;  %1581 = vmatprep.mubr.f32.mxu1 %v9420_v1 }
 0x3b5   :  { %6496 = vmatpush1.bf16.msra.mxu0 %v8972_v33  ;;  %6528 = vmatpush1.bf16.msra.mxu1 %v8976_v38 }
 0x3b6   :  { %6498 = vmatprep.subr.bf16.mxu0 %v8978_v41  ;;  %6530 = vmatprep.subr.bf16.mxu1 %v8990_v47 }
 0x3b9   :  { %6500 = vmatpush1.bf16.msra.mxu0 %v9010_v61  ;;  %6532 = vmatpush1.bf16.msra.mxu1 %v9014_v62 }
 0x3ba   :  { %6502 = vmatprep.subr.bf16.mxu0 %v9016_v3  ;;  %6534 = vmatprep.subr.bf16.mxu1 %v9028_v15 }
 0x3bd   :  { %6504 = vmatpush1.bf16.msra.mxu0 %v9046_v32  ;;  %6536 = vmatpush1.bf16.msra.mxu1 %v10903_v16 }
 0x3be   :  { %6506 = vmatprep.subr.bf16.mxu0 %v10904_v19  ;;  %6538 = vmatprep.subr.bf16.mxu1 %v10905_v59 }
 0x3c1   :  { %6508 = vmatpush1.bf16.msra.mxu0 %v10906_v5  ;;  %6540 = vmatpush1.bf16.msra.mxu1 %v10907_v58 }
 0x3c2   :  { %6510 = vmatprep.subr.bf16.mxu0 %v10908_v24  ;;  %6542 = vmatprep.subr.bf16.mxu1 %v10909_v43 }
 0x3c5   :  { %6512 = vmatpush1.bf16.msra.mxu0 %v9118_v14  ;;  %6544 = vmatpush1.bf16.msra.mxu1 %v9122_v0 }
 0x3c6   :  { %6514 = vmatprep.subr.bf16.mxu0 %v9124_v56  ;;  %6546 = vmatprep.subr.bf16.mxu1 %v9136_v30 }
 0x3c9   :  { %6516 = vmatpush1.bf16.msra.mxu0 %v9154_v6  ;;  %6548 = vmatpush1.bf16.msra.mxu1 %v9158_v48 }
 0x3ca   :  { %6518 = vmatprep.subr.bf16.mxu0 %v9160_v28  ;;  %6550 = vmatprep.subr.bf16.mxu1 %v9169_v42 }
 0x3cd   :  { %6520 = vmatpush1.bf16.msra.mxu0 %v9178_v46  ;;  %6552 = vmatpush1.bf16.msra.mxu1 %v9182_v49 }
 0x3ce   :  { %6554 = vmatprep.subr.bf16.mxu0 %v8616_v4  ;;  %6586 = vmatprep.subr.bf16.mxu1 %v8627_v8 }
 0x3d0   :  { %1511 = vmatmul.mubr.f32.vlgmr.msra.gmra.mrb[6].mxu0 %v5629_v20  ;;  %1582 = vmatmul.mubr.f32.vlgmr.msra.gmra.mrb[6].mxu1 %v5629_v20  ;;  %v10961_v20 = vld [vmem:[#allocation26_spill] sm:$0xff] }
 0x3d1   :  { %6556 = vmatpush1.bf16.msra.mxu0 %v8629_v9  ;;  %6588 = vmatpush1.bf16.msra.mxu1 %v8641_v13 }
 0x3d2   :  { %6558 = vmatprep.subr.bf16.mxu0 %v8654_v17  ;;  %6590 = vmatprep.subr.bf16.mxu1 %v8656_v18 }
 0x3d3   :  { %1682 = vmatprep.mubr.f32.mxu0 %v9420_v1  ;;  %1753 = vmatprep.mubr.f32.mxu1 %v9420_v1 }
 0x3d5   :  { %6560 = vmatpush1.bf16.msra.mxu0 %v8668_v22  ;;  %6592 = vmatpush1.bf16.msra.mxu1 %v8681_v26 }
 0x3d6   :  { %6562 = vmatprep.subr.bf16.mxu0 %v8683_v27  ;;  %6594 = vmatprep.subr.bf16.mxu1 %v8694_v31 }
 0x3d9   :  { %6564 = vmatpush1.bf16.msra.mxu0 %v8706_v35  ;;  %6596 = vmatpush1.bf16.msra.mxu1 %v8719_v39 }
 0x3da   :  { %6566 = vmatprep.subr.bf16.mxu0 %v8721_v40  ;;  %6598 = vmatprep.subr.bf16.mxu1 %v10925_v51 }
 0x3dd   :  { %6568 = vmatpush1.bf16.msra.mxu0 %v10947_v2  ;;  %6600 = vmatpush1.bf16.msra.mxu1 %v10948_v37 }
 0x3de   :  { %6570 = vmatprep.subr.bf16.mxu0 %v10949_v34  ;;  %6602 = vmatprep.subr.bf16.mxu1 %v10950_v36  ;;  %v10967_v36 = vld [vmem:[#allocation40_spill] sm:$0xff] }
 0x3e1   :  { %6572 = vmatpush1.bf16.msra.mxu0 %v10951_v44  ;;  %6604 = vmatpush1.bf16.msra.mxu1 %v10952_v50  ;;  %v10962_v44 = vld [vmem:[#allocation27_spill] sm:$0xff]  ;;  %v10963_v50 = vld [vmem:[#allocation28_spill] sm:$0xff] }
 0x3e2   :  { %6574 = vmatprep.subr.bf16.mxu0 %v10953_v45  ;;  %6606 = vmatprep.subr.bf16.mxu1 %v10954_v55  ;;  %v10964_v45 = vld [vmem:[#allocation29_spill] sm:$0xff]  ;;  %v10965_v55 = vld [vmem:[#allocation30_spill] sm:$0xff] }
 0x3e5   :  { %6576 = vmatpush1.bf16.msra.mxu0 %v10955_v7  ;;  %6608 = vmatpush1.bf16.msra.mxu1 %v10956_v21  ;;  %v10966_v7 = vld [vmem:[#allocation31_spill] sm:$0xff] }
 0x3e6   :  { %6578 = vmatprep.subr.bf16.mxu0 %v10957_v52  ;;  %6610 = vmatprep.subr.bf16.mxu1 %v10958_v25 }
 0x3e9   :  { %6580 = vmatpush1.bf16.msra.mxu0 %v10959_v63  ;;  %6612 = vmatpush1.bf16.msra.mxu1 %v10960_v53 }
 0x3ea   :  { %6582 = vmatprep.subr.bf16.mxu0 %v10961_v20  ;;  %6614 = vmatprep.subr.bf16.mxu1 %v10962_v44 }
 0x3ed   :  { %6584 = vmatpush1.bf16.msra.mxu0 %v10963_v50  ;;  %6616 = vmatpush1.bf16.msra.mxu1 %v10964_v45 }
 0x3ee   :  { %6618 = vmatprep.subr.bf16.mxu0 %v10965_v55  ;;  %6650 = vmatprep.subr.bf16.mxu1 %v10966_v7 }
 0x4a3   :  { %v1512_v21 = vpop.f32.mrb[6].mxu0  ;;  %v1583_v52 = vpop.f32.mrb[6].mxu1 }
 0x4a4   :  { %v1588_v25 = vadd.f32 %v1512_v21, %v10967_v36  ;;  %v1514_v34 = vpop.f32.mrb[7].mxu0  ;;  %v1585_v63 = vpop.f32.mrb[7].mxu1  ;;  %v1590_v45 = vadd.f32 %v1583_v52, %v9252_v60  ;;  %v10973_v52 = vld [vmem:[#allocation16_spill] sm:$0xff] }
 0x4a5   :  { %v1589_v53 = vadd.f32 %v1514_v34, %v10923_v57  ;;  %v1591_v50 = vadd.f32 %v1585_v63, %v10924_v54 }
 0x4a6   :  { %v5630_v37 = vmul.f32 -1.442695, %v1588_v25 }
 0x4a7   :  { %v5631_v20 = vmul.f32 -1.442695, %v1589_v53  ;;  %v5632_v44 = vmul.f32 -1.442695, %v1591_v50 }
 0x4a8   :  { %8247 = vpow2.f32 %v5630_v37 }
 0x4a9   :  { %8249 = vpow2.f32 %v5631_v20 }
 0x4aa   :  { %8251 = vpow2.f32 %v5632_v44 }
 0x4ab   :  { %8253 = vtanh.f32 %v1590_v45  ;;  %v10971_v45 = vld [vmem:[#allocation14_spill] sm:$0xff] }
 0x4b2   :  { %v8248_v55 = vpop.eup %8247 }
 0x4b3   :  { %v8250_v2 = vpop.eup %8249  ;;  %v1595_v7 = vadd.f32 1.0, %v8248_v55 }
 0x4b4   :  { %v1601_v51 = vadd.f32 1.0, %v8250_v2  ;;  %v8252_v21 = vpop.eup %8251  ;;  %v10969_v2 = vld [vmem:[#allocation12_spill] sm:$0xff] }
 0x4b5   :  { %8255 = vrcp.f32 %v1595_v7  ;;  %v8254_v36 = vpop.eup %8253  ;;  %v1608_v37 = vadd.f32 1.0, %v8252_v21  ;;  %v10972_v7 = vld [vmem:[#allocation15_spill] sm:$0xff]  ;;  %v10974_v21 = vld [vmem:[#allocation17_spill] sm:$0xff] }
 0x4b6   :  { %8257 = vrcp.f32 %v1601_v51  ;;  %v5633_v51 = vld [vmem:[%s10697_s0 + $0x20] sm:$0xff] }
 0x4b7   :  { %8259 = vrcp.f32 %v1608_v37  ;;  %v10978_v37 = vld [vmem:[#allocation21_spill] sm:$0xff] }
 0x4bf   :  { %v8256_v34 = vpop.eup %8255 }
 0x4c0   :  { %v8258_v25 = vpop.eup %8257  ;;  %v1612_v53 = vmul.f32 %v8256_v34, %v8254_v36  ;;  %v10970_v36 = vld [vmem:[#allocation13_spill] sm:$0xff]  ;;  %v10975_v34 = vld [vmem:[#allocation18_spill] sm:$0xff] }
 0x4c1   :  { %v1611_v20 = vmul.f32 %v8258_v25, %v9413_v29  ;;  %v8260_v50 = vpop.eup %8259  ;;  %v10968_v29 = vld [vmem:[#allocation11_spill] sm:$0xff] }
 0x4c2   :  { %v10976_v25 = vld [vmem:[#allocation19_spill] sm:$0xff] }
 0x4c3   :  { %v9494_v63 = vadd.f32 %v1612_v53, %v1611_v20  ;;  %v10977_v53 = vld [vmem:[#allocation20_spill] sm:$0xff]  ;;  %v10979_v20 = vld [vmem:[#allocation22_spill] sm:$0xff] }
 0x4c5   :  { %8261 = vtanh.f32 %v9494_v63 }
 0x4cf   :  { %v8262_v55 = vpop.eup %8261 }
 0x4d0   :  { %v1615_v44 = vmul.f32 %v8262_v55, %v8260_v50  ;;  %v10980_v50 = vld [vmem:[#allocation23_spill] sm:$0xff]  ;;  %v10981_v55 = vld [vmem:[#allocation24_spill] sm:$0xff] }
 0x4d2   :  { %1683 = vmatmul.mubr.f32.vlgmr.msra.gmra.mrb[8].mxu0 %v1615_v44  ;;  %1754 = vmatmul.mubr.f32.vlgmr.msra.gmra.mrb[8].mxu1 %v1615_v44  ;;  %v10982_v44 = vld [vmem:[#allocation25_spill] sm:$0xff] }
 0x4d3   :  { %6620 = vmatpush1.bf16.msra.mxu0 %v8934_v10  ;;  %6652 = vmatpush1.bf16.msra.mxu1 %v8938_v11 }
 0x4d4   :  { %6622 = vmatprep.subr.bf16.mxu0 %v8940_v12  ;;  %6654 = vmatprep.subr.bf16.mxu1 %v8952_v23 }
 0x4d5   :  { %1824 = vmatprep.mubr.f32.mxu0 %v9420_v1  ;;  %1895 = vmatprep.mubr.f32.mxu1 %v9420_v1 }
 0x4d7   :  { %6624 = vmatpush1.bf16.msra.mxu0 %v8972_v33  ;;  %6656 = vmatpush1.bf16.msra.mxu1 %v8976_v38 }
 0x4d8   :  { %6626 = vmatprep.subr.bf16.mxu0 %v8978_v41  ;;  %6658 = vmatprep.subr.bf16.mxu1 %v8990_v47 }
 0x4db   :  { %6628 = vmatpush1.bf16.msra.mxu0 %v9010_v61  ;;  %6660 = vmatpush1.bf16.msra.mxu1 %v9014_v62 }
 0x4dc   :  { %6630 = vmatprep.subr.bf16.mxu0 %v9016_v3  ;;  %6662 = vmatprep.subr.bf16.mxu1 %v9028_v15 }
 0x4df   :  { %6632 = vmatpush1.bf16.msra.mxu0 %v9046_v32  ;;  %6664 = vmatpush1.bf16.msra.mxu1 %v10903_v16 }
 0x4e0   :  { %6634 = vmatprep.subr.bf16.mxu0 %v10904_v19  ;;  %6666 = vmatprep.subr.bf16.mxu1 %v10905_v59 }
 0x4e3   :  { %6636 = vmatpush1.bf16.msra.mxu0 %v10906_v5  ;;  %6668 = vmatpush1.bf16.msra.mxu1 %v10907_v58 }
 0x4e4   :  { %6638 = vmatprep.subr.bf16.mxu0 %v10908_v24  ;;  %6670 = vmatprep.subr.bf16.mxu1 %v10909_v43 }
 0x4e7   :  { %6640 = vmatpush1.bf16.msra.mxu0 %v9118_v14  ;;  %6672 = vmatpush1.bf16.msra.mxu1 %v9122_v0 }
 0x4e8   :  { %6642 = vmatprep.subr.bf16.mxu0 %v9124_v56  ;;  %6674 = vmatprep.subr.bf16.mxu1 %v9136_v30 }
 0x4eb   :  { %6644 = vmatpush1.bf16.msra.mxu0 %v9154_v6  ;;  %6676 = vmatpush1.bf16.msra.mxu1 %v9158_v48 }
 0x4ec   :  { %6646 = vmatprep.subr.bf16.mxu0 %v9160_v28  ;;  %6678 = vmatprep.subr.bf16.mxu1 %v9169_v42 }
 0x4ef   :  { %6648 = vmatpush1.bf16.msra.mxu0 %v9178_v46  ;;  %6680 = vmatpush1.bf16.msra.mxu1 %v9182_v49 }
 0x4f0   :  { %6682 = vmatprep.subr.bf16.mxu0 %v8616_v4  ;;  %6714 = vmatprep.subr.bf16.mxu1 %v8627_v8 }
 0x4f2   :  { %1825 = vmatmul.mubr.f32.vlgmr.msra.gmra.mrb[8].mxu0 %v5633_v51  ;;  %1896 = vmatmul.mubr.f32.vlgmr.msra.gmra.mrb[8].mxu1 %v5633_v51  ;;  %v10983_v51 = vld [vmem:[#allocation26_spill] sm:$0xff] }
 0x4f3   :  { %6684 = vmatpush1.bf16.msra.mxu0 %v8629_v9  ;;  %6716 = vmatpush1.bf16.msra.mxu1 %v8641_v13 }
 0x4f4   :  { %6686 = vmatprep.subr.bf16.mxu0 %v8654_v17  ;;  %6718 = vmatprep.subr.bf16.mxu1 %v8656_v18 }
 0x4f5   :  { %1996 = vmatprep.mubr.f32.mxu0 %v9420_v1  ;;  %2067 = vmatprep.mubr.f32.mxu1 %v9420_v1 }
 0x4f7   :  { %6688 = vmatpush1.bf16.msra.mxu0 %v8668_v22  ;;  %6720 = vmatpush1.bf16.msra.mxu1 %v8681_v26 }
 0x4f8   :  { %6690 = vmatprep.subr.bf16.mxu0 %v8683_v27  ;;  %6722 = vmatprep.subr.bf16.mxu1 %v8694_v31 }
 0x4fb   :  { %6692 = vmatpush1.bf16.msra.mxu0 %v8706_v35  ;;  %6724 = vmatpush1.bf16.msra.mxu1 %v8719_v39 }
 0x4fc   :  { %6694 = vmatprep.subr.bf16.mxu0 %v8721_v40  ;;  %6726 = vmatprep.subr.bf16.mxu1 %v10968_v29 }
 0x4ff   :  { %6696 = vmatpush1.bf16.msra.mxu0 %v10969_v2  ;;  %6728 = vmatpush1.bf16.msra.mxu1 %v10970_v36 }
 0x500   :  { %6698 = vmatprep.subr.bf16.mxu0 %v10971_v45  ;;  %6730 = vmatprep.subr.bf16.mxu1 %v10972_v7  ;;  %v10989_v7 = vld [vmem:[#allocation40_spill] sm:$0xff] }
 0x503   :  { %6700 = vmatpush1.bf16.msra.mxu0 %v10973_v52  ;;  %6732 = vmatpush1.bf16.msra.mxu1 %v10974_v21  ;;  %v10984_v52 = vld [vmem:[#allocation27_spill] sm:$0xff]  ;;  %v10985_v21 = vld [vmem:[#allocation28_spill] sm:$0xff] }
 0x504   :  { %6702 = vmatprep.subr.bf16.mxu0 %v10975_v34  ;;  %6734 = vmatprep.subr.bf16.mxu1 %v10976_v25  ;;  %v10986_v34 = vld [vmem:[#allocation29_spill] sm:$0xff]  ;;  %v10987_v25 = vld [vmem:[#allocation30_spill] sm:$0xff] }
 0x507   :  { %6704 = vmatpush1.bf16.msra.mxu0 %v10977_v53  ;;  %6736 = vmatpush1.bf16.msra.mxu1 %v10978_v37  ;;  %v10988_v53 = vld [vmem:[#allocation31_spill] sm:$0xff] }
 0x508   :  { %6706 = vmatprep.subr.bf16.mxu0 %v10979_v20  ;;  %6738 = vmatprep.subr.bf16.mxu1 %v10980_v50 }
 0x50b   :  { %6708 = vmatpush1.bf16.msra.mxu0 %v10981_v55  ;;  %6740 = vmatpush1.bf16.msra.mxu1 %v10982_v44 }
 0x50c   :  { %6710 = vmatprep.subr.bf16.mxu0 %v10983_v51  ;;  %6742 = vmatprep.subr.bf16.mxu1 %v10984_v52 }
 0x50f   :  { %6712 = vmatpush1.bf16.msra.mxu0 %v10985_v21  ;;  %6744 = vmatpush1.bf16.msra.mxu1 %v10986_v34 }
 0x510   :  { %6746 = vmatprep.subr.bf16.mxu0 %v10987_v25  ;;  %6778 = vmatprep.subr.bf16.mxu1 %v10988_v53 }
 0x5c5   :  { %v1826_v37 = vpop.f32.mrb[8].mxu0  ;;  %v1897_v20 = vpop.f32.mrb[8].mxu1 }
 0x5c6   :  { %v1902_v50 = vadd.f32 %v1826_v37, %v10989_v7  ;;  %v1828_v45 = vpop.f32.mrb[9].mxu0  ;;  %v1899_v55 = vpop.f32.mrb[9].mxu1  ;;  %v1904_v34 = vadd.f32 %v1897_v20, %v9252_v60  ;;  %v10995_v20 = vld [vmem:[#allocation16_spill] sm:$0xff] }
 0x5c7   :  { %v1903_v44 = vadd.f32 %v1828_v45, %v10923_v57  ;;  %v1905_v21 = vadd.f32 %v1899_v55, %v10924_v54 }
 0x5c8   :  { %v5634_v36 = vmul.f32 -1.442695, %v1902_v50 }
 0x5c9   :  { %v5635_v51 = vmul.f32 -1.442695, %v1903_v44  ;;  %v5636_v52 = vmul.f32 -1.442695, %v1905_v21 }
 0x5ca   :  { %8263 = vpow2.f32 %v5634_v36 }
 0x5cb   :  { %8265 = vpow2.f32 %v5635_v51 }
 0x5cc   :  { %8267 = vpow2.f32 %v5636_v52 }
 0x5cd   :  { %8269 = vtanh.f32 %v1904_v34  ;;  %v10993_v34 = vld [vmem:[#allocation14_spill] sm:$0xff] }
 0x5d4   :  { %v8264_v25 = vpop.eup %8263 }
 0x5d5   :  { %v8266_v2 = vpop.eup %8265  ;;  %v1909_v53 = vadd.f32 1.0, %v8264_v25 }
 0x5d6   :  { %v1915_v29 = vadd.f32 1.0, %v8266_v2  ;;  %v8268_v37 = vpop.eup %8267  ;;  %v10991_v2 = vld [vmem:[#allocation12_spill] sm:$0xff] }
 0x5d7   :  { %8271 = vrcp.f32 %v1909_v53  ;;  %v8270_v7 = vpop.eup %8269  ;;  %v1922_v36 = vadd.f32 1.0, %v8268_v37  ;;  %v10994_v53 = vld [vmem:[#allocation15_spill] sm:$0xff]  ;;  %v10996_v37 = vld [vmem:[#allocation17_spill] sm:$0xff] }
 0x5d8   :  { %8273 = vrcp.f32 %v1915_v29  ;;  %v10990_v29 = vld [vmem:[#allocation11_spill] sm:$0xff] }
 0x5d9   :  { %8275 = vrcp.f32 %v1922_v36  ;;  %v11000_v36 = vld [vmem:[#allocation21_spill] sm:$0xff] }
 0x5e1   :  { %v8272_v45 = vpop.eup %8271 }
 0x5e2   :  { %v8274_v50 = vpop.eup %8273  ;;  %v1926_v44 = vmul.f32 %v8272_v45, %v8270_v7  ;;  %v10992_v7 = vld [vmem:[#allocation13_spill] sm:$0xff]  ;;  %v10997_v45 = vld [vmem:[#allocation18_spill] sm:$0xff] }
 0x5e3   :  { %v1925_v51 = vmul.f32 %v8274_v50, %v9494_v63  ;;  %v8276_v21 = vpop.eup %8275  ;;  %v5637_v63 = vld [vmem:[%s10697_s0 + $0x28] sm:$0xff]  ;;  %v10998_v50 = vld [vmem:[#allocation19_spill] sm:$0xff] }
 0x5e5   :  { %v9573_v55 = vadd.f32 %v1926_v44, %v1925_v51  ;;  %v10999_v44 = vld [vmem:[#allocation20_spill] sm:$0xff]  ;;  %v11001_v51 = vld [vmem:[#allocation22_spill] sm:$0xff] }
 0x5e7   :  { %8277 = vtanh.f32 %v9573_v55 }
 0x5f1   :  { %v8278_v25 = vpop.eup %8277 }
 0x5f2   :  { %v1929_v52 = vmul.f32 %v8278_v25, %v8276_v21  ;;  %v11002_v21 = vld [vmem:[#allocation23_spill] sm:$0xff]  ;;  %v11003_v25 = vld [vmem:[#allocation24_spill] sm:$0xff] }
 0x5f4   :  { %1997 = vmatmul.mubr.f32.vlgmr.msra.gmra.mrb[10].mxu0 %v1929_v52  ;;  %2068 = vmatmul.mubr.f32.vlgmr.msra.gmra.mrb[10].mxu1 %v1929_v52  ;;  %v11004_v52 = vld [vmem:[#allocation25_spill] sm:$0xff] }
 0x5f5   :  { %6748 = vmatpush1.bf16.msra.mxu0 %v8934_v10  ;;  %6780 = vmatpush1.bf16.msra.mxu1 %v8938_v11 }
 0x5f6   :  { %6750 = vmatprep.subr.bf16.mxu0 %v8940_v12  ;;  %6782 = vmatprep.subr.bf16.mxu1 %v8952_v23 }
 0x5f7   :  { %2138 = vmatprep.mubr.f32.mxu0 %v9420_v1  ;;  %2209 = vmatprep.mubr.f32.mxu1 %v9420_v1 }
 0x5f9   :  { %6752 = vmatpush1.bf16.msra.mxu0 %v8972_v33  ;;  %6784 = vmatpush1.bf16.msra.mxu1 %v8976_v38 }
 0x5fa   :  { %6754 = vmatprep.subr.bf16.mxu0 %v8978_v41  ;;  %6786 = vmatprep.subr.bf16.mxu1 %v8990_v47 }
 0x5fd   :  { %6756 = vmatpush1.bf16.msra.mxu0 %v9010_v61  ;;  %6788 = vmatpush1.bf16.msra.mxu1 %v9014_v62 }
 0x5fe   :  { %6758 = vmatprep.subr.bf16.mxu0 %v9016_v3  ;;  %6790 = vmatprep.subr.bf16.mxu1 %v9028_v15 }
 0x601   :  { %6760 = vmatpush1.bf16.msra.mxu0 %v9046_v32  ;;  %6792 = vmatpush1.bf16.msra.mxu1 %v10903_v16 }
 0x602   :  { %6762 = vmatprep.subr.bf16.mxu0 %v10904_v19  ;;  %6794 = vmatprep.subr.bf16.mxu1 %v10905_v59 }
 0x605   :  { %6764 = vmatpush1.bf16.msra.mxu0 %v10906_v5  ;;  %6796 = vmatpush1.bf16.msra.mxu1 %v10907_v58 }
 0x606   :  { %6766 = vmatprep.subr.bf16.mxu0 %v10908_v24  ;;  %6798 = vmatprep.subr.bf16.mxu1 %v10909_v43 }
 0x609   :  { %6768 = vmatpush1.bf16.msra.mxu0 %v9118_v14  ;;  %6800 = vmatpush1.bf16.msra.mxu1 %v9122_v0 }
 0x60a   :  { %6770 = vmatprep.subr.bf16.mxu0 %v9124_v56  ;;  %6802 = vmatprep.subr.bf16.mxu1 %v9136_v30 }
 0x60d   :  { %6772 = vmatpush1.bf16.msra.mxu0 %v9154_v6  ;;  %6804 = vmatpush1.bf16.msra.mxu1 %v9158_v48 }
 0x60e   :  { %6774 = vmatprep.subr.bf16.mxu0 %v9160_v28  ;;  %6806 = vmatprep.subr.bf16.mxu1 %v9169_v42 }
 0x611   :  { %6776 = vmatpush1.bf16.msra.mxu0 %v9178_v46  ;;  %6808 = vmatpush1.bf16.msra.mxu1 %v9182_v49 }
 0x612   :  { %6810 = vmatprep.subr.bf16.mxu0 %v8616_v4  ;;  %6842 = vmatprep.subr.bf16.mxu1 %v8627_v8 }
 0x614   :  { %2139 = vmatmul.mubr.f32.vlgmr.msra.gmra.mrb[10].mxu0 %v5637_v63  ;;  %2210 = vmatmul.mubr.f32.vlgmr.msra.gmra.mrb[10].mxu1 %v5637_v63  ;;  %v11005_v63 = vld [vmem:[#allocation26_spill] sm:$0xff] }
 0x615   :  { %6812 = vmatpush1.bf16.msra.mxu0 %v8629_v9  ;;  %6844 = vmatpush1.bf16.msra.mxu1 %v8641_v13 }
 0x616   :  { %6814 = vmatprep.subr.bf16.mxu0 %v8654_v17  ;;  %6846 = vmatprep.subr.bf16.mxu1 %v8656_v18 }
 0x617   :  { %2310 = vmatprep.mubr.f32.mxu0 %v9420_v1  ;;  %2381 = vmatprep.mubr.f32.mxu1 %v9420_v1 }
 0x619   :  { %6816 = vmatpush1.bf16.msra.mxu0 %v8668_v22  ;;  %6848 = vmatpush1.bf16.msra.mxu1 %v8681_v26 }
 0x61a   :  { %6818 = vmatprep.subr.bf16.mxu0 %v8683_v27  ;;  %6850 = vmatprep.subr.bf16.mxu1 %v8694_v31 }
 0x61d   :  { %6820 = vmatpush1.bf16.msra.mxu0 %v8706_v35  ;;  %6852 = vmatpush1.bf16.msra.mxu1 %v8719_v39 }
 0x61e   :  { %6822 = vmatprep.subr.bf16.mxu0 %v8721_v40  ;;  %6854 = vmatprep.subr.bf16.mxu1 %v10990_v29 }
 0x621   :  { %6824 = vmatpush1.bf16.msra.mxu0 %v10991_v2  ;;  %6856 = vmatpush1.bf16.msra.mxu1 %v10992_v7 }
 0x622   :  { %6826 = vmatprep.subr.bf16.mxu0 %v10993_v34  ;;  %6858 = vmatprep.subr.bf16.mxu1 %v10994_v53  ;;  %v11011_v53 = vld [vmem:[#allocation40_spill] sm:$0xff] }
 0x625   :  { %6828 = vmatpush1.bf16.msra.mxu0 %v10995_v20  ;;  %6860 = vmatpush1.bf16.msra.mxu1 %v10996_v37  ;;  %v11006_v20 = vld [vmem:[#allocation27_spill] sm:$0xff]  ;;  %v11007_v37 = vld [vmem:[#allocation28_spill] sm:$0xff] }
 0x626   :  { %6830 = vmatprep.subr.bf16.mxu0 %v10997_v45  ;;  %6862 = vmatprep.subr.bf16.mxu1 %v10998_v50  ;;  %v11008_v45 = vld [vmem:[#allocation29_spill] sm:$0xff]  ;;  %v11009_v50 = vld [vmem:[#allocation30_spill] sm:$0xff] }
 0x629   :  { %6832 = vmatpush1.bf16.msra.mxu0 %v10999_v44  ;;  %6864 = vmatpush1.bf16.msra.mxu1 %v11000_v36  ;;  %v11010_v44 = vld [vmem:[#allocation31_spill] sm:$0xff] }
 0x62a   :  { %6834 = vmatprep.subr.bf16.mxu0 %v11001_v51  ;;  %6866 = vmatprep.subr.bf16.mxu1 %v11002_v21 }
 0x62d   :  { %6836 = vmatpush1.bf16.msra.mxu0 %v11003_v25  ;;  %6868 = vmatpush1.bf16.msra.mxu1 %v11004_v52 }
 0x62e   :  { %6838 = vmatprep.subr.bf16.mxu0 %v11005_v63  ;;  %6870 = vmatprep.subr.bf16.mxu1 %v11006_v20 }
 0x631   :  { %6840 = vmatpush1.bf16.msra.mxu0 %v11007_v37  ;;  %6872 = vmatpush1.bf16.msra.mxu1 %v11008_v45 }
 0x632   :  { %6874 = vmatprep.subr.bf16.mxu0 %v11009_v50  ;;  %6906 = vmatprep.subr.bf16.mxu1 %v11010_v44 }
 0x6e7   :  { %v2140_v36 = vpop.f32.mrb[10].mxu0  ;;  %v2211_v51 = vpop.f32.mrb[10].mxu1 }
 0x6e8   :  { %v2216_v21 = vadd.f32 %v2140_v36, %v11011_v53  ;;  %v2142_v34 = vpop.f32.mrb[11].mxu0  ;;  %v2213_v25 = vpop.f32.mrb[11].mxu1  ;;  %v2218_v45 = vadd.f32 %v2211_v51, %v9252_v60  ;;  %v11030_v51 = vld [vmem:[#allocation29_spill] sm:$0xff] }
 0x6e9   :  { %v2217_v52 = vadd.f32 %v2142_v34, %v10923_v57  ;;  %v2219_v37 = vadd.f32 %v2213_v25, %v10924_v54 }
 0x6ea   :  { %v5638_v7 = vmul.f32 -1.442695, %v2216_v21 }
 0x6eb   :  { %v5639_v63 = vmul.f32 -1.442695, %v2217_v52  ;;  %v5640_v20 = vmul.f32 -1.442695, %v2219_v37 }
 0x6ec   :  { %8279 = vpow2.f32 %v5638_v7 }
 0x6ed   :  { %8281 = vpow2.f32 %v5639_v63 }
 0x6ee   :  { %8283 = vpow2.f32 %v5640_v20 }
 0x6ef   :  { %8285 = vtanh.f32 %v2218_v45  ;;  %v11028_v45 = vld [vmem:[#allocation27_spill] sm:$0xff] }
 0x6f6   :  { %v8280_v50 = vpop.eup %8279 }
 0x6f7   :  { %v8282_v2 = vpop.eup %8281  ;;  %v2223_v44 = vadd.f32 1.0, %v8280_v50 }
 0x6f8   :  { %v2229_v29 = vadd.f32 1.0, %v8282_v2  ;;  %v8284_v36 = vpop.eup %8283  ;;  %v11026_v2 = vld [vmem:[#allocation25_spill] sm:$0xff] }
 0x6f9   :  { %8287 = vrcp.f32 %v2223_v44  ;;  %v8286_v53 = vpop.eup %8285  ;;  %v2236_v7 = vadd.f32 1.0, %v8284_v36  ;;  %v11029_v44 = vld [vmem:[#allocation28_spill] sm:$0xff]  ;;  %v11031_v36 = vld [vmem:[#allocation30_spill] sm:$0xff] }
 0x6fa   :  { %8289 = vrcp.f32 %v2229_v29  ;;  %v11025_v29 = vld [vmem:[#allocation24_spill] sm:$0xff] }
 0x6fb   :  { %8291 = vrcp.f32 %v2236_v7  ;;  %v11033_v7 = vld [vmem:[#allocation40_spill] sm:$0xff] }
 0x703   :  { %v8288_v34 = vpop.eup %8287 }
 0x704   :  { %v8290_v21 = vpop.eup %8289  ;;  %v2240_v52 = vmul.f32 %v8288_v34, %v8286_v53  ;;  %v11027_v53 = vld [vmem:[#allocation26_spill] sm:$0xff]  ;;  %v11032_v34 = vld [vmem:[#allocation31_spill] sm:$0xff] }
 0x705   :  { %v2239_v63 = vmul.f32 %v8290_v21, %v9573_v55  ;;  %v8292_v37 = vpop.eup %8291  ;;  %v5641_v55 = vld [vmem:[%s10697_s0 + $0x30] sm:$0xff] }
 0x707   :  { %v9652_v25 = vadd.f32 %v2240_v52, %v2239_v63 }
 0x709   :  { %8293 = vtanh.f32 %v9652_v25 }
 0x713   :  { %v8294_v50 = vpop.eup %8293 }
 0x714   :  { %v2243_v20 = vmul.f32 %v8294_v50, %v8292_v37 }
 0x716   :  { %2311 = vmatmul.mubr.f32.vlgmr.msra.gmra.mrb[12].mxu0 %v2243_v20  ;;  %2382 = vmatmul.mubr.f32.vlgmr.msra.gmra.mrb[12].mxu1 %v2243_v20 }
 0x717   :  { %6876 = vmatpush1.bf16.msra.mxu0 %v8934_v10  ;;  %6908 = vmatpush1.bf16.msra.mxu1 %v8938_v11 }
 0x718   :  { %6878 = vmatprep.subr.bf16.mxu0 %v8940_v12  ;;  %6910 = vmatprep.subr.bf16.mxu1 %v8952_v23 }
 0x719   :  { %2452 = vmatprep.mubr.f32.mxu0 %v9420_v1  ;;  %2523 = vmatprep.mubr.f32.mxu1 %v9420_v1 }
 0x71b   :  { %6880 = vmatpush1.bf16.msra.mxu0 %v8972_v33  ;;  %6912 = vmatpush1.bf16.msra.mxu1 %v8976_v38 }
 0x71c   :  { %6882 = vmatprep.subr.bf16.mxu0 %v8978_v41  ;;  %6914 = vmatprep.subr.bf16.mxu1 %v8990_v47 }
 0x71f   :  { %6884 = vmatpush1.bf16.msra.mxu0 %v9010_v61  ;;  %6916 = vmatpush1.bf16.msra.mxu1 %v9014_v62 }
 0x720   :  { %6886 = vmatprep.subr.bf16.mxu0 %v9016_v3  ;;  %6918 = vmatprep.subr.bf16.mxu1 %v9028_v15 }
 0x723   :  { %6888 = vmatpush1.bf16.msra.mxu0 %v9046_v32  ;;  %6920 = vmatpush1.bf16.msra.mxu1 %v10903_v16 }
 0x724   :  { %6890 = vmatprep.subr.bf16.mxu0 %v10904_v19  ;;  %6922 = vmatprep.subr.bf16.mxu1 %v10905_v59 }
 0x727   :  { %6892 = vmatpush1.bf16.msra.mxu0 %v10906_v5  ;;  %6924 = vmatpush1.bf16.msra.mxu1 %v10907_v58 }
 0x728   :  { %6894 = vmatprep.subr.bf16.mxu0 %v10908_v24  ;;  %6926 = vmatprep.subr.bf16.mxu1 %v10909_v43 }
 0x72b   :  { %6896 = vmatpush1.bf16.msra.mxu0 %v9118_v14  ;;  %6928 = vmatpush1.bf16.msra.mxu1 %v9122_v0 }
 0x72c   :  { %6898 = vmatprep.subr.bf16.mxu0 %v9124_v56  ;;  %6930 = vmatprep.subr.bf16.mxu1 %v9136_v30 }
 0x72f   :  { %6900 = vmatpush1.bf16.msra.mxu0 %v9154_v6  ;;  %6932 = vmatpush1.bf16.msra.mxu1 %v9158_v48 }
 0x730   :  { %6902 = vmatprep.subr.bf16.mxu0 %v9160_v28  ;;  %6934 = vmatprep.subr.bf16.mxu1 %v9169_v42 }
 0x733   :  { %6904 = vmatpush1.bf16.msra.mxu0 %v9178_v46  ;;  %6936 = vmatpush1.bf16.msra.mxu1 %v9182_v49 }
 0x734   :  { %6938 = vmatprep.subr.bf16.mxu0 %v8616_v4  ;;  %6970 = vmatprep.subr.bf16.mxu1 %v8627_v8  ;;  %v11012_v4 = vld [vmem:[#allocation11_spill] sm:$0xff]  ;;  %v11013_v8 = vld [vmem:[#allocation12_spill] sm:$0xff] }
 0x736   :  { %2453 = vmatmul.mubr.f32.vlgmr.msra.gmra.mrb[12].mxu0 %v5641_v55  ;;  %2524 = vmatmul.mubr.f32.vlgmr.msra.gmra.mrb[12].mxu1 %v5641_v55 }
 0x737   :  { %6940 = vmatpush1.bf16.msra.mxu0 %v8629_v9  ;;  %6972 = vmatpush1.bf16.msra.mxu1 %v8641_v13  ;;  %v11014_v9 = vld [vmem:[#allocation13_spill] sm:$0xff]  ;;  %v11015_v13 = vld [vmem:[#allocation14_spill] sm:$0xff] }
 0x738   :  { %6942 = vmatprep.subr.bf16.mxu0 %v8654_v17  ;;  %6974 = vmatprep.subr.bf16.mxu1 %v8656_v18  ;;  %v11016_v17 = vld [vmem:[#allocation15_spill] sm:$0xff]  ;;  %v11017_v18 = vld [vmem:[#allocation16_spill] sm:$0xff] }
 0x739   :  { %2624 = vmatprep.mubr.f32.mxu0 %v9420_v1  ;;  %2695 = vmatprep.mubr.f32.mxu1 %v9420_v1 }
 0x73b   :  { %6944 = vmatpush1.bf16.msra.mxu0 %v8668_v22  ;;  %6976 = vmatpush1.bf16.msra.mxu1 %v8681_v26  ;;  %v11018_v22 = vld [vmem:[#allocation17_spill] sm:$0xff]  ;;  %v11019_v26 = vld [vmem:[#allocation18_spill] sm:$0xff] }
 0x73c   :  { %6946 = vmatprep.subr.bf16.mxu0 %v8683_v27  ;;  %6978 = vmatprep.subr.bf16.mxu1 %v8694_v31  ;;  %v11020_v27 = vld [vmem:[#allocation19_spill] sm:$0xff]  ;;  %v11021_v31 = vld [vmem:[#allocation20_spill] sm:$0xff] }
 0x73f   :  { %6948 = vmatpush1.bf16.msra.mxu0 %v8706_v35  ;;  %6980 = vmatpush1.bf16.msra.mxu1 %v8719_v39  ;;  %v11022_v35 = vld [vmem:[#allocation21_spill] sm:$0xff]  ;;  %v11023_v39 = vld [vmem:[#allocation22_spill] sm:$0xff] }
 0x740   :  { %6950 = vmatprep.subr.bf16.mxu0 %v8721_v40  ;;  %6982 = vmatprep.subr.bf16.mxu1 %v11012_v4  ;;  %v11024_v40 = vld [vmem:[#allocation23_spill] sm:$0xff] }
 0x743   :  { %6952 = vmatpush1.bf16.msra.mxu0 %v11013_v8  ;;  %6984 = vmatpush1.bf16.msra.mxu1 %v11014_v9 }
 0x744   :  { %6954 = vmatprep.subr.bf16.mxu0 %v11015_v13  ;;  %6986 = vmatprep.subr.bf16.mxu1 %v11016_v17 }
 0x747   :  { %6956 = vmatpush1.bf16.msra.mxu0 %v11017_v18  ;;  %6988 = vmatpush1.bf16.msra.mxu1 %v11018_v22 }
 0x748   :  { %6958 = vmatprep.subr.bf16.mxu0 %v11019_v26  ;;  %6990 = vmatprep.subr.bf16.mxu1 %v11020_v27 }
 0x74b   :  { %6960 = vmatpush1.bf16.msra.mxu0 %v11021_v31  ;;  %6992 = vmatpush1.bf16.msra.mxu1 %v11022_v35 }
 0x74c   :  { %6962 = vmatprep.subr.bf16.mxu0 %v11023_v39  ;;  %6994 = vmatprep.subr.bf16.mxu1 %v11024_v40 }
 0x74f   :  { %6964 = vmatpush1.bf16.msra.mxu0 %v11025_v29  ;;  %6996 = vmatpush1.bf16.msra.mxu1 %v11026_v2 }
 0x750   :  { %6966 = vmatprep.subr.bf16.mxu0 %v11027_v53  ;;  %6998 = vmatprep.subr.bf16.mxu1 %v11028_v45 }
 0x753   :  { %6968 = vmatpush1.bf16.msra.mxu0 %v11029_v44  ;;  %7000 = vmatpush1.bf16.msra.mxu1 %v11030_v51 }
 0x754   :  { %7002 = vmatprep.subr.bf16.mxu0 %v11031_v36  ;;  %7034 = vmatprep.subr.bf16.mxu1 %v11032_v34 }
 0x809   :  { %v2454_v21 = vpop.f32.mrb[12].mxu0  ;;  %v2525_v52 = vpop.f32.mrb[12].mxu1 }
 0x80a   :  { %v2530_v63 = vadd.f32 %v2454_v21, %v11033_v7  ;;  %v2456_v37 = vpop.f32.mrb[13].mxu0  ;;  %v2527_v50 = vpop.f32.mrb[13].mxu1  ;;  %v2532_v13 = vadd.f32 %v2525_v52, %v9252_v60  ;;  %v275_v21 = vld [vmem:[#allocation5 + $0x90] sm:$0xff] }
 0x80b   :  { %v2531_v20 = vadd.f32 %v2456_v37, %v10923_v57  ;;  %v2533_v8 = vadd.f32 %v2527_v50, %v10924_v54  ;;  %v279_v52 = vld [vmem:[#allocation5 + $0xb0] sm:$0xff]  ;;  %v282_v37 = vld [vmem:[#allocation5 + $0xc8] sm:$0xff] }
 0x80c   :  { %v5642_v55 = vmul.f32 -1.442695, %v2530_v63  ;;  %v9802_v63 = vpack.c.bf16 %v279_v52, %v275_v21  ;;  %v286_v50 = vld [vmem:[#allocation5 + $0xe8] sm:$0xff]  ;;  %v311_v52 = vld [vmem:[#allocation5 + $0x1b0] sm:$0xff] }
 0x80d   :  { %v5643_v4 = vmul.f32 -1.442695, %v2531_v20  ;;  %v5644_v9 = vmul.f32 -1.442695, %v2533_v8  ;;  %v284_v20 = vld [vmem:[#allocation5 + $0xd8] sm:$0xff]  ;;  %v281_v8 = vld [vmem:[#allocation5 + $0xc0] sm:$0xff] }
 0x80e   :  { %8295 = vpow2.f32 %v5642_v55  ;;  %v9807_v55 = vpack.c.bf16 %v286_v50, %v282_v37  ;;  %v314_v37 = vld [vmem:[#allocation5 + $0x1c8] sm:$0xff] }
 0x80f   :  { %8297 = vpow2.f32 %v5643_v4  ;;  %v288_v4 = vld [vmem:[#allocation5 + $0xf8] sm:$0xff]  ;;  %v318_v50 = vld [vmem:[#allocation5 + $0x1e8] sm:$0xff] }
 0x810   :  { %8299 = vpow2.f32 %v5644_v9  ;;  %11041 = vst [vmem:[#allocation41_spill] sm:$0xff] %v9807_v55  ;;  %v285_v9 = vld [vmem:[#allocation5 + $0xe0] sm:$0xff] }
 0x811   :  { %8301 = vtanh.f32 %v2532_v13  ;;  %v9809_v13 = vpack.c.bf16 %v288_v4, %v284_v20  ;;  %v9853_v4 = vpack.c.bf16 %v318_v50, %v314_v37 }
 0x813   :  { %11049 = vst [vmem:[#allocation17_spill] sm:$0xff] %v9853_v4 }
 0x818   :  { %v8296_v17 = vpop.eup %8295 }
 0x819   :  { %v8298_v18 = vpop.eup %8297  ;;  %v2537_v22 = vadd.f32 1.0, %v8296_v17  ;;  %v9811_v17 = vpack.c.bf16 %v285_v9, %v281_v8  ;;  %v316_v8 = vld [vmem:[#allocation5 + $0x1d8] sm:$0xff] }
 0x81a   :  { %v2543_v26 = vadd.f32 1.0, %v8298_v18  ;;  %v8300_v27 = vpop.eup %8299  ;;  %v283_v18 = vld [vmem:[#allocation5 + $0xd0] sm:$0xff]  ;;  %v320_v9 = vld [vmem:[#allocation5 + $0x1f8] sm:$0xff] }
 0x81b   :  { %8303 = vrcp.f32 %v2537_v22  ;;  %v8302_v31 = vpop.eup %8301  ;;  %v2550_v29 = vadd.f32 1.0, %v8300_v27  ;;  %11042 = vst [vmem:[#allocation42_spill] sm:$0xff] %v9811_v17  ;;  %v287_v22 = vld [vmem:[#allocation5 + $0xf0] sm:$0xff]  ;;  %v290_v27 = vld [vmem:[#allocation5 + $0x108] sm:$0xff] }
 0x81c   :  { %8305 = vrcp.f32 %v2543_v26  ;;  %v9814_v26 = vpack.c.bf16 %v287_v22, %v283_v18  ;;  %v313_v18 = vld [vmem:[#allocation5 + $0x1c0] sm:$0xff]  ;;  %v9855_v22 = vpack.c.bf16 %v320_v9, %v316_v8 }
 0x81d   :  { %8307 = vrcp.f32 %v2550_v29  ;;  %v289_v29 = vld [vmem:[#allocation5 + $0x100] sm:$0xff] }
 0x81e   :  { %11050 = vst [vmem:[#allocation18_spill] sm:$0xff] %v9855_v22 }
 0x825   :  { %v8304_v35 = vpop.eup %8303 }
 0x826   :  { %v8306_v39 = vpop.eup %8305  ;;  %v2554_v40 = vmul.f32 %v8304_v35, %v8302_v31  ;;  %v294_v31 = vld [vmem:[#allocation5 + $0x128] sm:$0xff]  ;;  %v292_v35 = vld [vmem:[#allocation5 + $0x118] sm:$0xff] }
 0x827   :  { %v2553_v2 = vmul.f32 %v8306_v39, %v9652_v25  ;;  %v8308_v45 = vpop.eup %8307  ;;  %v277_v25 = vld [vmem:[#allocation5 + $0xa0] sm:$0xff]  ;;  %v9819_v39 = vpack.c.bf16 %v294_v31, %v290_v27  ;;  %v315_v31 = vld [vmem:[#allocation5 + $0x1d0] sm:$0xff] }
 0x828   :  { %v317_v27 = vld [vmem:[#allocation5 + $0x1e0] sm:$0xff] }
 0x829   :  { %v9731_v53 = vadd.f32 %v2554_v40, %v2553_v2  ;;  %11043 = vst [vmem:[#allocation11_spill] sm:$0xff] %v9819_v39  ;;  %v296_v40 = vld [vmem:[#allocation5 + $0x138] sm:$0xff]  ;;  %v293_v2 = vld [vmem:[#allocation5 + $0x120] sm:$0xff] }
 0x82b   :  { %8309 = vtanh.f32 %v9731_v53 }
 0x835   :  { %v8310_v44 = vpop.eup %8309 }
 0x836   :  { %v2557_v51 = vmul.f32 %v8310_v44, %v8308_v45  ;;  %v9821_v45 = vpack.c.bf16 %v296_v40, %v292_v35  ;;  %v9823_v44 = vpack.c.bf16 %v293_v2, %v289_v29  ;;  %v319_v35 = vld [vmem:[#allocation5 + $0x1f0] sm:$0xff]  ;;  %v9858_v40 = vpack.c.bf16 %v317_v27, %v313_v18  ;;  %v194_v29 = vld [vmem:[#allocation2 + $0x8] sm:$0xff] }
 0x837   :  { %v198_v2 = vld [vmem:[#allocation2 + $0x28] sm:$0xff] }
 0x838   :  { %2625 = vmatmul.mubr.f32.vlgmr.msra.gmra.mrb[14].mxu0 %v2557_v51  ;;  %2696 = vmatmul.mubr.f32.vlgmr.msra.gmra.mrb[14].mxu1 %v2557_v51  ;;  %11044 = vst [vmem:[#allocation12_spill] sm:$0xff] %v9823_v44  ;;  %v291_v51 = vld [vmem:[#allocation5 + $0x110] sm:$0xff]  ;;  %11051 = vst [vmem:[#allocation19_spill] sm:$0xff] %v9858_v40 }
 0x839   :  { %7004 = vmatpush1.bf16.msra.mxu0 %v8934_v10  ;;  %7036 = vmatpush1.bf16.msra.mxu1 %v8938_v11  ;;  %v258_v10 = vld [vmem:[#allocation5 + $0x8] sm:$0xff] }
 0x83a   :  { %7006 = vmatprep.subr.bf16.mxu0 %v8940_v12  ;;  %7038 = vmatprep.subr.bf16.mxu1 %v8952_v23  ;;  %v262_v11 = vld [vmem:[#allocation5 + $0x28] sm:$0xff]  ;;  %v260_v12 = vld [vmem:[#allocation5 + $0x18] sm:$0xff] }
 0x83b   :  { %2766 = vmatprep.mubr.f32.mxu0 %v9420_v1  ;;  %2837 = vmatprep.mubr.f32.mxu1 %v9420_v1  ;;  %v9771_v23 = vpack.c.bf16 %v262_v11, %v258_v10  ;;  %v298_v11 = vld [vmem:[#allocation5 + $0x148] sm:$0xff] }
 0x83d   :  { %7008 = vmatpush1.bf16.msra.mxu0 %v8972_v33  ;;  %7040 = vmatpush1.bf16.msra.mxu1 %v8976_v38  ;;  %11034 = vst [vmem:[#allocation32_spill] sm:$0xff] %v9771_v23  ;;  %v264_v33 = vld [vmem:[#allocation5 + $0x38] sm:$0xff]  ;;  %v257_v38 = vld [vmem:[#allocation5] sm:$0xff] }
 0x83e   :  { %7010 = vmatprep.subr.bf16.mxu0 %v8978_v41  ;;  %7042 = vmatprep.subr.bf16.mxu1 %v8990_v47  ;;  %v261_v41 = vld [vmem:[#allocation5 + $0x20] sm:$0xff]  ;;  %v9773_v47 = vpack.c.bf16 %v264_v33, %v260_v12  ;;  %v302_v12 = vld [vmem:[#allocation5 + $0x168] sm:$0xff]  ;;  %v300_v33 = vld [vmem:[#allocation5 + $0x158] sm:$0xff] }
 0x840   :  { %11035 = vst [vmem:[#allocation33_spill] sm:$0xff] %v9773_v47 }
 0x841   :  { %7012 = vmatpush1.bf16.msra.mxu0 %v9010_v61  ;;  %7044 = vmatpush1.bf16.msra.mxu1 %v9014_v62  ;;  %v9775_v61 = vpack.c.bf16 %v261_v41, %v257_v38  ;;  %v259_v62 = vld [vmem:[#allocation5 + $0x10] sm:$0xff]  ;;  %v9831_v38 = vpack.c.bf16 %v302_v12, %v298_v11  ;;  %v304_v41 = vld [vmem:[#allocation5 + $0x178] sm:$0xff]  ;;  %v9864_v11 = vpack.c.bf16 %v198_v2, %v194_v29 }
 0x842   :  { %7014 = vmatprep.subr.bf16.mxu0 %v9016_v3  ;;  %7046 = vmatprep.subr.bf16.mxu1 %v9028_v15  ;;  %v263_v3 = vld [vmem:[#allocation5 + $0x30] sm:$0xff]  ;;  %v200_v12 = vld [vmem:[#allocation2 + $0x38] sm:$0xff] }
 0x843   :  { %11036 = vst [vmem:[#allocation34_spill] sm:$0xff] %v9775_v61  ;;  %v9778_v15 = vpack.c.bf16 %v263_v3, %v259_v62  ;;  %11045 = vst [vmem:[#allocation13_spill] sm:$0xff] %v9831_v38  ;;  %v297_v62 = vld [vmem:[#allocation5 + $0x140] sm:$0xff]  ;;  %v195_v29 = vld [vmem:[#allocation2 + $0x10] sm:$0xff] }
 0x844   :  { %v301_v3 = vld [vmem:[#allocation5 + $0x160] sm:$0xff]  ;;  %11053 = vst [vmem:[#allocation21_spill] sm:$0xff] %v9864_v11  ;;  %v199_v2 = vld [vmem:[#allocation2 + $0x30] sm:$0xff] }
 0x845   :  { %7016 = vmatpush1.bf16.msra.mxu0 %v9046_v32  ;;  %7048 = vmatpush1.bf16.msra.mxu1 %v10903_v16  ;;  %v266_v32 = vld [vmem:[#allocation5 + $0x48] sm:$0xff]  ;;  %v271_v16 = vld [vmem:[#allocation5 + $0x70] sm:$0xff] }
 0x846   :  { %7018 = vmatprep.subr.bf16.mxu0 %v10904_v19  ;;  %7050 = vmatprep.subr.bf16.mxu1 %v10905_v59  ;;  %v274_v59 = vld [vmem:[#allocation5 + $0x88] sm:$0xff] }
 0x849   :  { %7020 = vmatpush1.bf16.msra.mxu0 %v10906_v5  ;;  %7052 = vmatpush1.bf16.msra.mxu1 %v10907_v58  ;;  %v278_v5 = vld [vmem:[#allocation5 + $0xa8] sm:$0xff]  ;;  %v276_v58 = vld [vmem:[#allocation5 + $0x98] sm:$0xff] }
 0x84a   :  { %7022 = vmatprep.subr.bf16.mxu0 %v10908_v24  ;;  %7054 = vmatprep.subr.bf16.mxu1 %v10909_v43  ;;  %v9795_v24 = vpack.c.bf16 %v278_v5, %v274_v59  ;;  %v280_v43 = vld [vmem:[#allocation5 + $0xb8] sm:$0xff] }
 0x84b   :  { %v9797_v36 = vpack.c.bf16 %v280_v43, %v276_v58  ;;  %v312_v59 = vld [vmem:[#allocation5 + $0x1b8] sm:$0xff]  ;;  %v305_v43 = vld [vmem:[#allocation5 + $0x180] sm:$0xff] }
 0x84c   :  { %11039 = vst [vmem:[#allocation37_spill] sm:$0xff] %v9795_v24 }
 0x84d   :  { %7024 = vmatpush1.bf16.msra.mxu0 %v9118_v14  ;;  %7056 = vmatpush1.bf16.msra.mxu1 %v9122_v0  ;;  %v5645_v0 = vld [vmem:[%s10697_s0 + $0x38] sm:$0xff] }
 0x84e   :  { %7026 = vmatprep.subr.bf16.mxu0 %v9124_v56  ;;  %7058 = vmatprep.subr.bf16.mxu1 %v9136_v30  ;;  %v270_v56 = vld [vmem:[#allocation5 + $0x68] sm:$0xff]  ;;  %v272_v14 = vld [vmem:[#allocation5 + $0x78] sm:$0xff]  ;;  %v265_v30 = vld [vmem:[#allocation5 + $0x40] sm:$0xff] }
 0x851   :  { %7028 = vmatpush1.bf16.msra.mxu0 %v9154_v6  ;;  %7060 = vmatpush1.bf16.msra.mxu1 %v9158_v48  ;;  %v9783_v48 = vpack.c.bf16 %v270_v56, %v266_v32  ;;  %v269_v6 = vld [vmem:[#allocation5 + $0x60] sm:$0xff]  ;;  %v9833_v32 = vpack.c.bf16 %v304_v41, %v300_v33  ;;  %v9835_v56 = vpack.c.bf16 %v301_v3, %v297_v62 }
 0x852   :  { %7030 = vmatprep.subr.bf16.mxu0 %v9160_v28  ;;  %7062 = vmatprep.subr.bf16.mxu1 %v9169_v42  ;;  %v268_v28 = vld [vmem:[#allocation5 + $0x58] sm:$0xff] }
 0x853   :  { %11037 = vst [vmem:[#allocation35_spill] sm:$0xff] %v9783_v48  ;;  %v9785_v42 = vpack.c.bf16 %v272_v14, %v268_v28  ;;  %11046 = vst [vmem:[#allocation14_spill] sm:$0xff] %v9835_v56  ;;  %v299_v28 = vld [vmem:[#allocation5 + $0x150] sm:$0xff] }
 0x854   :  { %v303_v14 = vld [vmem:[#allocation5 + $0x170] sm:$0xff] }
 0x855   :  { %7032 = vmatpush1.bf16.msra.mxu0 %v9178_v46  ;;  %7064 = vmatpush1.bf16.msra.mxu1 %v9182_v49  ;;  %v9787_v46 = vpack.c.bf16 %v269_v6, %v265_v30  ;;  %v267_v49 = vld [vmem:[#allocation5 + $0x50] sm:$0xff]  ;;  %v306_v30 = vld [vmem:[#allocation5 + $0x188] sm:$0xff]  ;;  %v9838_v6 = vpack.c.bf16 %v303_v14, %v299_v28 }
 0x856   :  { %7066 = vmatprep.subr.bf16.mxu0 %v9771_v23  ;;  %7098 = vmatprep.subr.bf16.mxu1 %v9773_v47  ;;  %v9790_v19 = vpack.c.bf16 %v271_v16, %v267_v49  ;;  %v310_v49 = vld [vmem:[#allocation5 + $0x1a8] sm:$0xff]  ;;  %v308_v16 = vld [vmem:[#allocation5 + $0x198] sm:$0xff] }
 0x857   :  { %11038 = vst [vmem:[#allocation36_spill] sm:$0xff] %v9787_v46  ;;  %v9842_v5 = vpack.c.bf16 %v310_v49, %v306_v30  ;;  %v9844_v58 = vpack.c.bf16 %v312_v59, %v308_v16 }
 0x858   :  { %2767 = vmatmul.mubr.f32.vlgmr.msra.gmra.mrb[14].mxu0 %v5645_v0  ;;  %2838 = vmatmul.mubr.f32.vlgmr.msra.gmra.mrb[14].mxu1 %v5645_v0  ;;  %v295_v0 = vld [vmem:[#allocation5 + $0x130] sm:$0xff] }
 0x859   :  { %2937 = vmatprep.mubr.f32.mxu0 %v9420_v1  ;;  %3008 = vmatprep.mubr.f32.mxu1 %v9420_v1  ;;  %v273_v1 = vld [vmem:[#allocation5 + $0x80] sm:$0xff]  ;;  %v9826_v10 = vpack.c.bf16 %v295_v0, %v291_v51  ;;  %11047 = vst [vmem:[#allocation15_spill] sm:$0xff] %v9842_v5  ;;  %v196_v51 = vld [vmem:[#allocation2 + $0x18] sm:$0xff]  ;;  %v9862_v0 = vpack.c.bf16 %v319_v35, %v315_v31 }
 0x85a   :  { %7068 = vmatpush1.bf16.msra.mxu0 %v9775_v61  ;;  %7100 = vmatpush1.bf16.msra.mxu1 %v9778_v15  ;;  %v9799_v34 = vpack.c.bf16 %v277_v25, %v273_v1  ;;  %v309_v1 = vld [vmem:[#allocation5 + $0x1a0] sm:$0xff]  ;;  %v307_v25 = vld [vmem:[#allocation5 + $0x190] sm:$0xff]  ;;  %v9867_v33 = vpack.c.bf16 %v200_v12, %v196_v51  ;;  %v202_v51 = vld [vmem:[#allocation2 + $0x48] sm:$0xff] }
 0x85b   :  { %7070 = vmatprep.subr.bf16.mxu0 %v9783_v48  ;;  %7102 = vmatprep.subr.bf16.mxu1 %v9785_v42  ;;  %v9847_v21 = vpack.c.bf16 %v309_v1, %v305_v43  ;;  %v9851_v20 = vpack.c.bf16 %v311_v52, %v307_v25  ;;  %11052 = vst [vmem:[#allocation20_spill] sm:$0xff] %v9862_v0  ;;  %v197_v35 = vld [vmem:[#allocation2 + $0x20] sm:$0xff]  ;;  %v206_v12 = vld [vmem:[#allocation2 + $0x68] sm:$0xff] }
 0x85c   :  { %11040 = vst [vmem:[#allocation38_spill] sm:$0xff] %v9799_v34  ;;  %11054 = vst [vmem:[#allocation22_spill] sm:$0xff] %v9867_v33 }
 0x85d   :  { %11048 = vst [vmem:[#allocation16_spill] sm:$0xff] %v9847_v21 }
 0x85e   :  { %7072 = vmatpush1.bf16.msra.mxu0 %v9787_v46  ;;  %7104 = vmatpush1.bf16.msra.mxu1 %v9790_v19 }
 0x85f   :  { %7074 = vmatprep.subr.bf16.mxu0 %v9795_v24  ;;  %7106 = vmatprep.subr.bf16.mxu1 %v9797_v36 }
 0x862   :  { %7076 = vmatpush1.bf16.msra.mxu0 %v9799_v34  ;;  %7108 = vmatpush1.bf16.msra.mxu1 %v9802_v63 }
 0x863   :  { %7078 = vmatprep.subr.bf16.mxu0 %v9807_v55  ;;  %7110 = vmatprep.subr.bf16.mxu1 %v9809_v13 }
 0x866   :  { %7080 = vmatpush1.bf16.msra.mxu0 %v9811_v17  ;;  %7112 = vmatpush1.bf16.msra.mxu1 %v9814_v26 }
 0x867   :  { %7082 = vmatprep.subr.bf16.mxu0 %v9819_v39  ;;  %7114 = vmatprep.subr.bf16.mxu1 %v9821_v45 }
 0x86a   :  { %7084 = vmatpush1.bf16.msra.mxu0 %v9823_v44  ;;  %7116 = vmatpush1.bf16.msra.mxu1 %v9826_v10 }
 0x86b   :  { %7086 = vmatprep.subr.bf16.mxu0 %v9831_v38  ;;  %7118 = vmatprep.subr.bf16.mxu1 %v9833_v32 }
 0x86e   :  { %7088 = vmatpush1.bf16.msra.mxu0 %v9835_v56  ;;  %7120 = vmatpush1.bf16.msra.mxu1 %v9838_v6 }
 0x86f   :  { %7090 = vmatprep.subr.bf16.mxu0 %v9842_v5  ;;  %7122 = vmatprep.subr.bf16.mxu1 %v9844_v58 }
 0x872   :  { %7092 = vmatpush1.bf16.msra.mxu0 %v9847_v21  ;;  %7124 = vmatpush1.bf16.msra.mxu1 %v9851_v20 }
 0x873   :  { %7094 = vmatprep.subr.bf16.mxu0 %v9853_v4  ;;  %7126 = vmatprep.subr.bf16.mxu1 %v9855_v22  ;;  %v252_v22 = vld [vmem:[#allocation2 + $0x1d8] sm:$0xff] }
 0x876   :  { %7096 = vmatpush1.bf16.msra.mxu0 %v9858_v40  ;;  %7128 = vmatpush1.bf16.msra.mxu1 %v9862_v0  ;;  %v254_v0 = vld [vmem:[#allocation2 + $0x1e8] sm:$0xff] }
 0x877   :  { %7130 = vmatprep.subr.bf16.mxu0 %v9864_v11  ;;  %7162 = vmatprep.subr.bf16.mxu1 %v9867_v33  ;;  %v244_v33 = vld [vmem:[#allocation2 + $0x198] sm:$0xff] }
 0x92b   :  { %v2768_v41 = vpop.f32.mrb[14].mxu0  ;;  %v2839_v62 = vpop.f32.mrb[14].mxu1 }
 0x92c   :  { %v2844_v3 = vadd.f32 %v2768_v41, %v11033_v7  ;;  %v2770_v28 = vpop.f32.mrb[15].mxu0  ;;  %v2841_v14 = vpop.f32.mrb[15].mxu1  ;;  %v2846_v1 = vadd.f32 %v2839_v62, %v9252_v60  ;;  %v193_v60 = vld [vmem:[#allocation2] sm:$0xff]  ;;  %v204_v41 = vld [vmem:[#allocation2 + $0x58] sm:$0xff] }
 0x92d   :  { %v2845_v30 = vadd.f32 %v2770_v28, %v10923_v57  ;;  %v2847_v59 = vadd.f32 %v2841_v14, %v10924_v54  ;;  %v208_v62 = vld [vmem:[#allocation2 + $0x78] sm:$0xff]  ;;  %v9881_v14 = vpack.c.bf16 %v197_v35, %v193_v60  ;;  %v211_v60 = vld [vmem:[#allocation2 + $0x90] sm:$0xff] }
 0x92e   :  { %v5646_v49 = vmul.f32 -1.442695, %v2844_v3  ;;  %v215_v35 = vld [vmem:[#allocation2 + $0xb0] sm:$0xff] }
 0x92f   :  { %v5647_v16 = vmul.f32 -1.442695, %v2845_v30  ;;  %v5648_v43 = vmul.f32 -1.442695, %v2847_v59  ;;  %v9883_v30 = vpack.c.bf16 %v199_v2, %v195_v29  ;;  %v9885_v59 = vpack.c.bf16 %v206_v12, %v202_v51  ;;  %v218_v29 = vld [vmem:[#allocation2 + $0xc8] sm:$0xff]  ;;  %v220_v51 = vld [vmem:[#allocation2 + $0xd8] sm:$0xff] }
 0x930   :  { %8311 = vpow2.f32 %v5646_v49  ;;  %v205_v49 = vld [vmem:[#allocation2 + $0x60] sm:$0xff]  ;;  %v222_v2 = vld [vmem:[#allocation2 + $0xe8] sm:$0xff]  ;;  %v224_v12 = vld [vmem:[#allocation2 + $0xf8] sm:$0xff] }
 0x931   :  { %8313 = vpow2.f32 %v5647_v16  ;;  %11055 = vst [vmem:[#allocation23_spill] sm:$0xff] %v9883_v30 }
 0x932   :  { %8315 = vpow2.f32 %v5648_v43  ;;  %v9887_v43 = vpack.c.bf16 %v208_v62, %v204_v41  ;;  %v9901_v41 = vld [vmem:[#allocation7] sm:$0xff] }
 0x933   :  { %8317 = vtanh.f32 %v2846_v1  ;;  %v203_v1 = vld [vmem:[#allocation2 + $0x50] sm:$0xff] }
 0x934   :  { %11056 = vst [vmem:[#allocation24_spill] sm:$0xff] %v9887_v43 }
 0x93a   :  { %v8312_v25 = vpop.eup %8311 }
 0x93b   :  { %v8314_v52 = vpop.eup %8313  ;;  %v2851_v37 = vadd.f32 1.0, %v8312_v25  ;;  %v207_v25 = vld [vmem:[#allocation2 + $0x70] sm:$0xff] }
 0x93c   :  { %v2857_v50 = vadd.f32 1.0, %v8314_v52  ;;  %v8316_v7 = vpop.eup %8315  ;;  %v210_v52 = vld [vmem:[#allocation2 + $0x88] sm:$0xff] }
 0x93d   :  { %8319 = vrcp.f32 %v2851_v37  ;;  %v8318_v8 = vpop.eup %8317  ;;  %v2864_v27 = vadd.f32 1.0, %v8316_v7  ;;  %v214_v37 = vld [vmem:[#allocation2 + $0xa8] sm:$0xff]  ;;  %v216_v7 = vld [vmem:[#allocation2 + $0xb8] sm:$0xff] }
 0x93e   :  { %8321 = vrcp.f32 %v2857_v50  ;;  %v212_v50 = vld [vmem:[#allocation2 + $0x98] sm:$0xff] }
 0x93f   :  { %8323 = vrcp.f32 %v2864_v27  ;;  %v9897_v27 = vpack.c.bf16 %v214_v37, %v210_v52  ;;  %v226_v52 = vld [vmem:[#allocation2 + $0x108] sm:$0xff] }
 0x940   :  { %v230_v37 = vld [vmem:[#allocation2 + $0x128] sm:$0xff] }
 0x947   :  { %v8320_v57 = vpop.eup %8319 }
 0x948   :  { %v8322_v9 = vpop.eup %8321  ;;  %v2868_v18 = vmul.f32 %v8320_v57, %v8318_v8  ;;  %v9893_v57 = vpack.c.bf16 %v207_v25, %v203_v1  ;;  %v219_v1 = vld [vmem:[#allocation2 + $0xd0] sm:$0xff] }
 0x949   :  { %v2867_v31 = vmul.f32 %v8322_v9, %v9731_v53  ;;  %v8324_v3 = vpop.eup %8323  ;;  %v201_v53 = vld [vmem:[#allocation2 + $0x40] sm:$0xff]  ;;  %v223_v25 = vld [vmem:[#allocation2 + $0xf0] sm:$0xff] }
 0x94a   :  { %v9891_v8 = vpack.c.bf16 %v205_v49, %v201_v53  ;;  %11057 = vst [vmem:[#allocation25_spill] sm:$0xff] %v9893_v57  ;;  %v209_v9 = vld [vmem:[#allocation2 + $0x80] sm:$0xff]  ;;  %v9913_v49 = vpack.c.bf16 %v222_v2, %v218_v29  ;;  %v9925_v29 = vpack.c.bf16 %v230_v37, %v226_v52 }
 0x94b   :  { %v9878_v54 = vadd.f32 %v2868_v18, %v2867_v31  ;;  %v213_v18 = vld [vmem:[#allocation2 + $0xa0] sm:$0xff]  ;;  %v9899_v31 = vpack.c.bf16 %v216_v7, %v212_v50  ;;  %v228_v50 = vld [vmem:[#allocation2 + $0x118] sm:$0xff] }
 0x94c   :  { %v9907_v62 = vpack.c.bf16 %v213_v18, %v209_v9  ;;  %v221_v53 = vld [vmem:[#allocation2 + $0xe0] sm:$0xff]  ;;  %v232_v7 = vld [vmem:[#allocation2 + $0x138] sm:$0xff]  ;;  %v9921_v18 = vpack.c.bf16 %v223_v25, %v219_v1 }
 0x94d   :  { %8325 = vtanh.f32 %v9878_v54  ;;  %11058 = vst [vmem:[#allocation26_spill] sm:$0xff] %v9899_v31  ;;  %v9927_v2 = vpack.c.bf16 %v232_v7, %v228_v50  ;;  %v233_v1 = vld [vmem:[#allocation2 + $0x140] sm:$0xff]  ;;  %v235_v50 = vld [vmem:[#allocation2 + $0x150] sm:$0xff] }
 0x94e   :  { %11061 = vst [vmem:[#allocation29_spill] sm:$0xff] %v9921_v18  ;;  %v237_v25 = vld [vmem:[#allocation2 + $0x160] sm:$0xff]  ;;  %v239_v7 = vld [vmem:[#allocation2 + $0x170] sm:$0xff] }
 0x94f   :  { %11062 = vst [vmem:[#allocation30_spill] sm:$0xff] %v9927_v2 }
 0x957   :  { %v8326_v28 = vpop.eup %8325 }
 0x958   :  { %v2871_v16 = vmul.f32 %v8326_v28, %v8324_v3  ;;  %v9909_v3 = vpack.c.bf16 %v215_v35, %v211_v60  ;;  %v217_v28 = vld [vmem:[#allocation2 + $0xc0] sm:$0xff] }
 0x959   :  { %v9919_v9 = vpack.c.bf16 %v221_v53, %v217_v28  ;;  %v225_v60 = vld [vmem:[#allocation2 + $0x100] sm:$0xff] }
 0x95a   :  { %2938 = vmatmul.mubr.f32.vlgmr.msra.gmra.mrb[16].mxu0 %v2871_v16  ;;  %3009 = vmatmul.mubr.f32.vlgmr.msra.gmra.mrb[16].mxu1 %v2871_v16  ;;  %11059 = vst [vmem:[#allocation27_spill] sm:$0xff] %v9909_v3  ;;  %v9915_v16 = vpack.c.bf16 %v224_v12, %v220_v51  ;;  %v229_v35 = vld [vmem:[#allocation2 + $0x120] sm:$0xff]  ;;  %v227_v51 = vld [vmem:[#allocation2 + $0x110] sm:$0xff] }
 0x95b   :  { %7132 = vmatpush1.bf16.msra.mxu0 %v9881_v14  ;;  %7164 = vmatpush1.bf16.msra.mxu1 %v9883_v30  ;;  %v231_v12 = vld [vmem:[#allocation2 + $0x130] sm:$0xff]  ;;  %v9931_v28 = vpack.c.bf16 %v229_v35, %v225_v60  ;;  %v246_v30 = vld [vmem:[#allocation2 + $0x1a8] sm:$0xff]  ;;  %v9943_v60 = vpack.c.bf16 %v237_v25, %v233_v1  ;;  %v9945_v35 = vpack.c.bf16 %v239_v7, %v235_v50  ;;  %v249_v50 = vld [vmem:[#allocation2 + $0x1c0] sm:$0xff] }
 0x95c   :  { %7134 = vmatprep.subr.bf16.mxu0 %v9885_v59  ;;  %7166 = vmatprep.subr.bf16.mxu1 %v9887_v43  ;;  %11060 = vst [vmem:[#allocation28_spill] sm:$0xff] %v9915_v16  ;;  %v236_v43 = vld [vmem:[#allocation2 + $0x158] sm:$0xff]  ;;  %v9933_v53 = vpack.c.bf16 %v231_v12, %v227_v51  ;;  %v241_v51 = vld [vmem:[#allocation2 + $0x180] sm:$0xff]  ;;  %v255_v7 = vld [vmem:[#allocation2 + $0x1f0] sm:$0xff] }
 0x95d   :  { %3079 = vmatprep.mubr.f32.mxu0 %v9901_v41  ;;  %3150 = vmatprep.mubr.f32.mxu1 %v9901_v41  ;;  %11065 = vst [vmem:[#allocation43_spill] sm:$0xff] %v9945_v35  ;;  %v245_v12 = vld [vmem:[#allocation2 + $0x1a0] sm:$0xff] }
 0x95e   :  { %11063 = vst [vmem:[#allocation31_spill] sm:$0xff] %v9933_v53  ;;  %v9955_v1 = vpack.c.bf16 %v245_v12, %v241_v51 }
 0x95f   :  { %7136 = vmatpush1.bf16.msra.mxu0 %v9891_v8  ;;  %7168 = vmatpush1.bf16.msra.mxu1 %v9893_v57  ;;  %v238_v57 = vld [vmem:[#allocation2 + $0x168] sm:$0xff] }
 0x960   :  { %7138 = vmatprep.subr.bf16.mxu0 %v9897_v27  ;;  %7170 = vmatprep.subr.bf16.mxu1 %v9899_v31  ;;  %v234_v31 = vld [vmem:[#allocation2 + $0x148] sm:$0xff] }
 0x961   :  { %v9937_v52 = vpack.c.bf16 %v238_v57, %v234_v31  ;;  %v243_v31 = vld [vmem:[#allocation2 + $0x190] sm:$0xff] }
 0x963   :  { %7140 = vmatpush1.bf16.msra.mxu0 %v9907_v62  ;;  %7172 = vmatpush1.bf16.msra.mxu1 %v9909_v3  ;;  %v240_v3 = vld [vmem:[#allocation2 + $0x178] sm:$0xff] }
 0x964   :  { %7142 = vmatprep.subr.bf16.mxu0 %v9913_v49  ;;  %7174 = vmatprep.subr.bf16.mxu1 %v9915_v16  ;;  %v9939_v37 = vpack.c.bf16 %v240_v3, %v236_v43  ;;  %v242_v16 = vld [vmem:[#allocation2 + $0x188] sm:$0xff]  ;;  %v247_v3 = vld [vmem:[#allocation2 + $0x1b0] sm:$0xff] }
 0x965   :  { %v9949_v43 = vpack.c.bf16 %v246_v30, %v242_v16  ;;  %v9957_v25 = vpack.c.bf16 %v247_v3, %v243_v31  ;;  %v253_v16 = vld [vmem:[#allocation2 + $0x1e0] sm:$0xff]  ;;  %v10817_v31 = vmov 0.0|0.0   ;;  %v324_v3 = vld [vmem:[%s10705_s8 + $0x10] sm:$0xff] }
 0x966   :  { %11064 = vst [vmem:[#allocation40_spill] sm:$0xff] %v9939_v37  ;;  %v9967_v51 = vpack.c.bf16 %v253_v16, %v249_v50  ;;  %v325_v50 = vld [vmem:[%s10705_s8 + $0x18] sm:$0xff] }
 0x967   :  { %7144 = vmatpush1.bf16.msra.mxu0 %v9919_v9  ;;  %7176 = vmatpush1.bf16.msra.mxu1 %v9921_v18  ;;  %v248_v18 = vld [vmem:[#allocation2 + $0x1b8] sm:$0xff]  ;;  %11067 = vst [vmem:[#allocation45_spill] sm:$0xff] %v9957_v25  ;;  %v10013_v16 = vpack.c.bf16 %v325_v50, %v324_v3  ;;  %v330_v50 = vld [vmem:[%s10705_s8 + $0x40] sm:$0xff] }
 0x968   :  { %7146 = vmatprep.subr.bf16.mxu0 %v9925_v29  ;;  %7178 = vmatprep.subr.bf16.mxu1 %v9927_v2  ;;  %v9951_v57 = vpack.c.bf16 %v248_v18, %v244_v33  ;;  %v250_v2 = vld [vmem:[#allocation2 + $0x1c8] sm:$0xff]  ;;  %v251_v18 = vld [vmem:[#allocation2 + $0x1d0] sm:$0xff] }
 0x969   :  { %v9961_v33 = vpack.c.bf16 %v254_v0, %v250_v2  ;;  %v9969_v12 = vpack.c.bf16 %v255_v7, %v251_v18  ;;  %v322_v0 = vld [vmem:[%s10705_s8] sm:$0xff]  ;;  %v323_v2 = vld [vmem:[%s10705_s8 + $0x8] sm:$0xff] }
 0x96a   :  { %11066 = vst [vmem:[#allocation44_spill] sm:$0xff] %v9951_v57  ;;  %v326_v18 = vld [vmem:[%s10705_s8 + $0x20] sm:$0xff]  ;;  %v327_v7 = vld [vmem:[%s10705_s8 + $0x28] sm:$0xff] }
 0x96b   :  { %7148 = vmatpush1.bf16.msra.mxu0 %v9931_v28  ;;  %7180 = vmatpush1.bf16.msra.mxu1 %v9933_v53  ;;  %v256_v53 = vld [vmem:[#allocation2 + $0x1f8] sm:$0xff]  ;;  %11069 = vst [vmem:[#allocation47_spill] sm:$0xff] %v9969_v12 }
 0x96c   :  { %7150 = vmatprep.subr.bf16.mxu0 %v9937_v52  ;;  %7182 = vmatprep.subr.bf16.mxu1 %v9939_v37  ;;  %v9963_v30 = vpack.c.bf16 %v256_v53, %v252_v22  ;;  %v2872_v22 = vld [vmem:[%s10698_s1] sm:$0xff]  ;;  %v10002_v53 = vpack.c.bf16 %v323_v2, %v322_v0  ;;  %v328_v0 = vld [vmem:[%s10705_s8 + $0x30] sm:$0xff]  ;;  %v329_v2 = vld [vmem:[%s10705_s8 + $0x38] sm:$0xff] }
 0x96d   :  { %v10033_v3 = vpack.c.bf16 %v329_v2, %v328_v0  ;;  %v332_v0 = vld [vmem:[%s10705_s8 + $0x50] sm:$0xff]  ;;  %v333_v2 = vld [vmem:[%s10705_s8 + $0x58] sm:$0xff] }
 0x96e   :  { %11068 = vst [vmem:[#allocation46_spill] sm:$0xff] %v9963_v30 }
 0x96f   :  { %7152 = vmatpush1.bf16.msra.mxu0 %v9943_v60  ;;  %7184 = vmatpush1.bf16.msra.mxu1 %v9945_v35  ;;  %11070 = vst [vmem:[#allocation48_spill] sm:$0xff] %v10033_v3 }
 0x970   :  { %7154 = vmatprep.subr.bf16.mxu0 %v9949_v43  ;;  %7186 = vmatprep.subr.bf16.mxu1 %v9951_v57 }
 0x973   :  { %7156 = vmatpush1.bf16.msra.mxu0 %v9955_v1  ;;  %7188 = vmatpush1.bf16.msra.mxu1 %v9957_v25 }
 0x974   :  { %7158 = vmatprep.subr.bf16.mxu0 %v9961_v33  ;;  %7190 = vmatprep.subr.bf16.mxu1 %v9963_v30 }
 0x977   :  { %7160 = vmatpush1.bf16.msra.mxu0 %v9967_v51  ;;  %7192 = vmatpush1.bf16.msra.mxu1 %v9969_v12 }
 0x978   :  { %7218 = vmatprep.subr.bf16.mxu1 %v9771_v23  ;;  %7193 = vmatprep.subr.bf16.mxu0 %v10817_v31 }
 0x97a   :  { %3080 = vmatmul.mubr.f32.vlgmr.msra.gmra.mrb[16].mxu0 %v2872_v22  ;;  %3151 = vmatmul.mubr.f32.vlgmr.msra.gmra.mrb[16].mxu1 %v2872_v22  ;;  %v10023_v22 = vpack.c.bf16 %v327_v7, %v326_v18  ;;  %v331_v18 = vld [vmem:[%s10705_s8 + $0x48] sm:$0xff] }
 0x97b   :  { %7220 = vmatpush1.bf16.msra.mxu1 %v9775_v61  ;;  %3350 = vmatprep.mubr.f32.mxu1 %v9901_v41  ;;  %v10043_v7 = vpack.c.bf16 %v331_v18, %v330_v50  ;;  %v335_v50 = vld [vmem:[%s10705_s8 + $0x68] sm:$0xff] }
 0x97c   :  { %7222 = vmatprep.subr.bf16.mxu1 %v9783_v48  ;;  %7195 = vmatpush3.bf16.msra.mxu0 %v10002_v53 }
 0x97d   :  { %7196 = vmatprep.subr.bf16.mxu0 %v10817_v31  ;;  %11071 = vst [vmem:[#allocation49_spill] sm:$0xff] %v10043_v7  ;;  %5828 = vmatprep.mubr.msk.f32.mxu0 %vm8521_vm0, %v9901_v41 }
 0x97f   :  { %7224 = vmatpush1.bf16.msra.mxu1 %v9787_v46 }
 0x980   :  { %7226 = vmatprep.subr.bf16.mxu1 %v9795_v24  ;;  %7198 = vmatpush3.bf16.msra.mxu0 %v10013_v16 }
 0x981   :  { %7199 = vmatprep.subr.bf16.mxu0 %v10817_v31 }
 0x983   :  { %7228 = vmatpush1.bf16.msra.mxu1 %v9799_v34 }
 0x984   :  { %7230 = vmatprep.subr.bf16.mxu1 %v9807_v55  ;;  %7201 = vmatpush3.bf16.msra.mxu0 %v10023_v22 }
 0x985   :  { %7202 = vmatprep.subr.bf16.mxu0 %v10817_v31 }
 0x987   :  { %7232 = vmatpush1.bf16.msra.mxu1 %v9811_v17 }
 0x988   :  { %7234 = vmatprep.subr.bf16.mxu1 %v9819_v39  ;;  %7204 = vmatpush3.bf16.msra.mxu0 %v10033_v3 }
 0x989   :  { %7205 = vmatprep.subr.bf16.mxu0 %v10817_v31 }
 0x98b   :  { %7236 = vmatpush1.bf16.msra.mxu1 %v9823_v44 }
 0x98c   :  { %7238 = vmatprep.subr.bf16.mxu1 %v9831_v38  ;;  %7207 = vmatpush3.bf16.msra.mxu0 %v10043_v7 }
 0x98d   :  { %7208 = vmatprep.subr.bf16.mxu0 %v10817_v31 }
 0x98f   :  { %7240 = vmatpush1.bf16.msra.mxu1 %v9835_v56 }
 0x990   :  { %7242 = vmatprep.subr.bf16.mxu1 %v9842_v5 }
 0x993   :  { %7244 = vmatpush1.bf16.msra.mxu1 %v9847_v21 }
 0x994   :  { %7246 = vmatprep.subr.bf16.mxu1 %v9853_v4 }
 0x997   :  { %7248 = vmatpush1.bf16.msra.mxu1 %v9858_v40  ;;  %v334_v40 = vld [vmem:[%s10705_s8 + $0x60] sm:$0xff] }
 0x998   :  { %7282 = vmatprep.subr.bf16.mxu1 %v9864_v11  ;;  %v10053_v11 = vpack.c.bf16 %v333_v2, %v332_v0  ;;  %v10064_v18 = vpack.c.bf16 %v335_v50, %v334_v40  ;;  %v336_v0 = vld [vmem:[%s10705_s8 + $0x70] sm:$0xff]  ;;  %v337_v2 = vld [vmem:[%s10705_s8 + $0x78] sm:$0xff]  ;;  %v321_v40 = vld [vmem:[%s10704_s7] sm:$0xf] }
 0x999   :  { %v10074_v4 = vpack.c.bf16 %v337_v2, %v336_v0  ;;  %v11075_v50 = vld [vmem:[#allocation39_spill] sm:$0xff] }
 0x99a   :  { %11072 = vst [vmem:[#allocation50_spill] sm:$0xff] %v10053_v11  ;;  %7210 = vmatpush3.bf16.msra.mxu0 %v10053_v11  ;;  %11073 = vst [vmem:[#allocation51_spill] sm:$0xff] %v10064_v18  ;;  %v11076_v21 = vsub.s32 0, %v11075_v50  ;;  %v11078_v56 = vsub.s32 1, %v11075_v50  ;;  %v11079_v24 = vsub.s32 3, %v11075_v50 }
 0x99b   :  { %7211 = vmatprep.subr.bf16.mxu0 %v10817_v31  ;;  %11074 = vst [vmem:[#allocation52_spill] sm:$0xff] %v10074_v4 }
 0x99c   :  { %v10084_v5 = vrot.slane %v321_v40, %v11076_v21  ;;  %v10088_v38 = vrot.slane %v321_v40, %v11078_v56  ;;  %v10094_v46 = vrot.slane %v321_v40, %v11079_v24  ;;  %v11081_v56 = vsub.s32 2, %v11075_v50 }
 0x99e   :  { %7213 = vmatpush3.bf16.msra.mxu0 %v10064_v18  ;;  %11077 = vst [vmem:[#allocation39_spill] sm:$0xff] %v10084_v5  ;;  %11080 = vst [vmem:[#allocation53_spill] sm:$0xff] %v10094_v46  ;;  %v10099_v48 = vrot.slane %v321_v40, %v11081_v56  ;;  %v11085_v56 = vmov 0.0|0.0  }
 0x99f   :  { %7214 = vmatprep.subr.bf16.mxu0 %v10817_v31 }
 0x9a2   :  { %7216 = vmatpush3.bf16.msra.mxu0 %v10074_v4 }
 0x9a3   :  { %7250 = vmatprep.subr.bf16.mxu0 %v9773_v47 }
 0xa4d   :  { %v3081_v0 = vpop.f32.mrb[16].mxu0  ;;  %v3152_v2 = vpop.f32.mrb[16].mxu1 }
 0xa4e   :  { %v3178_v31 = vadd.f32 %v10084_v5, %v3081_v0  ;;  %v3083_v44 = vpop.f32.mrb[17].mxu0  ;;  %v3154_v39 = vpop.f32.mrb[17].mxu1  ;;  %v3180_v0 = vadd.f32 %v10099_v48, %v3152_v2 }
 0xa4f   :  { %v3179_v17 = vadd.f32 %v10088_v38, %v3083_v44  ;;  %v3181_v21 = vadd.f32 %v10094_v46, %v3154_v39 }
 0xa50   :  { %v5649_v55 = vmul.f32 -1.442695, %v3178_v31 }
 0xa51   :  { %v5650_v34 = vmul.f32 -1.442695, %v3179_v17  ;;  %v5651_v61 = vmul.f32 -1.442695, %v3181_v21  ;;  %v11084_v21 = vld [vmem:[#allocation22_spill] sm:$0xff] }
 0xa52   :  { %8327 = vpow2.f32 %v5649_v55 }
 0xa53   :  { %8329 = vpow2.f32 %v5650_v34 }
 0xa54   :  { %8331 = vpow2.f32 %v5651_v61 }
 0xa55   :  { %8333 = vtanh.f32 %v3180_v0  ;;  %v11086_v0 = vld [vmem:[#allocation23_spill] sm:$0xff] }
 0xa5c   :  { %v8328_v5 = vpop.eup %8327 }
 0xa5d   :  { %v8330_v47 = vpop.eup %8329  ;;  %v3185_v44 = vadd.f32 1.0, %v8328_v5 }
 0xa5e   :  { %v3191_v17 = vadd.f32 1.0, %v8330_v47  ;;  %v8332_v24 = vpop.eup %8331  ;;  %v11082_v47 = vld [vmem:[#allocation18_spill] sm:$0xff] }
 0xa5f   :  { %8335 = vrcp.f32 %v3185_v44  ;;  %v8334_v55 = vpop.eup %8333  ;;  %v3198_v46 = vadd.f32 1.0, %v8332_v24  ;;  %v11087_v44 = vld [vmem:[#allocation24_spill] sm:$0xff]  ;;  %v11089_v24 = vld [vmem:[#allocation26_spill] sm:$0xff] }
 0xa60   :  { %8337 = vrcp.f32 %v3191_v17  ;;  %v11088_v17 = vld [vmem:[#allocation25_spill] sm:$0xff] }
 0xa61   :  { %8339 = vrcp.f32 %v3198_v46  ;;  %v11083_v46 = vld [vmem:[#allocation20_spill] sm:$0xff] }
 0xa69   :  { %v8336_v34 = vpop.eup %8335 }
 0xa6a   :  { %v8338_v31 = vpop.eup %8337  ;;  %v3202_v39 = vmul.f32 %v8336_v34, %v8334_v55  ;;  %v11090_v55 = vld [vmem:[#allocation27_spill] sm:$0xff]  ;;  %v11091_v34 = vld [vmem:[#allocation28_spill] sm:$0xff] }
 0xa6b   :  { %v3201_v40 = vmul.f32 %v8338_v31, %v9878_v54  ;;  %v8340_v2 = vpop.eup %8339  ;;  %v5653_v54 = vld [vmem:[%s10698_s1 + $0x8] sm:$0xff]  ;;  %v11092_v31 = vld [vmem:[#allocation29_spill] sm:$0xff] }
 0xa6d   :  { %v10103_v50 = vadd.f32 %v3202_v39, %v3201_v40  ;;  %v11093_v39 = vld [vmem:[#allocation30_spill] sm:$0xff]  ;;  %v11094_v40 = vld [vmem:[#allocation31_spill] sm:$0xff] }
 0xa6f   :  { %8341 = vtanh.f32 %v10103_v50 }
 0xa79   :  { %v8342_v5 = vpop.eup %8341 }
 0xa7a   :  { %v3205_v61 = vmul.f32 %v8342_v5, %v8340_v2  ;;  %v11095_v2 = vld [vmem:[#allocation33_spill] sm:$0xff]  ;;  %v11096_v5 = vld [vmem:[#allocation34_spill] sm:$0xff] }
 0xa7c   :  { %5829 = vmatmul.mubr.f32.vlgmr.msra.gmra.mrb[18].mxu0 %v3205_v61  ;;  %3351 = vmatmul.mubr.f32.vlgmr.msra.gmra.mrb[18].mxu1 %v3205_v61 }
 0xa7d   :  { %7252 = vmatpush1.bf16.msra.mxu0 %v9778_v15  ;;  %7284 = vmatpush1.bf16.msra.mxu1 %v9881_v14 }
 0xa7e   :  { %7254 = vmatprep.subr.bf16.mxu0 %v9785_v42  ;;  %7286 = vmatprep.subr.bf16.mxu1 %v9885_v59 }
 0xa7f   :  { %3421 = vmatprep.mubr.f32.mxu0 %v9901_v41  ;;  %3492 = vmatprep.mubr.f32.mxu1 %v9901_v41 }
 0xa81   :  { %7256 = vmatpush1.bf16.msra.mxu0 %v9790_v19  ;;  %7288 = vmatpush1.bf16.msra.mxu1 %v9891_v8 }
 0xa82   :  { %7258 = vmatprep.subr.bf16.mxu0 %v9797_v36  ;;  %7290 = vmatprep.subr.bf16.mxu1 %v9897_v27 }
 0xa85   :  { %7260 = vmatpush1.bf16.msra.mxu0 %v9802_v63  ;;  %7292 = vmatpush1.bf16.msra.mxu1 %v9907_v62 }
 0xa86   :  { %7262 = vmatprep.subr.bf16.mxu0 %v9809_v13  ;;  %7294 = vmatprep.subr.bf16.mxu1 %v9913_v49 }
 0xa89   :  { %7264 = vmatpush1.bf16.msra.mxu0 %v9814_v26  ;;  %7296 = vmatpush1.bf16.msra.mxu1 %v9919_v9 }
 0xa8a   :  { %7266 = vmatprep.subr.bf16.mxu0 %v9821_v45  ;;  %7298 = vmatprep.subr.bf16.mxu1 %v9925_v29 }
 0xa8d   :  { %7268 = vmatpush1.bf16.msra.mxu0 %v9826_v10  ;;  %7300 = vmatpush1.bf16.msra.mxu1 %v9931_v28 }
 0xa8e   :  { %7270 = vmatprep.subr.bf16.mxu0 %v9833_v32  ;;  %7302 = vmatprep.subr.bf16.mxu1 %v9937_v52 }
 0xa91   :  { %7272 = vmatpush1.bf16.msra.mxu0 %v9838_v6  ;;  %7304 = vmatpush1.bf16.msra.mxu1 %v9943_v60 }
 0xa92   :  { %7274 = vmatprep.subr.bf16.mxu0 %v9844_v58  ;;  %7306 = vmatprep.subr.bf16.mxu1 %v9949_v43 }
 0xa95   :  { %7276 = vmatpush1.bf16.msra.mxu0 %v9851_v20  ;;  %7308 = vmatpush1.bf16.msra.mxu1 %v9955_v1 }
 0xa96   :  { %7278 = vmatprep.subr.bf16.mxu0 %v11082_v47  ;;  %7310 = vmatprep.subr.bf16.mxu1 %v9961_v33 }
 0xa99   :  { %7280 = vmatpush1.bf16.msra.mxu0 %v11083_v46  ;;  %7312 = vmatpush1.bf16.msra.mxu1 %v9967_v51 }
 0xa9a   :  { %7314 = vmatprep.subr.bf16.mxu0 %v11084_v21  ;;  %7345 = vmatprep.subr.bf16.mxu1 %v11085_v56 }
 0xa9c   :  { %3422 = vmatmul.mubr.f32.vlgmr.msra.gmra.mrb[20].mxu0 %v3205_v61  ;;  %3493 = vmatmul.mubr.f32.vlgmr.msra.gmra.mrb[18].mxu1 %v5653_v54  ;;  %v11097_v61 = vld [vmem:[#allocation35_spill] sm:$0xff] }
 0xa9d   :  { %7316 = vmatpush1.bf16.msra.mxu0 %v11086_v0  ;;  %3563 = vmatprep.mubr.f32.mxu0 %v9901_v41 }
 0xa9e   :  { %7318 = vmatprep.subr.bf16.mxu0 %v11087_v44  ;;  %7347 = vmatpush3.bf16.msra.mxu1 %v10002_v53 }
 0xa9f   :  { %7348 = vmatprep.subr.bf16.mxu1 %v11085_v56  ;;  %5863 = vmatprep.mubr.msk.f32.mxu1 %vm8521_vm0, %v9901_v41 }
 0xaa1   :  { %7320 = vmatpush1.bf16.msra.mxu0 %v11088_v17 }
 0xaa2   :  { %7322 = vmatprep.subr.bf16.mxu0 %v11089_v24  ;;  %7350 = vmatpush3.bf16.msra.mxu1 %v10013_v16 }
 0xaa3   :  { %7351 = vmatprep.subr.bf16.mxu1 %v11085_v56 }
 0xaa5   :  { %7324 = vmatpush1.bf16.msra.mxu0 %v11090_v55 }
 0xaa6   :  { %7326 = vmatprep.subr.bf16.mxu0 %v11091_v34  ;;  %7353 = vmatpush3.bf16.msra.mxu1 %v10023_v22 }
 0xaa7   :  { %7354 = vmatprep.subr.bf16.mxu1 %v11085_v56 }
 0xaa9   :  { %7328 = vmatpush1.bf16.msra.mxu0 %v11092_v31 }
 0xaaa   :  { %7330 = vmatprep.subr.bf16.mxu0 %v11093_v39  ;;  %7356 = vmatpush3.bf16.msra.mxu1 %v10033_v3 }
 0xaab   :  { %7357 = vmatprep.subr.bf16.mxu1 %v11085_v56 }
 0xaad   :  { %7332 = vmatpush1.bf16.msra.mxu0 %v11094_v40 }
 0xaae   :  { %7334 = vmatprep.subr.bf16.mxu0 %v9939_v37  ;;  %7359 = vmatpush3.bf16.msra.mxu1 %v10043_v7 }
 0xaaf   :  { %7360 = vmatprep.subr.bf16.mxu1 %v11085_v56 }
 0xab1   :  { %7336 = vmatpush1.bf16.msra.mxu0 %v9945_v35 }
 0xab2   :  { %7338 = vmatprep.subr.bf16.mxu0 %v9951_v57  ;;  %7362 = vmatpush3.bf16.msra.mxu1 %v10053_v11  ;;  %v11107_v11 = vld [vmem:[#allocation15_spill] sm:$0xff] }
 0xab3   :  { %7363 = vmatprep.subr.bf16.mxu1 %v11085_v56 }
 0xab5   :  { %7340 = vmatpush1.bf16.msra.mxu0 %v9957_v25  ;;  %v11100_v25 = vld [vmem:[#allocation38_spill] sm:$0xff] }
 0xab6   :  { %7342 = vmatprep.subr.bf16.mxu0 %v9963_v30  ;;  %7365 = vmatpush3.bf16.msra.mxu1 %v10064_v18  ;;  %v11098_v30 = vld [vmem:[#allocation36_spill] sm:$0xff]  ;;  %v11099_v18 = vld [vmem:[#allocation37_spill] sm:$0xff] }
 0xab7   :  { %7366 = vmatprep.subr.bf16.mxu1 %v11085_v56 }
 0xab9   :  { %7344 = vmatpush1.bf16.msra.mxu0 %v9969_v12  ;;  %v11101_v12 = vld [vmem:[#allocation41_spill] sm:$0xff] }
 0xaba   :  { %7370 = vmatprep.subr.bf16.mxu0 %v9771_v23  ;;  %7368 = vmatpush3.bf16.msra.mxu1 %v10074_v4  ;;  %v11102_v23 = vld [vmem:[#allocation42_spill] sm:$0xff]  ;;  %v11103_v4 = vld [vmem:[#allocation11_spill] sm:$0xff] }
 0xabb   :  { %7402 = vmatprep.subr.bf16.mxu1 %v11095_v2  ;;  %v11104_v2 = vld [vmem:[#allocation12_spill] sm:$0xff] }
 0xabc   :  { %3564 = vmatmul.mubr.f32.vlgmr.msra.gmra.mrb[20].mxu0 %v5653_v54  ;;  %v11105_v54 = vld [vmem:[#allocation13_spill] sm:$0xff] }
 0xabd   :  { %7372 = vmatpush1.bf16.msra.mxu0 %v11096_v5  ;;  %3736 = vmatprep.mubr.f32.mxu0 %v9901_v41  ;;  %v11106_v5 = vld [vmem:[#allocation14_spill] sm:$0xff] }
 0xabe   :  { %7374 = vmatprep.subr.bf16.mxu0 %v11097_v61  ;;  %v11108_v61 = vld [vmem:[#allocation16_spill] sm:$0xff] }
 0xac1   :  { %7376 = vmatpush1.bf16.msra.mxu0 %v11098_v30  ;;  %v11109_v30 = vld [vmem:[#allocation17_spill] sm:$0xff] }
 0xac2   :  { %7378 = vmatprep.subr.bf16.mxu0 %v11099_v18  ;;  %v11110_v18 = vld [vmem:[#allocation19_spill] sm:$0xff] }
 0xac5   :  { %7380 = vmatpush1.bf16.msra.mxu0 %v11100_v25  ;;  %v11111_v25 = vld [vmem:[#allocation21_spill] sm:$0xff] }
 0xac6   :  { %7382 = vmatprep.subr.bf16.mxu0 %v11101_v12  ;;  %v11113_v12 = vld [vmem:[#allocation39_spill] sm:$0xff] }
 0xac9   :  { %7384 = vmatpush1.bf16.msra.mxu0 %v11102_v23 }
 0xaca   :  { %7386 = vmatprep.subr.bf16.mxu0 %v11103_v4  ;;  %v10198_v4 = vld [vmem:[%s10706_s9] ss:$0 sm:$0xff] }
 0xacb   :  { %11112 = vst [vmem:[#allocation18_spill] sm:$0xff] %v10198_v4 }
 0xacd   :  { %7388 = vmatpush1.bf16.msra.mxu0 %v11104_v2 }
 0xace   :  { %7390 = vmatprep.subr.bf16.mxu0 %v11105_v54 }
 0xad1   :  { %7392 = vmatpush1.bf16.msra.mxu0 %v11106_v5 }
 0xad2   :  { %7394 = vmatprep.subr.bf16.mxu0 %v11107_v11 }
 0xad5   :  { %7396 = vmatpush1.bf16.msra.mxu0 %v11108_v61 }
 0xad6   :  { %7398 = vmatprep.subr.bf16.mxu0 %v11109_v30 }
 0xad9   :  { %7400 = vmatpush1.bf16.msra.mxu0 %v11110_v18 }
 0xada   :  { %7434 = vmatprep.subr.bf16.mxu0 %v11111_v25 }
 0xb4f   :  { %v3278_v2 = vpop.f32.mrb[18].mxu0 }
 0xb50   :  { %v3279_v54 = vadd.f32 %v10198_v4, %v3278_v2  ;;  %v5830_v23 = vpop.f32.mrb[19].mxu0 }
 0xb52   :  { %3283 = vst [vmem:[#allocation7 + $0x8] sm:$0xff] %v3279_v54  ;;  %v11114_v54 = vld [vmem:[#allocation53_spill] sm:$0xff] }
 0xb6f   :  { %v3494_v5 = vpop.f32.mrb[18].mxu1 }
 0xb70   :  { %v3496_v11 = vpop.f32.mrb[19].mxu1  ;;  %v3570_v30 = vadd.f32 %v3494_v5, %v11113_v12 }
 0xb71   :  { %v3571_v61 = vadd.f32 %v3496_v11, %v10088_v38 }
 0xb72   :  { %v5654_v18 = vmul.f32 -1.442695, %v3570_v30 }
 0xb73   :  { %v5655_v57 = vmul.f32 -1.442695, %v3571_v61 }
 0xb75   :  { %8343 = vpow2.f32 %v5655_v57 }
 0xb76   :  { %8345 = vpow2.f32 %v5654_v18 }
 0xb7f   :  { %v8344_v25 = vpop.eup %8343 }
 0xb80   :  { %v8346_v35 = vpop.eup %8345  ;;  %v3583_v7 = vadd.f32 1.0, %v8344_v25 }
 0xb81   :  { %v3577_v37 = vadd.f32 1.0, %v8346_v35 }
 0xb82   :  { %8347 = vrcp.f32 %v3583_v7 }
 0xb83   :  { %8349 = vrcp.f32 %v3577_v37 }
 0xb8c   :  { %v8348_v5 = vpop.eup %8347 }
 0xb8d   :  { %v8350_v61 = vpop.eup %8349  ;;  %v3593_v57 = vmul.f32 %v8348_v5, %v10103_v50  ;;  %v11116_v50 = vld [vmem:[#allocation40_spill] sm:$0xff]  ;;  %v11120_v5 = vld [vmem:[#allocation50_spill] sm:$0xff] }
 0xb8f   :  { %v3565_v40 = vpop.f32.mrb[20].mxu0 }
 0xb90   :  { %v3572_v2 = vadd.f32 %v3565_v40, %v10099_v48  ;;  %v3567_v23 = vpop.f32.mrb[21].mxu0 }
 0xb91   :  { %v3573_v4 = vadd.f32 %v3567_v23, %v11114_v54  ;;  %v11118_v23 = vld [vmem:[#allocation43_spill] sm:$0xff] }
 0xb92   :  { %8351 = vtanh.f32 %v3572_v2  ;;  %v11117_v2 = vld [vmem:[#allocation49_spill] sm:$0xff] }
 0xb93   :  { %v5656_v11 = vmul.f32 -1.442695, %v3573_v4  ;;  %v5657_v4 = vld [vmem:[%s10698_s1 + $0x10] sm:$0xff] }
 0xb95   :  { %8353 = vpow2.f32 %v5656_v11  ;;  %v11119_v11 = vld [vmem:[#allocation44_spill] sm:$0xff] }
 0xb9c   :  { %v8352_v30 = vpop.eup %8351 }
 0xb9d   :  { %v3594_v18 = vmul.f32 %v8352_v30, %v8350_v61  ;;  %v11121_v61 = vld [vmem:[#allocation45_spill] sm:$0xff]  ;;  %v11122_v30 = vld [vmem:[#allocation46_spill] sm:$0xff] }
 0xb9f   :  { %v8354_v12 = vpop.eup %8353  ;;  %v10206_v25 = vadd.f32 %v3594_v18, %v3593_v57  ;;  %v11123_v57 = vld [vmem:[#allocation51_spill] sm:$0xff] }
 0xba0   :  { %v3590_v35 = vadd.f32 1.0, %v8354_v12  ;;  %v11115_v12 = vld [vmem:[#allocation31_spill] sm:$0xff] }
 0xba1   :  { %8355 = vtanh.f32 %v10206_v25  ;;  %v11124_v18 = vld [vmem:[#allocation47_spill] sm:$0xff] }
 0xba2   :  { %8357 = vrcp.f32 %v3590_v35  ;;  %v11125_v35 = vld [vmem:[#allocation32_spill] sm:$0xff] }
 0xbab   :  { %v8356_v7 = vpop.eup %8355 }
 0xbac   :  { %v8358_v37 = vpop.eup %8357 }
 0xbad   :  { %v3597_v40 = vmul.f32 %v8358_v37, %v8356_v7  ;;  %v11126_v7 = vld [vmem:[#allocation52_spill] sm:$0xff]  ;;  %v11127_v37 = vld [vmem:[#allocation33_spill] sm:$0xff] }
 0xbaf   :  { %5864 = vmatmul.mubr.f32.vlgmr.msra.gmra.mrb[20].mxu1 %v3597_v40  ;;  %3737 = vmatmul.mubr.f32.vlgmr.msra.gmra.mrb[22].mxu0 %v3597_v40 }
 0xbb0   :  { %7404 = vmatpush1.bf16.msra.mxu1 %v9778_v15  ;;  %7436 = vmatpush1.bf16.msra.mxu0 %v9881_v14 }
 0xbb1   :  { %7406 = vmatprep.subr.bf16.mxu1 %v9785_v42  ;;  %7438 = vmatprep.subr.bf16.mxu0 %v9885_v59 }
 0xbb2   :  { %3807 = vmatprep.mubr.f32.mxu1 %v9901_v41  ;;  %3878 = vmatprep.mubr.f32.mxu0 %v9901_v41 }
 0xbb4   :  { %7408 = vmatpush1.bf16.msra.mxu1 %v9790_v19  ;;  %7440 = vmatpush1.bf16.msra.mxu0 %v9891_v8 }
 0xbb5   :  { %7410 = vmatprep.subr.bf16.mxu1 %v9797_v36  ;;  %7442 = vmatprep.subr.bf16.mxu0 %v9897_v27 }
 0xbb8   :  { %7412 = vmatpush1.bf16.msra.mxu1 %v9802_v63  ;;  %7444 = vmatpush1.bf16.msra.mxu0 %v9907_v62 }
 0xbb9   :  { %7414 = vmatprep.subr.bf16.mxu1 %v9809_v13  ;;  %7446 = vmatprep.subr.bf16.mxu0 %v9913_v49 }
 0xbbc   :  { %7416 = vmatpush1.bf16.msra.mxu1 %v9814_v26  ;;  %7448 = vmatpush1.bf16.msra.mxu0 %v9919_v9 }
 0xbbd   :  { %7418 = vmatprep.subr.bf16.mxu1 %v9821_v45  ;;  %7450 = vmatprep.subr.bf16.mxu0 %v9925_v29 }
 0xbc0   :  { %7420 = vmatpush1.bf16.msra.mxu1 %v9826_v10  ;;  %7452 = vmatpush1.bf16.msra.mxu0 %v9931_v28 }
 0xbc1   :  { %7422 = vmatprep.subr.bf16.mxu1 %v9833_v32  ;;  %7454 = vmatprep.subr.bf16.mxu0 %v9937_v52 }
 0xbc4   :  { %7424 = vmatpush1.bf16.msra.mxu1 %v9838_v6  ;;  %7456 = vmatpush1.bf16.msra.mxu0 %v9943_v60 }
 0xbc5   :  { %7426 = vmatprep.subr.bf16.mxu1 %v9844_v58  ;;  %7458 = vmatprep.subr.bf16.mxu0 %v9949_v43 }
 0xbc8   :  { %7428 = vmatpush1.bf16.msra.mxu1 %v9851_v20  ;;  %7460 = vmatpush1.bf16.msra.mxu0 %v9955_v1 }
 0xbc9   :  { %7430 = vmatprep.subr.bf16.mxu1 %v11082_v47  ;;  %7462 = vmatprep.subr.bf16.mxu0 %v9961_v33 }
 0xbcc   :  { %7432 = vmatpush1.bf16.msra.mxu1 %v11083_v46  ;;  %7464 = vmatpush1.bf16.msra.mxu0 %v9967_v51 }
 0xbcd   :  { %7466 = vmatprep.subr.bf16.mxu1 %v11084_v21  ;;  %7497 = vmatprep.subr.bf16.mxu0 %v11085_v56 }
 0xbcf   :  { %3808 = vmatmul.mubr.f32.vlgmr.msra.gmra.mrb[22].mxu1 %v3597_v40  ;;  %3879 = vmatmul.mubr.f32.vlgmr.msra.gmra.mrb[22].mxu0 %v5657_v4  ;;  %v11128_v40 = vld [vmem:[#allocation34_spill] sm:$0xff] }
 0xbd0   :  { %7468 = vmatpush1.bf16.msra.mxu1 %v11086_v0  ;;  %3949 = vmatprep.mubr.f32.mxu1 %v9901_v41 }
 0xbd1   :  { %7470 = vmatprep.subr.bf16.mxu1 %v11087_v44  ;;  %7499 = vmatpush3.bf16.msra.mxu0 %v10002_v53 }
 0xbd2   :  { %7500 = vmatprep.subr.bf16.mxu0 %v11085_v56  ;;  %5898 = vmatprep.mubr.msk.f32.mxu0 %vm8521_vm0, %v9901_v41 }
 0xbd4   :  { %7472 = vmatpush1.bf16.msra.mxu1 %v11088_v17 }
 0xbd5   :  { %7474 = vmatprep.subr.bf16.mxu1 %v11089_v24  ;;  %7502 = vmatpush3.bf16.msra.mxu0 %v10013_v16 }
 0xbd6   :  { %7503 = vmatprep.subr.bf16.mxu0 %v11085_v56 }
 0xbd8   :  { %7476 = vmatpush1.bf16.msra.mxu1 %v11090_v55 }
 0xbd9   :  { %7478 = vmatprep.subr.bf16.mxu1 %v11091_v34  ;;  %7505 = vmatpush3.bf16.msra.mxu0 %v10023_v22 }
 0xbda   :  { %7506 = vmatprep.subr.bf16.mxu0 %v11085_v56 }
 0xbdc   :  { %7480 = vmatpush1.bf16.msra.mxu1 %v11092_v31 }
 0xbdd   :  { %7482 = vmatprep.subr.bf16.mxu1 %v11093_v39  ;;  %7508 = vmatpush3.bf16.msra.mxu0 %v10033_v3 }
 0xbde   :  { %7509 = vmatprep.subr.bf16.mxu0 %v11085_v56 }
 0xbe0   :  { %7484 = vmatpush1.bf16.msra.mxu1 %v11115_v12 }
 0xbe1   :  { %7486 = vmatprep.subr.bf16.mxu1 %v11116_v50  ;;  %7511 = vmatpush3.bf16.msra.mxu0 %v11117_v2 }
 0xbe2   :  { %7512 = vmatprep.subr.bf16.mxu0 %v11085_v56 }
 0xbe4   :  { %7488 = vmatpush1.bf16.msra.mxu1 %v11118_v23 }
 0xbe5   :  { %7490 = vmatprep.subr.bf16.mxu1 %v11119_v11  ;;  %7514 = vmatpush3.bf16.msra.mxu0 %v11120_v5  ;;  %v11132_v5 = vld [vmem:[#allocation38_spill] sm:$0xff]  ;;  %v11139_v11 = vld [vmem:[#allocation15_spill] sm:$0xff] }
 0xbe6   :  { %7515 = vmatprep.subr.bf16.mxu0 %v11085_v56 }
 0xbe8   :  { %7492 = vmatpush1.bf16.msra.mxu1 %v11121_v61  ;;  %v11129_v61 = vld [vmem:[#allocation35_spill] sm:$0xff] }
 0xbe9   :  { %7494 = vmatprep.subr.bf16.mxu1 %v11122_v30  ;;  %7517 = vmatpush3.bf16.msra.mxu0 %v11123_v57  ;;  %v11130_v30 = vld [vmem:[#allocation36_spill] sm:$0xff]  ;;  %v11131_v57 = vld [vmem:[#allocation37_spill] sm:$0xff] }
 0xbea   :  { %7518 = vmatprep.subr.bf16.mxu0 %v11085_v56 }
 0xbec   :  { %7496 = vmatpush1.bf16.msra.mxu1 %v11124_v18  ;;  %v11133_v18 = vld [vmem:[#allocation41_spill] sm:$0xff] }
 0xbed   :  { %7522 = vmatprep.subr.bf16.mxu1 %v11125_v35  ;;  %7520 = vmatpush3.bf16.msra.mxu0 %v11126_v7  ;;  %v11134_v35 = vld [vmem:[#allocation42_spill] sm:$0xff]  ;;  %v11135_v7 = vld [vmem:[#allocation11_spill] sm:$0xff] }
 0xbee   :  { %7554 = vmatprep.subr.bf16.mxu0 %v11127_v37  ;;  %v11136_v37 = vld [vmem:[#allocation12_spill] sm:$0xff] }
 0xbef   :  { %3950 = vmatmul.mubr.f32.vlgmr.msra.gmra.mrb[22].mxu1 %v5657_v4  ;;  %v11137_v4 = vld [vmem:[#allocation13_spill] sm:$0xff] }
 0xbf0   :  { %7524 = vmatpush1.bf16.msra.mxu1 %v11128_v40  ;;  %4122 = vmatprep.mubr.f32.mxu1 %v9901_v41  ;;  %v11138_v40 = vld [vmem:[#allocation14_spill] sm:$0xff] }
 0xbf1   :  { %7526 = vmatprep.subr.bf16.mxu1 %v11129_v61  ;;  %v11140_v61 = vld [vmem:[#allocation16_spill] sm:$0xff] }
 0xbf4   :  { %7528 = vmatpush1.bf16.msra.mxu1 %v11130_v30  ;;  %v11141_v30 = vld [vmem:[#allocation17_spill] sm:$0xff] }
 0xbf5   :  { %7530 = vmatprep.subr.bf16.mxu1 %v11131_v57  ;;  %v11142_v57 = vld [vmem:[#allocation19_spill] sm:$0xff] }
 0xbf8   :  { %7532 = vmatpush1.bf16.msra.mxu1 %v11132_v5  ;;  %v11143_v5 = vld [vmem:[#allocation21_spill] sm:$0xff] }
 0xbf9   :  { %7534 = vmatprep.subr.bf16.mxu1 %v11133_v18 }
 0xbfc   :  { %7536 = vmatpush1.bf16.msra.mxu1 %v11134_v35  ;;  %v11144_v35 = vld [vmem:[#allocation18_spill] sm:$0xff] }
 0xbfd   :  { %7538 = vmatprep.subr.bf16.mxu1 %v11135_v7 }
 0xc00   :  { %7540 = vmatpush1.bf16.msra.mxu1 %v11136_v37 }
 0xc01   :  { %7542 = vmatprep.subr.bf16.mxu1 %v11137_v4 }
 0xc04   :  { %7544 = vmatpush1.bf16.msra.mxu1 %v11138_v40  ;;  %v11145_v40 = vld [vmem:[#allocation39_spill] sm:$0xff] }
 0xc05   :  { %7546 = vmatprep.subr.bf16.mxu1 %v11139_v11 }
 0xc08   :  { %7548 = vmatpush1.bf16.msra.mxu1 %v11140_v61 }
 0xc09   :  { %7550 = vmatprep.subr.bf16.mxu1 %v11141_v30 }
 0xc0c   :  { %7552 = vmatpush1.bf16.msra.mxu1 %v11142_v57 }
 0xc0d   :  { %7586 = vmatprep.subr.bf16.mxu1 %v11143_v5 }
 0xc82   :  { %v3664_v18 = vpop.f32.mrb[20].mxu1 }
 0xc83   :  { %v3665_v23 = vadd.f32 %v11144_v35, %v3664_v18  ;;  %v5865_v7 = vpop.f32.mrb[21].mxu1 }
 0xc85   :  { %3669 = vst [vmem:[#allocation7 + $0x10] sm:$0xff] %v3665_v23 }
 0xca2   :  { %v3880_v37 = vpop.f32.mrb[22].mxu0 }
 0xca3   :  { %v3882_v2 = vpop.f32.mrb[23].mxu0  ;;  %v3956_v50 = vadd.f32 %v3880_v37, %v11145_v40 }
 0xca4   :  { %v3957_v4 = vadd.f32 %v3882_v2, %v10088_v38 }
 0xca5   :  { %v5658_v12 = vmul.f32 -1.442695, %v3956_v50 }
 0xca6   :  { %v5659_v11 = vmul.f32 -1.442695, %v3957_v4 }
 0xca8   :  { %8359 = vpow2.f32 %v5659_v11 }
 0xca9   :  { %8361 = vpow2.f32 %v5658_v12 }
 0xcb2   :  { %v8360_v30 = vpop.eup %8359 }
 0xcb3   :  { %v8362_v61 = vpop.eup %8361  ;;  %v3969_v57 = vadd.f32 1.0, %v8360_v30 }
 0xcb4   :  { %v3963_v3 = vadd.f32 1.0, %v8362_v61 }
 0xcb5   :  { %8363 = vrcp.f32 %v3969_v57 }
 0xcb6   :  { %8365 = vrcp.f32 %v3963_v3 }
 0xcbf   :  { %v8364_v37 = vpop.eup %8363 }
 0xcc0   :  { %v8366_v4 = vpop.eup %8365  ;;  %v3979_v12 = vmul.f32 %v8364_v37, %v10206_v25  ;;  %v5661_v25 = vld [vmem:[%s10698_s1 + $0x18] sm:$0xff] }
 0xcc1   :  { %v11152_v37 = vld [vmem:[#allocation50_spill] sm:$0xff] }
 0xcc2   :  { %v3951_v5 = vpop.f32.mrb[22].mxu1 }
 0xcc3   :  { %v3958_v18 = vadd.f32 %v3951_v5, %v10099_v48  ;;  %v3953_v7 = vpop.f32.mrb[23].mxu1 }
 0xcc4   :  { %v3959_v23 = vadd.f32 %v3953_v7, %v11114_v54  ;;  %v11149_v7 = vld [vmem:[#allocation49_spill] sm:$0xff] }
 0xcc5   :  { %8367 = vtanh.f32 %v3958_v18  ;;  %v11148_v18 = vld [vmem:[#allocation40_spill] sm:$0xff] }
 0xcc6   :  { %v5660_v2 = vmul.f32 -1.442695, %v3959_v23  ;;  %v11150_v23 = vld [vmem:[#allocation43_spill] sm:$0xff] }
 0xcc8   :  { %8369 = vpow2.f32 %v5660_v2  ;;  %v11151_v2 = vld [vmem:[#allocation44_spill] sm:$0xff] }
 0xccf   :  { %v8368_v50 = vpop.eup %8367 }
 0xcd0   :  { %v3980_v11 = vmul.f32 %v8368_v50, %v8366_v4  ;;  %v11153_v4 = vld [vmem:[#allocation45_spill] sm:$0xff]  ;;  %v11154_v50 = vld [vmem:[#allocation46_spill] sm:$0xff] }
 0xcd2   :  { %v8370_v40 = vpop.eup %8369  ;;  %v10304_v30 = vadd.f32 %v3980_v11, %v3979_v12  ;;  %v11155_v12 = vld [vmem:[#allocation51_spill] sm:$0xff] }
 0xcd3   :  { %v3976_v61 = vadd.f32 1.0, %v8370_v40  ;;  %v11147_v40 = vld [vmem:[#allocation31_spill] sm:$0xff] }
 0xcd4   :  { %8371 = vtanh.f32 %v10304_v30  ;;  %v11156_v11 = vld [vmem:[#allocation47_spill] sm:$0xff] }
 0xcd5   :  { %8373 = vrcp.f32 %v3976_v61  ;;  %v11157_v61 = vld [vmem:[#allocation32_spill] sm:$0xff] }
 0xcde   :  { %v8372_v5 = vpop.eup %8371 }
 0xcdf   :  { %v8374_v3 = vpop.eup %8373 }
 0xce0   :  { %v3983_v57 = vmul.f32 %v8374_v3, %v8372_v5  ;;  %v11158_v5 = vld [vmem:[#allocation52_spill] sm:$0xff]  ;;  %v11159_v3 = vld [vmem:[#allocation33_spill] sm:$0xff] }
 0xce2   :  { %5899 = vmatmul.mubr.f32.vlgmr.msra.gmra.mrb[24].mxu0 %v3983_v57  ;;  %4123 = vmatmul.mubr.f32.vlgmr.msra.gmra.mrb[24].mxu1 %v3983_v57 }
 0xce3   :  { %7556 = vmatpush1.bf16.msra.mxu0 %v9778_v15  ;;  %7588 = vmatpush1.bf16.msra.mxu1 %v9881_v14 }
 0xce4   :  { %7558 = vmatprep.subr.bf16.mxu0 %v9785_v42  ;;  %7590 = vmatprep.subr.bf16.mxu1 %v9885_v59 }
 0xce5   :  { %4193 = vmatprep.mubr.f32.mxu0 %v9901_v41  ;;  %4264 = vmatprep.mubr.f32.mxu1 %v9901_v41 }
 0xce7   :  { %7560 = vmatpush1.bf16.msra.mxu0 %v9790_v19  ;;  %7592 = vmatpush1.bf16.msra.mxu1 %v9891_v8 }
 0xce8   :  { %7562 = vmatprep.subr.bf16.mxu0 %v9797_v36  ;;  %7594 = vmatprep.subr.bf16.mxu1 %v9897_v27 }
 0xceb   :  { %7564 = vmatpush1.bf16.msra.mxu0 %v9802_v63  ;;  %7596 = vmatpush1.bf16.msra.mxu1 %v9907_v62 }
 0xcec   :  { %7566 = vmatprep.subr.bf16.mxu0 %v9809_v13  ;;  %7598 = vmatprep.subr.bf16.mxu1 %v9913_v49 }
 0xcef   :  { %7568 = vmatpush1.bf16.msra.mxu0 %v9814_v26  ;;  %7600 = vmatpush1.bf16.msra.mxu1 %v9919_v9 }
 0xcf0   :  { %7570 = vmatprep.subr.bf16.mxu0 %v9821_v45  ;;  %7602 = vmatprep.subr.bf16.mxu1 %v9925_v29 }
 0xcf3   :  { %7572 = vmatpush1.bf16.msra.mxu0 %v9826_v10  ;;  %7604 = vmatpush1.bf16.msra.mxu1 %v9931_v28 }
 0xcf4   :  { %7574 = vmatprep.subr.bf16.mxu0 %v9833_v32  ;;  %7606 = vmatprep.subr.bf16.mxu1 %v9937_v52 }
 0xcf7   :  { %7576 = vmatpush1.bf16.msra.mxu0 %v9838_v6  ;;  %7608 = vmatpush1.bf16.msra.mxu1 %v9943_v60 }
 0xcf8   :  { %7578 = vmatprep.subr.bf16.mxu0 %v9844_v58  ;;  %7610 = vmatprep.subr.bf16.mxu1 %v9949_v43 }
 0xcfb   :  { %7580 = vmatpush1.bf16.msra.mxu0 %v9851_v20  ;;  %7612 = vmatpush1.bf16.msra.mxu1 %v9955_v1 }
 0xcfc   :  { %7582 = vmatprep.subr.bf16.mxu0 %v11082_v47  ;;  %7614 = vmatprep.subr.bf16.mxu1 %v9961_v33 }
 0xcff   :  { %7584 = vmatpush1.bf16.msra.mxu0 %v11083_v46  ;;  %7616 = vmatpush1.bf16.msra.mxu1 %v9967_v51 }
 0xd00   :  { %7618 = vmatprep.subr.bf16.mxu0 %v11084_v21  ;;  %7649 = vmatprep.subr.bf16.mxu1 %v11085_v56 }
 0xd02   :  { %4194 = vmatmul.mubr.f32.vlgmr.msra.gmra.mrb[26].mxu0 %v3983_v57  ;;  %4265 = vmatmul.mubr.f32.vlgmr.msra.gmra.mrb[24].mxu1 %v5661_v25  ;;  %v11160_v57 = vld [vmem:[#allocation34_spill] sm:$0xff] }
 0xd03   :  { %7620 = vmatpush1.bf16.msra.mxu0 %v11086_v0  ;;  %4335 = vmatprep.mubr.f32.mxu0 %v9901_v41 }
 0xd04   :  { %7622 = vmatprep.subr.bf16.mxu0 %v11087_v44  ;;  %7651 = vmatpush3.bf16.msra.mxu1 %v10002_v53 }
 0xd05   :  { %7652 = vmatprep.subr.bf16.mxu1 %v11085_v56  ;;  %5933 = vmatprep.mubr.msk.f32.mxu1 %vm8521_vm0, %v9901_v41  ;;  %v11146_v41 = vld [vmem:[#allocation48_spill] sm:$0xff] }
 0xd07   :  { %7624 = vmatpush1.bf16.msra.mxu0 %v11088_v17 }
 0xd08   :  { %7626 = vmatprep.subr.bf16.mxu0 %v11089_v24  ;;  %7654 = vmatpush3.bf16.msra.mxu1 %v10013_v16 }
 0xd09   :  { %7655 = vmatprep.subr.bf16.mxu1 %v11085_v56 }
 0xd0b   :  { %7628 = vmatpush1.bf16.msra.mxu0 %v11090_v55 }
 0xd0c   :  { %7630 = vmatprep.subr.bf16.mxu0 %v11091_v34  ;;  %7657 = vmatpush3.bf16.msra.mxu1 %v10023_v22 }
 0xd0d   :  { %7658 = vmatprep.subr.bf16.mxu1 %v11085_v56 }
 0xd0f   :  { %7632 = vmatpush1.bf16.msra.mxu0 %v11092_v31 }
 0xd10   :  { %7634 = vmatprep.subr.bf16.mxu0 %v11093_v39  ;;  %7660 = vmatpush3.bf16.msra.mxu1 %v11146_v41 }
 0xd11   :  { %7661 = vmatprep.subr.bf16.mxu1 %v11085_v56 }
 0xd13   :  { %7636 = vmatpush1.bf16.msra.mxu0 %v11147_v40 }
 0xd14   :  { %7638 = vmatprep.subr.bf16.mxu0 %v11148_v18  ;;  %7663 = vmatpush3.bf16.msra.mxu1 %v11149_v7 }
 0xd15   :  { %7664 = vmatprep.subr.bf16.mxu1 %v11085_v56 }
 0xd17   :  { %7640 = vmatpush1.bf16.msra.mxu0 %v11150_v23  ;;  %v11171_v23 = vld [vmem:[#allocation15_spill] sm:$0xff] }
 0xd18   :  { %7642 = vmatprep.subr.bf16.mxu0 %v11151_v2  ;;  %7666 = vmatpush3.bf16.msra.mxu1 %v11152_v37  ;;  %v10380_v37 = vld [vmem:[#allocation7] sm:$0xff]  ;;  %v11170_v2 = vld [vmem:[#allocation14_spill] sm:$0xff] }
 0xd19   :  { %7667 = vmatprep.subr.bf16.mxu1 %v11085_v56 }
 0xd1b   :  { %7644 = vmatpush1.bf16.msra.mxu0 %v11153_v4  ;;  %v11163_v4 = vld [vmem:[#allocation37_spill] sm:$0xff] }
 0xd1c   :  { %7646 = vmatprep.subr.bf16.mxu0 %v11154_v50  ;;  %7669 = vmatpush3.bf16.msra.mxu1 %v11155_v12  ;;  %v11161_v50 = vld [vmem:[#allocation35_spill] sm:$0xff]  ;;  %v11162_v12 = vld [vmem:[#allocation36_spill] sm:$0xff] }
 0xd1d   :  { %7670 = vmatprep.subr.bf16.mxu1 %v11085_v56 }
 0xd1f   :  { %7648 = vmatpush1.bf16.msra.mxu0 %v11156_v11  ;;  %v11164_v11 = vld [vmem:[#allocation38_spill] sm:$0xff] }
 0xd20   :  { %7674 = vmatprep.subr.bf16.mxu0 %v11157_v61  ;;  %7672 = vmatpush3.bf16.msra.mxu1 %v11158_v5  ;;  %v11165_v61 = vld [vmem:[#allocation41_spill] sm:$0xff]  ;;  %v11166_v5 = vld [vmem:[#allocation42_spill] sm:$0xff] }
 0xd21   :  { %7706 = vmatprep.subr.bf16.mxu1 %v11159_v3  ;;  %v11167_v3 = vld [vmem:[#allocation11_spill] sm:$0xff] }
 0xd22   :  { %4336 = vmatmul.mubr.f32.vlgmr.msra.gmra.mrb[26].mxu0 %v5661_v25  ;;  %v11168_v25 = vld [vmem:[#allocation12_spill] sm:$0xff] }
 0xd23   :  { %7676 = vmatpush1.bf16.msra.mxu0 %v11160_v57  ;;  %4508 = vmatprep.mubr.f32.mxu0 %v10380_v37  ;;  %v11169_v57 = vld [vmem:[#allocation13_spill] sm:$0xff] }
 0xd24   :  { %7678 = vmatprep.subr.bf16.mxu0 %v11161_v50  ;;  %v11172_v50 = vld [vmem:[#allocation16_spill] sm:$0xff] }
 0xd27   :  { %7680 = vmatpush1.bf16.msra.mxu0 %v11162_v12  ;;  %v11173_v12 = vld [vmem:[#allocation17_spill] sm:$0xff] }
 0xd28   :  { %7682 = vmatprep.subr.bf16.mxu0 %v11163_v4  ;;  %v11174_v4 = vld [vmem:[#allocation19_spill] sm:$0xff] }
 0xd2b   :  { %7684 = vmatpush1.bf16.msra.mxu0 %v11164_v11  ;;  %v11175_v11 = vld [vmem:[#allocation21_spill] sm:$0xff] }
 0xd2c   :  { %7686 = vmatprep.subr.bf16.mxu0 %v11165_v61 }
 0xd2f   :  { %7688 = vmatpush1.bf16.msra.mxu0 %v11166_v5 }
 0xd30   :  { %7690 = vmatprep.subr.bf16.mxu0 %v11167_v3 }
 0xd33   :  { %7692 = vmatpush1.bf16.msra.mxu0 %v11168_v25 }
 0xd34   :  { %7694 = vmatprep.subr.bf16.mxu0 %v11169_v57 }
 0xd37   :  { %7696 = vmatpush1.bf16.msra.mxu0 %v11170_v2  ;;  %v11176_v2 = vld [vmem:[#allocation39_spill] sm:$0xff] }
 0xd38   :  { %7698 = vmatprep.subr.bf16.mxu0 %v11171_v23 }
 0xd3b   :  { %7700 = vmatpush1.bf16.msra.mxu0 %v11172_v50 }
 0xd3c   :  { %7702 = vmatprep.subr.bf16.mxu0 %v11173_v12 }
 0xd3f   :  { %7704 = vmatpush1.bf16.msra.mxu0 %v11174_v4 }
 0xd40   :  { %7738 = vmatprep.subr.bf16.mxu0 %v11175_v11 }
 0xdb5   :  { %v4050_v61 = vpop.f32.mrb[24].mxu0 }
 0xdb6   :  { %v4051_v5 = vadd.f32 %v11144_v35, %v4050_v61  ;;  %v5900_v3 = vpop.f32.mrb[25].mxu0 }
 0xdb8   :  { %4055 = vst [vmem:[#allocation7 + $0x18] sm:$0xff] %v4051_v5 }
 0xdd5   :  { %v4266_v25 = vpop.f32.mrb[24].mxu1 }
 0xdd6   :  { %v4268_v7 = vpop.f32.mrb[25].mxu1  ;;  %v4342_v18 = vadd.f32 %v4266_v25, %v11176_v2 }
 0xdd7   :  { %v4343_v57 = vadd.f32 %v4268_v7, %v10088_v38 }
 0xdd8   :  { %v5662_v40 = vmul.f32 -1.442695, %v4342_v18 }
 0xdd9   :  { %v5663_v23 = vmul.f32 -1.442695, %v4343_v57 }
 0xddb   :  { %8375 = vpow2.f32 %v5663_v23 }
 0xddc   :  { %8377 = vpow2.f32 %v5662_v40 }
 0xde5   :  { %v8376_v12 = vpop.eup %8375 }
 0xde6   :  { %v8378_v50 = vpop.eup %8377  ;;  %v4355_v4 = vadd.f32 1.0, %v8376_v12 }
 0xde7   :  { %v4349_v41 = vadd.f32 1.0, %v8378_v50 }
 0xde8   :  { %8379 = vrcp.f32 %v4355_v4 }
 0xde9   :  { %8381 = vrcp.f32 %v4349_v41 }
 0xdf2   :  { %v8380_v25 = vpop.eup %8379 }
 0xdf3   :  { %v8382_v57 = vpop.eup %8381  ;;  %v4365_v40 = vmul.f32 %v8380_v25, %v10304_v30  ;;  %v5665_v30 = vld [vmem:[%s10698_s1 + $0x20] sm:$0xff]  ;;  %v11182_v25 = vld [vmem:[#allocation44_spill] sm:$0xff] }
 0xdf5   :  { %v4337_v11 = vpop.f32.mrb[26].mxu0 }
 0xdf6   :  { %v4344_v61 = vadd.f32 %v4337_v11, %v10099_v48  ;;  %v4339_v3 = vpop.f32.mrb[27].mxu0 }
 0xdf7   :  { %v4345_v5 = vadd.f32 %v4339_v3, %v11114_v54  ;;  %v11179_v3 = vld [vmem:[#allocation40_spill] sm:$0xff] }
 0xdf8   :  { %8383 = vtanh.f32 %v4344_v61  ;;  %v11178_v61 = vld [vmem:[#allocation31_spill] sm:$0xff] }
 0xdf9   :  { %v5664_v7 = vmul.f32 -1.442695, %v4345_v5  ;;  %v11180_v5 = vld [vmem:[#allocation49_spill] sm:$0xff] }
 0xdfb   :  { %8385 = vpow2.f32 %v5664_v7  ;;  %v11181_v7 = vld [vmem:[#allocation43_spill] sm:$0xff] }
 0xe02   :  { %v8384_v18 = vpop.eup %8383 }
 0xe03   :  { %v4366_v23 = vmul.f32 %v8384_v18, %v8382_v57  ;;  %v11183_v57 = vld [vmem:[#allocation50_spill] sm:$0xff]  ;;  %v11184_v18 = vld [vmem:[#allocation45_spill] sm:$0xff] }
 0xe05   :  { %v8386_v2 = vpop.eup %8385  ;;  %v10404_v12 = vadd.f32 %v4366_v23, %v4365_v40  ;;  %v11185_v40 = vld [vmem:[#allocation46_spill] sm:$0xff]  ;;  %v11186_v23 = vld [vmem:[#allocation51_spill] sm:$0xff] }
 0xe06   :  { %v4362_v50 = vadd.f32 1.0, %v8386_v2  ;;  %v11177_v2 = vld [vmem:[#allocation48_spill] sm:$0xff] }
 0xe07   :  { %8387 = vtanh.f32 %v10404_v12 }
 0xe08   :  { %8389 = vrcp.f32 %v4362_v50  ;;  %v11187_v50 = vld [vmem:[#allocation47_spill] sm:$0xff] }
 0xe11   :  { %v8388_v4 = vpop.eup %8387 }
 0xe12   :  { %v8390_v41 = vpop.eup %8389 }
 0xe13   :  { %v4369_v11 = vmul.f32 %v8390_v41, %v8388_v4  ;;  %v11188_v4 = vld [vmem:[#allocation32_spill] sm:$0xff] }
 0xe14   :  { %v11189_v41 = vld [vmem:[#allocation52_spill] sm:$0xff] }
 0xe15   :  { %5934 = vmatmul.mubr.f32.vlgmr.msra.gmra.mrb[26].mxu1 %v4369_v11  ;;  %4509 = vmatmul.mubr.f32.vlgmr.msra.gmra.mrb[28].mxu0 %v4369_v11 }
 0xe16   :  { %7708 = vmatpush1.bf16.msra.mxu1 %v9778_v15  ;;  %7740 = vmatpush1.bf16.msra.mxu0 %v9881_v14 }
 0xe17   :  { %7710 = vmatprep.subr.bf16.mxu1 %v9785_v42  ;;  %7742 = vmatprep.subr.bf16.mxu0 %v9885_v59 }
 0xe18   :  { %4579 = vmatprep.mubr.f32.mxu1 %v10380_v37  ;;  %4650 = vmatprep.mubr.f32.mxu0 %v10380_v37 }
 0xe1a   :  { %7712 = vmatpush1.bf16.msra.mxu1 %v9790_v19  ;;  %7744 = vmatpush1.bf16.msra.mxu0 %v9891_v8 }
 0xe1b   :  { %7714 = vmatprep.subr.bf16.mxu1 %v9797_v36  ;;  %7746 = vmatprep.subr.bf16.mxu0 %v9897_v27 }
 0xe1e   :  { %7716 = vmatpush1.bf16.msra.mxu1 %v9802_v63  ;;  %7748 = vmatpush1.bf16.msra.mxu0 %v9907_v62 }
 0xe1f   :  { %7718 = vmatprep.subr.bf16.mxu1 %v9809_v13  ;;  %7750 = vmatprep.subr.bf16.mxu0 %v9913_v49 }
 0xe22   :  { %7720 = vmatpush1.bf16.msra.mxu1 %v9814_v26  ;;  %7752 = vmatpush1.bf16.msra.mxu0 %v9919_v9 }
 0xe23   :  { %7722 = vmatprep.subr.bf16.mxu1 %v9821_v45  ;;  %7754 = vmatprep.subr.bf16.mxu0 %v9925_v29 }
 0xe26   :  { %7724 = vmatpush1.bf16.msra.mxu1 %v9826_v10  ;;  %7756 = vmatpush1.bf16.msra.mxu0 %v9931_v28 }
 0xe27   :  { %7726 = vmatprep.subr.bf16.mxu1 %v9833_v32  ;;  %7758 = vmatprep.subr.bf16.mxu0 %v9937_v52 }
 0xe2a   :  { %7728 = vmatpush1.bf16.msra.mxu1 %v9838_v6  ;;  %7760 = vmatpush1.bf16.msra.mxu0 %v9943_v60 }
 0xe2b   :  { %7730 = vmatprep.subr.bf16.mxu1 %v9844_v58  ;;  %7762 = vmatprep.subr.bf16.mxu0 %v9949_v43 }
 0xe2e   :  { %7732 = vmatpush1.bf16.msra.mxu1 %v9851_v20  ;;  %7764 = vmatpush1.bf16.msra.mxu0 %v9955_v1 }
 0xe2f   :  { %7734 = vmatprep.subr.bf16.mxu1 %v11082_v47  ;;  %7766 = vmatprep.subr.bf16.mxu0 %v9961_v33 }
 0xe32   :  { %7736 = vmatpush1.bf16.msra.mxu1 %v11083_v46  ;;  %7768 = vmatpush1.bf16.msra.mxu0 %v9967_v51 }
 0xe33   :  { %7770 = vmatprep.subr.bf16.mxu1 %v11084_v21  ;;  %7801 = vmatprep.subr.bf16.mxu0 %v11085_v56 }
 0xe35   :  { %4580 = vmatmul.mubr.f32.vlgmr.msra.gmra.mrb[28].mxu1 %v4369_v11  ;;  %4651 = vmatmul.mubr.f32.vlgmr.msra.gmra.mrb[28].mxu0 %v5665_v30  ;;  %v11190_v11 = vld [vmem:[#allocation33_spill] sm:$0xff] }
 0xe36   :  { %7772 = vmatpush1.bf16.msra.mxu1 %v11086_v0  ;;  %4721 = vmatprep.mubr.f32.mxu1 %v10380_v37 }
 0xe37   :  { %7774 = vmatprep.subr.bf16.mxu1 %v11087_v44  ;;  %7803 = vmatpush3.bf16.msra.mxu0 %v10002_v53 }
 0xe38   :  { %7804 = vmatprep.subr.bf16.mxu0 %v11085_v56  ;;  %5968 = vmatprep.mubr.msk.f32.mxu0 %vm8521_vm0, %v10380_v37 }
 0xe3a   :  { %7776 = vmatpush1.bf16.msra.mxu1 %v11088_v17 }
 0xe3b   :  { %7778 = vmatprep.subr.bf16.mxu1 %v11089_v24  ;;  %7806 = vmatpush3.bf16.msra.mxu0 %v10013_v16 }
 0xe3c   :  { %7807 = vmatprep.subr.bf16.mxu0 %v11085_v56 }
 0xe3e   :  { %7780 = vmatpush1.bf16.msra.mxu1 %v11090_v55 }
 0xe3f   :  { %7782 = vmatprep.subr.bf16.mxu1 %v11091_v34  ;;  %7809 = vmatpush3.bf16.msra.mxu0 %v10023_v22 }
 0xe40   :  { %7810 = vmatprep.subr.bf16.mxu0 %v11085_v56 }
 0xe42   :  { %7784 = vmatpush1.bf16.msra.mxu1 %v11092_v31 }
 0xe43   :  { %7786 = vmatprep.subr.bf16.mxu1 %v11093_v39  ;;  %7812 = vmatpush3.bf16.msra.mxu0 %v11177_v2 }
 0xe44   :  { %7813 = vmatprep.subr.bf16.mxu0 %v11085_v56 }
 0xe46   :  { %7788 = vmatpush1.bf16.msra.mxu1 %v11178_v61 }
 0xe47   :  { %7790 = vmatprep.subr.bf16.mxu1 %v11179_v3  ;;  %7815 = vmatpush3.bf16.msra.mxu0 %v11180_v5 }
 0xe48   :  { %7816 = vmatprep.subr.bf16.mxu0 %v11085_v56 }
 0xe4a   :  { %7792 = vmatpush1.bf16.msra.mxu1 %v11181_v7  ;;  %v11202_v7 = vld [vmem:[#allocation15_spill] sm:$0xff] }
 0xe4b   :  { %7794 = vmatprep.subr.bf16.mxu1 %v11182_v25  ;;  %7818 = vmatpush3.bf16.msra.mxu0 %v11183_v57  ;;  %v11191_v57 = vld [vmem:[#allocation34_spill] sm:$0xff] }
 0xe4c   :  { %7819 = vmatprep.subr.bf16.mxu0 %v11085_v56  ;;  %v11195_v25 = vld [vmem:[#allocation38_spill] sm:$0xff] }
 0xe4e   :  { %7796 = vmatpush1.bf16.msra.mxu1 %v11184_v18  ;;  %v11192_v18 = vld [vmem:[#allocation35_spill] sm:$0xff] }
 0xe4f   :  { %7798 = vmatprep.subr.bf16.mxu1 %v11185_v40  ;;  %7821 = vmatpush3.bf16.msra.mxu0 %v11186_v23  ;;  %v11193_v40 = vld [vmem:[#allocation36_spill] sm:$0xff]  ;;  %v11194_v23 = vld [vmem:[#allocation37_spill] sm:$0xff] }
 0xe50   :  { %7822 = vmatprep.subr.bf16.mxu0 %v11085_v56 }
 0xe52   :  { %7800 = vmatpush1.bf16.msra.mxu1 %v11187_v50  ;;  %v11196_v50 = vld [vmem:[#allocation41_spill] sm:$0xff] }
 0xe53   :  { %7826 = vmatprep.subr.bf16.mxu1 %v11188_v4  ;;  %7824 = vmatpush3.bf16.msra.mxu0 %v11189_v41  ;;  %v11197_v4 = vld [vmem:[#allocation42_spill] sm:$0xff]  ;;  %v11198_v41 = vld [vmem:[#allocation11_spill] sm:$0xff] }
 0xe54   :  { %7858 = vmatprep.subr.bf16.mxu0 %v11190_v11  ;;  %v11199_v11 = vld [vmem:[#allocation12_spill] sm:$0xff] }
 0xe55   :  { %4722 = vmatmul.mubr.f32.vlgmr.msra.gmra.mrb[28].mxu1 %v5665_v30  ;;  %v11200_v30 = vld [vmem:[#allocation13_spill] sm:$0xff] }
 0xe56   :  { %7828 = vmatpush1.bf16.msra.mxu1 %v11191_v57  ;;  %4894 = vmatprep.mubr.f32.mxu1 %v10380_v37  ;;  %v11201_v57 = vld [vmem:[#allocation14_spill] sm:$0xff] }
 0xe57   :  { %7830 = vmatprep.subr.bf16.mxu1 %v11192_v18  ;;  %v11203_v18 = vld [vmem:[#allocation16_spill] sm:$0xff] }
 0xe5a   :  { %7832 = vmatpush1.bf16.msra.mxu1 %v11193_v40  ;;  %v11204_v40 = vld [vmem:[#allocation17_spill] sm:$0xff] }
 0xe5b   :  { %7834 = vmatprep.subr.bf16.mxu1 %v11194_v23  ;;  %v11205_v23 = vld [vmem:[#allocation19_spill] sm:$0xff] }
 0xe5e   :  { %7836 = vmatpush1.bf16.msra.mxu1 %v11195_v25  ;;  %v11206_v25 = vld [vmem:[#allocation21_spill] sm:$0xff] }
 0xe5f   :  { %7838 = vmatprep.subr.bf16.mxu1 %v11196_v50 }
 0xe62   :  { %7840 = vmatpush1.bf16.msra.mxu1 %v11197_v4 }
 0xe63   :  { %7842 = vmatprep.subr.bf16.mxu1 %v11198_v41 }
 0xe66   :  { %7844 = vmatpush1.bf16.msra.mxu1 %v11199_v11 }
 0xe67   :  { %7846 = vmatprep.subr.bf16.mxu1 %v11200_v30 }
 0xe6a   :  { %7848 = vmatpush1.bf16.msra.mxu1 %v11201_v57  ;;  %v11207_v57 = vld [vmem:[#allocation39_spill] sm:$0xff] }
 0xe6b   :  { %7850 = vmatprep.subr.bf16.mxu1 %v11202_v7 }
 0xe6e   :  { %7852 = vmatpush1.bf16.msra.mxu1 %v11203_v18 }
 0xe6f   :  { %7854 = vmatprep.subr.bf16.mxu1 %v11204_v40 }
 0xe72   :  { %7856 = vmatpush1.bf16.msra.mxu1 %v11205_v23 }
 0xe73   :  { %7890 = vmatprep.subr.bf16.mxu1 %v11206_v25 }
 0xee8   :  { %v4436_v50 = vpop.f32.mrb[26].mxu1 }
 0xee9   :  { %v4437_v4 = vadd.f32 %v11144_v35, %v4436_v50  ;;  %v5935_v41 = vpop.f32.mrb[27].mxu1 }
 0xeeb   :  { %4441 = vst [vmem:[#allocation7 + $0x20] sm:$0xff] %v4437_v4 }
 0xf08   :  { %v4652_v11 = vpop.f32.mrb[28].mxu0 }
 0xf09   :  { %v4654_v5 = vpop.f32.mrb[29].mxu0  ;;  %v4728_v3 = vadd.f32 %v4652_v11, %v11207_v57 }
 0xf0a   :  { %v4729_v30 = vadd.f32 %v4654_v5, %v10088_v38 }
 0xf0b   :  { %v5666_v61 = vmul.f32 -1.442695, %v4728_v3 }
 0xf0c   :  { %v5667_v7 = vmul.f32 -1.442695, %v4729_v30 }
 0xf0e   :  { %8391 = vpow2.f32 %v5667_v7 }
 0xf0f   :  { %8393 = vpow2.f32 %v5666_v61 }
 0xf18   :  { %v8392_v40 = vpop.eup %8391 }
 0xf19   :  { %v8394_v18 = vpop.eup %8393  ;;  %v4741_v23 = vadd.f32 1.0, %v8392_v40 }
 0xf1a   :  { %v4735_v2 = vadd.f32 1.0, %v8394_v18 }
 0xf1b   :  { %8395 = vrcp.f32 %v4741_v23 }
 0xf1c   :  { %8397 = vrcp.f32 %v4735_v2 }
 0xf25   :  { %v8396_v41 = vpop.eup %8395 }
 0xf26   :  { %v8398_v11 = vpop.eup %8397  ;;  %v4751_v61 = vmul.f32 %v8396_v41, %v10404_v12  ;;  %v5669_v12 = vld [vmem:[%s10698_s1 + $0x28] sm:$0xff]  ;;  %v11212_v41 = vld [vmem:[#allocation43_spill] sm:$0xff] }
 0xf28   :  { %v4723_v25 = vpop.f32.mrb[28].mxu1 }
 0xf29   :  { %v4730_v35 = vadd.f32 %v4723_v25, %v10099_v48  ;;  %v4725_v50 = vpop.f32.mrb[29].mxu1 }
 0xf2a   :  { %v4731_v4 = vadd.f32 %v4725_v50, %v11114_v54  ;;  %v11209_v50 = vld [vmem:[#allocation31_spill] sm:$0xff] }
 0xf2b   :  { %8399 = vtanh.f32 %v4730_v35  ;;  %v11208_v35 = vld [vmem:[#allocation48_spill] sm:$0xff] }
 0xf2c   :  { %v5668_v5 = vmul.f32 -1.442695, %v4731_v4  ;;  %v11210_v4 = vld [vmem:[#allocation40_spill] sm:$0xff] }
 0xf2e   :  { %8401 = vpow2.f32 %v5668_v5  ;;  %v11211_v5 = vld [vmem:[#allocation49_spill] sm:$0xff] }
 0xf35   :  { %v8400_v3 = vpop.eup %8399 }
 0xf36   :  { %v4752_v7 = vmul.f32 %v8400_v3, %v8398_v11  ;;  %v11213_v11 = vld [vmem:[#allocation44_spill] sm:$0xff]  ;;  %v11214_v3 = vld [vmem:[#allocation50_spill] sm:$0xff] }
 0xf38   :  { %v8402_v30 = vpop.eup %8401  ;;  %v10502_v40 = vadd.f32 %v4752_v7, %v4751_v61  ;;  %v11215_v61 = vld [vmem:[#allocation45_spill] sm:$0xff]  ;;  %v11216_v7 = vld [vmem:[#allocation46_spill] sm:$0xff] }
 0xf39   :  { %v4748_v18 = vadd.f32 1.0, %v8402_v30  ;;  %v11217_v30 = vld [vmem:[#allocation51_spill] sm:$0xff] }
 0xf3a   :  { %8403 = vtanh.f32 %v10502_v40 }
 0xf3b   :  { %8405 = vrcp.f32 %v4748_v18  ;;  %v11218_v18 = vld [vmem:[#allocation47_spill] sm:$0xff] }
 0xf44   :  { %v8404_v25 = vpop.eup %8403 }
 0xf45   :  { %v8406_v2 = vpop.eup %8405 }
 0xf46   :  { %v4755_v23 = vmul.f32 %v8406_v2, %v8404_v25  ;;  %v11219_v25 = vld [vmem:[#allocation32_spill] sm:$0xff] }
 0xf47   :  { %v11220_v2 = vld [vmem:[#allocation52_spill] sm:$0xff] }
 0xf48   :  { %5969 = vmatmul.mubr.f32.vlgmr.msra.gmra.mrb[30].mxu0 %v4755_v23  ;;  %4895 = vmatmul.mubr.f32.vlgmr.msra.gmra.mrb[30].mxu1 %v4755_v23 }
 0xf49   :  { %7860 = vmatpush1.bf16.msra.mxu0 %v9778_v15  ;;  %7892 = vmatpush1.bf16.msra.mxu1 %v9881_v14 }
 0xf4a   :  { %7862 = vmatprep.subr.bf16.mxu0 %v9785_v42  ;;  %7894 = vmatprep.subr.bf16.mxu1 %v9885_v59 }
 0xf4b   :  { %4965 = vmatprep.mubr.f32.mxu0 %v10380_v37  ;;  %5036 = vmatprep.mubr.f32.mxu1 %v10380_v37 }
 0xf4d   :  { %7864 = vmatpush1.bf16.msra.mxu0 %v9790_v19  ;;  %7896 = vmatpush1.bf16.msra.mxu1 %v9891_v8 }
 0xf4e   :  { %7866 = vmatprep.subr.bf16.mxu0 %v9797_v36  ;;  %7898 = vmatprep.subr.bf16.mxu1 %v9897_v27 }
 0xf51   :  { %7868 = vmatpush1.bf16.msra.mxu0 %v9802_v63  ;;  %7900 = vmatpush1.bf16.msra.mxu1 %v9907_v62 }
 0xf52   :  { %7870 = vmatprep.subr.bf16.mxu0 %v9809_v13  ;;  %7902 = vmatprep.subr.bf16.mxu1 %v9913_v49 }
 0xf55   :  { %7872 = vmatpush1.bf16.msra.mxu0 %v9814_v26  ;;  %7904 = vmatpush1.bf16.msra.mxu1 %v9919_v9 }
 0xf56   :  { %7874 = vmatprep.subr.bf16.mxu0 %v9821_v45  ;;  %7906 = vmatprep.subr.bf16.mxu1 %v9925_v29 }
 0xf59   :  { %7876 = vmatpush1.bf16.msra.mxu0 %v9826_v10  ;;  %7908 = vmatpush1.bf16.msra.mxu1 %v9931_v28 }
 0xf5a   :  { %7878 = vmatprep.subr.bf16.mxu0 %v9833_v32  ;;  %7910 = vmatprep.subr.bf16.mxu1 %v9937_v52 }
 0xf5d   :  { %7880 = vmatpush1.bf16.msra.mxu0 %v9838_v6  ;;  %7912 = vmatpush1.bf16.msra.mxu1 %v9943_v60 }
 0xf5e   :  { %7882 = vmatprep.subr.bf16.mxu0 %v9844_v58  ;;  %7914 = vmatprep.subr.bf16.mxu1 %v9949_v43 }
 0xf61   :  { %7884 = vmatpush1.bf16.msra.mxu0 %v9851_v20  ;;  %7916 = vmatpush1.bf16.msra.mxu1 %v9955_v1 }
 0xf62   :  { %7886 = vmatprep.subr.bf16.mxu0 %v11082_v47  ;;  %7918 = vmatprep.subr.bf16.mxu1 %v9961_v33 }
 0xf65   :  { %7888 = vmatpush1.bf16.msra.mxu0 %v11083_v46  ;;  %7920 = vmatpush1.bf16.msra.mxu1 %v9967_v51 }
 0xf66   :  { %7922 = vmatprep.subr.bf16.mxu0 %v11084_v21  ;;  %7953 = vmatprep.subr.bf16.mxu1 %v11085_v56 }
 0xf68   :  { %4966 = vmatmul.mubr.f32.vlgmr.msra.gmra.mrb[32].mxu0 %v4755_v23  ;;  %5037 = vmatmul.mubr.f32.vlgmr.msra.gmra.mrb[30].mxu1 %v5669_v12  ;;  %v11221_v23 = vld [vmem:[#allocation33_spill] sm:$0xff] }
 0xf69   :  { %7924 = vmatpush1.bf16.msra.mxu0 %v11086_v0  ;;  %5107 = vmatprep.mubr.f32.mxu0 %v10380_v37 }
 0xf6a   :  { %7926 = vmatprep.subr.bf16.mxu0 %v11087_v44  ;;  %7955 = vmatpush3.bf16.msra.mxu1 %v10002_v53 }
 0xf6b   :  { %7956 = vmatprep.subr.bf16.mxu1 %v11085_v56  ;;  %6003 = vmatprep.mubr.msk.f32.mxu1 %vm8521_vm0, %v10380_v37 }
 0xf6d   :  { %7928 = vmatpush1.bf16.msra.mxu0 %v11088_v17 }
 0xf6e   :  { %7930 = vmatprep.subr.bf16.mxu0 %v11089_v24  ;;  %7958 = vmatpush3.bf16.msra.mxu1 %v10013_v16 }
 0xf6f   :  { %7959 = vmatprep.subr.bf16.mxu1 %v11085_v56 }
 0xf71   :  { %7932 = vmatpush1.bf16.msra.mxu0 %v11090_v55 }
 0xf72   :  { %7934 = vmatprep.subr.bf16.mxu0 %v11091_v34  ;;  %7961 = vmatpush3.bf16.msra.mxu1 %v10023_v22 }
 0xf73   :  { %7962 = vmatprep.subr.bf16.mxu1 %v11085_v56 }
 0xf75   :  { %7936 = vmatpush1.bf16.msra.mxu0 %v11092_v31 }
 0xf76   :  { %7938 = vmatprep.subr.bf16.mxu0 %v11093_v39  ;;  %7964 = vmatpush3.bf16.msra.mxu1 %v11208_v35 }
 0xf77   :  { %7965 = vmatprep.subr.bf16.mxu1 %v11085_v56 }
 0xf79   :  { %7940 = vmatpush1.bf16.msra.mxu0 %v11209_v50 }
 0xf7a   :  { %7942 = vmatprep.subr.bf16.mxu0 %v11210_v4  ;;  %7967 = vmatpush3.bf16.msra.mxu1 %v11211_v5 }
 0xf7b   :  { %7968 = vmatprep.subr.bf16.mxu1 %v11085_v56 }
 0xf7d   :  { %7944 = vmatpush1.bf16.msra.mxu0 %v11212_v41  ;;  %v11233_v41 = vld [vmem:[#allocation15_spill] sm:$0xff] }
 0xf7e   :  { %7946 = vmatprep.subr.bf16.mxu0 %v11213_v11  ;;  %7970 = vmatpush3.bf16.msra.mxu1 %v11214_v3  ;;  %v11222_v3 = vld [vmem:[#allocation34_spill] sm:$0xff] }
 0xf7f   :  { %7971 = vmatprep.subr.bf16.mxu1 %v11085_v56  ;;  %v11226_v11 = vld [vmem:[#allocation38_spill] sm:$0xff] }
 0xf81   :  { %7948 = vmatpush1.bf16.msra.mxu0 %v11215_v61  ;;  %v11223_v61 = vld [vmem:[#allocation35_spill] sm:$0xff] }
 0xf82   :  { %7950 = vmatprep.subr.bf16.mxu0 %v11216_v7  ;;  %7973 = vmatpush3.bf16.msra.mxu1 %v11217_v30  ;;  %v11224_v7 = vld [vmem:[#allocation36_spill] sm:$0xff]  ;;  %v11225_v30 = vld [vmem:[#allocation37_spill] sm:$0xff] }
 0xf83   :  { %7974 = vmatprep.subr.bf16.mxu1 %v11085_v56 }
 0xf85   :  { %7952 = vmatpush1.bf16.msra.mxu0 %v11218_v18  ;;  %v11227_v18 = vld [vmem:[#allocation41_spill] sm:$0xff] }
 0xf86   :  { %7978 = vmatprep.subr.bf16.mxu0 %v11219_v25  ;;  %7976 = vmatpush3.bf16.msra.mxu1 %v11220_v2  ;;  %v11228_v25 = vld [vmem:[#allocation42_spill] sm:$0xff]  ;;  %v11229_v2 = vld [vmem:[#allocation11_spill] sm:$0xff] }
 0xf87   :  { %8010 = vmatprep.subr.bf16.mxu1 %v11221_v23  ;;  %v11230_v23 = vld [vmem:[#allocation12_spill] sm:$0xff] }
 0xf88   :  { %5108 = vmatmul.mubr.f32.vlgmr.msra.gmra.mrb[32].mxu0 %v5669_v12  ;;  %v11231_v12 = vld [vmem:[#allocation13_spill] sm:$0xff] }
 0xf89   :  { %7980 = vmatpush1.bf16.msra.mxu0 %v11222_v3  ;;  %5280 = vmatprep.mubr.f32.mxu0 %v10380_v37  ;;  %v11232_v3 = vld [vmem:[#allocation14_spill] sm:$0xff] }
 0xf8a   :  { %7982 = vmatprep.subr.bf16.mxu0 %v11223_v61  ;;  %v11234_v61 = vld [vmem:[#allocation16_spill] sm:$0xff] }
 0xf8d   :  { %7984 = vmatpush1.bf16.msra.mxu0 %v11224_v7  ;;  %v11235_v7 = vld [vmem:[#allocation17_spill] sm:$0xff] }
 0xf8e   :  { %7986 = vmatprep.subr.bf16.mxu0 %v11225_v30  ;;  %v11236_v30 = vld [vmem:[#allocation19_spill] sm:$0xff] }
 0xf91   :  { %7988 = vmatpush1.bf16.msra.mxu0 %v11226_v11  ;;  %v11237_v11 = vld [vmem:[#allocation21_spill] sm:$0xff] }
 0xf92   :  { %7990 = vmatprep.subr.bf16.mxu0 %v11227_v18 }
 0xf95   :  { %7992 = vmatpush1.bf16.msra.mxu0 %v11228_v25 }
 0xf96   :  { %7994 = vmatprep.subr.bf16.mxu0 %v11229_v2  ;;  %v10597_v2 = vld [vmem:[%s10706_s9] ss:$0 sm:$0xff] }
 0xf99   :  { %7996 = vmatpush1.bf16.msra.mxu0 %v11230_v23 }
 0xf9a   :  { %7998 = vmatprep.subr.bf16.mxu0 %v11231_v12 }
 0xf9d   :  { %8000 = vmatpush1.bf16.msra.mxu0 %v11232_v3 }
 0xf9e   :  { %8002 = vmatprep.subr.bf16.mxu0 %v11233_v41 }
 0xfa1   :  { %8004 = vmatpush1.bf16.msra.mxu0 %v11234_v61 }
 0xfa2   :  { %8006 = vmatprep.subr.bf16.mxu0 %v11235_v7 }
 0xfa5   :  { %8008 = vmatpush1.bf16.msra.mxu0 %v11236_v30 }
 0xfa6   :  { %8042 = vmatprep.subr.bf16.mxu0 %v11237_v11 }
0x101b   :  { %v4822_v18 = vpop.f32.mrb[30].mxu0 }
0x101c   :  { %v4823_v25 = vadd.f32 %v10597_v2, %v4822_v18  ;;  %v5970_v23 = vpop.f32.mrb[31].mxu0 }
0x101e   :  { %4827 = vst [vmem:[#allocation7 + $0x28] sm:$0xff] %v4823_v25 }
0x103b   :  { %v5038_v12 = vpop.f32.mrb[30].mxu1 }
0x103c   :  { %v5040_v41 = vpop.f32.mrb[31].mxu1  ;;  %v5114_v61 = vadd.f32 %v5038_v12, %v11207_v57 }
0x103d   :  { %v5115_v3 = vadd.f32 %v5040_v41, %v10088_v38 }
0x103e   :  { %v5670_v30 = vmul.f32 -1.442695, %v5114_v61 }
0x103f   :  { %v5671_v7 = vmul.f32 -1.442695, %v5115_v3 }
0x1041   :  { %8407 = vpow2.f32 %v5671_v7 }
0x1042   :  { %8409 = vpow2.f32 %v5670_v30 }
0x104b   :  { %v8408_v11 = vpop.eup %8407 }
0x104c   :  { %v8410_v5 = vpop.eup %8409  ;;  %v5127_v4 = vadd.f32 1.0, %v8408_v11 }
0x104d   :  { %v5121_v50 = vadd.f32 1.0, %v8410_v5 }
0x104e   :  { %8411 = vrcp.f32 %v5127_v4 }
0x104f   :  { %8413 = vrcp.f32 %v5121_v50 }
0x1058   :  { %v8412_v12 = vpop.eup %8411 }
0x1059   :  { %v8414_v3 = vpop.eup %8413  ;;  %v5137_v7 = vmul.f32 %v8412_v12, %v10502_v40 }
0x105b   :  { %v5109_v35 = vpop.f32.mrb[32].mxu0 }
0x105c   :  { %v5116_v18 = vadd.f32 %v5109_v35, %v10099_v48  ;;  %v5111_v23 = vpop.f32.mrb[33].mxu0 }
0x105d   :  { %v5117_v25 = vadd.f32 %v5111_v23, %v11114_v54 }
0x105e   :  { %8415 = vtanh.f32 %v5116_v18 }
0x105f   :  { %v5672_v41 = vmul.f32 -1.442695, %v5117_v25 }
0x1061   :  { %8417 = vpow2.f32 %v5672_v41 }
0x1068   :  { %v8416_v61 = vpop.eup %8415 }
0x1069   :  { %v5138_v30 = vmul.f32 %v8416_v61, %v8414_v3 }
0x106b   :  { %v8418_v57 = vpop.eup %8417  ;;  %v10605_v11 = vadd.f32 %v5138_v30, %v5137_v7 }
0x106c   :  { %v5134_v5 = vadd.f32 1.0, %v8418_v57 }
0x106d   :  { %8419 = vtanh.f32 %v10605_v11 }
0x106e   :  { %8421 = vrcp.f32 %v5134_v5 }
0x1077   :  { %v8420_v35 = vpop.eup %8419 }
0x1078   :  { %v8422_v50 = vpop.eup %8421 }
0x1079   :  { %v5141_v4 = vmul.f32 %v8422_v50, %v8420_v35 }
0x107b   :  { %6004 = vmatmul.mubr.f32.vlgmr.msra.gmra.mrb[32].mxu1 %v5141_v4  ;;  %5281 = vmatmul.mubr.f32.vlgmr.msra.gmra.mrb[34].mxu0 %v5141_v4 }
0x107c   :  { %8012 = vmatpush1.bf16.msra.mxu1 %v9778_v15  ;;  %8044 = vmatpush1.bf16.msra.mxu0 %v9881_v14  ;;  %v5673_v15 = vld [vmem:[%s10698_s1 + $0x30] sm:$0xff]  ;;  %s8522_s1 = smov [#allocation7]  }
0x107d   :  { %8014 = vmatprep.subr.bf16.mxu1 %v9785_v42  ;;  %8046 = vmatprep.subr.bf16.mxu0 %v9885_v59  ;;  %v11238_v42 = vld [vmem:[#allocation48_spill] sm:$0xff]  ;;  %s5605_s14 = sshll.u32 %s8522_s1, 4  ;;  %s5606_s14 = int_to_ptr.vmem [resolvable:$true] %s5605_s14 }
0x107e   :  { %5351 = vmatprep.mubr.f32.mxu1 %v10380_v37  ;;  %5422 = vmatprep.mubr.f32.mxu0 %v10380_v37  ;;  %s8487_s18 = scalar_lea.vmem %s5606_s14, 1024  ;;  %p8492_p3 = scmp.lt.s32.totalorder %s5606_s14, %s5606_s14 }
0x107f   :  { %p8488_p2 = scmp.ne.s32.totalorder %s5606_s14, %s8487_s18  ;;  %p8493_p4 = scmp.lt.s32.totalorder %s8487_s18, %s8487_s18 }
0x1080   :  { %8016 = vmatpush1.bf16.msra.mxu1 %v9790_v19  ;;  %8048 = vmatpush1.bf16.msra.mxu0 %v9891_v8  ;;  %v11239_v19 = vld [vmem:[#allocation31_spill] sm:$0xff] }
0x1081   :  { %8018 = vmatprep.subr.bf16.mxu1 %v9797_v36  ;;  %8050 = vmatprep.subr.bf16.mxu0 %v9897_v27  ;;  %v11240_v36 = vld [vmem:[#allocation40_spill] sm:$0xff]  ;;  %p8494_p5 = por %p8493_p4, %p8492_p3 }
0x1083   :  { %p8495_p6 = pnand %p8494_p5, %p8488_p2 }
0x1084   :  { %8020 = vmatpush1.bf16.msra.mxu1 %v9802_v63  ;;  %8052 = vmatpush1.bf16.msra.mxu0 %v9907_v62  ;;  %v11241_v63 = vld [vmem:[#allocation49_spill] sm:$0xff] }
0x1085   :  { %8022 = vmatprep.subr.bf16.mxu1 %v9809_v13  ;;  %8054 = vmatprep.subr.bf16.mxu0 %v9913_v49  ;;  %v11242_v13 = vld [vmem:[#allocation43_spill] sm:$0xff] }
0x1088   :  { %8024 = vmatpush1.bf16.msra.mxu1 %v9814_v26  ;;  %8056 = vmatpush1.bf16.msra.mxu0 %v9919_v9  ;;  %v11243_v26 = vld [vmem:[#allocation44_spill] sm:$0xff]  ;;  %v11250_v9 = vld [vmem:[#allocation39_spill] sm:$0xff] }
0x1089   :  { %8026 = vmatprep.subr.bf16.mxu1 %v9821_v45  ;;  %8058 = vmatprep.subr.bf16.mxu0 %v9925_v29  ;;  %v11244_v45 = vld [vmem:[#allocation50_spill] sm:$0xff] }
0x108c   :  { %8028 = vmatpush1.bf16.msra.mxu1 %v9826_v10  ;;  %8060 = vmatpush1.bf16.msra.mxu0 %v9931_v28  ;;  %v11245_v10 = vld [vmem:[#allocation45_spill] sm:$0xff] }
0x108d   :  { %8030 = vmatprep.subr.bf16.mxu1 %v9833_v32  ;;  %8062 = vmatprep.subr.bf16.mxu0 %v9937_v52  ;;  %v11246_v32 = vld [vmem:[#allocation46_spill] sm:$0xff] }
0x1090   :  { %8032 = vmatpush1.bf16.msra.mxu1 %v9838_v6  ;;  %8064 = vmatpush1.bf16.msra.mxu0 %v9943_v60  ;;  %v11247_v6 = vld [vmem:[#allocation51_spill] sm:$0xff] }
0x1091   :  { %8034 = vmatprep.subr.bf16.mxu1 %v9844_v58  ;;  %8066 = vmatprep.subr.bf16.mxu0 %v9949_v43  ;;  %v11248_v58 = vld [vmem:[#allocation47_spill] sm:$0xff] }
0x1094   :  { %8036 = vmatpush1.bf16.msra.mxu1 %v9851_v20  ;;  %8068 = vmatpush1.bf16.msra.mxu0 %v9955_v1  ;;  %v11249_v20 = vld [vmem:[#allocation52_spill] sm:$0xff] }
0x1095   :  { %8038 = vmatprep.subr.bf16.mxu1 %v11082_v47  ;;  %8070 = vmatprep.subr.bf16.mxu0 %v9961_v33 }
0x1098   :  { %8040 = vmatpush1.bf16.msra.mxu1 %v11083_v46  ;;  %8072 = vmatpush1.bf16.msra.mxu0 %v9967_v51 }
0x1099   :  { %8074 = vmatprep.subr.bf16.mxu1 %v11084_v21  ;;  %8105 = vmatprep.subr.bf16.mxu0 %v11085_v56 }
0x109b   :  { %5352 = vmatmul.mubr.f32.vlgmr.msra.gmra.mrb[34].mxu1 %v5141_v4  ;;  %5423 = vmatmul.mubr.f32.vlgmr.msra.gmra.mrb[34].mxu0 %v5673_v15 }
0x109c   :  { %8076 = vmatpush1.bf16.msra.mxu1 %v11086_v0  ;;  %5493 = vmatprep.mubr.f32.mxu1 %v10380_v37 }
0x109d   :  { %8078 = vmatprep.subr.bf16.mxu1 %v11087_v44  ;;  %8107 = vmatpush3.bf16.msra.mxu0 %v10002_v53 }
0x109e   :  { %8108 = vmatprep.subr.bf16.mxu0 %v11085_v56  ;;  %6038 = vmatprep.mubr.msk.f32.mxu0 %vm8521_vm0, %v10380_v37 }
0x10a0   :  { %8080 = vmatpush1.bf16.msra.mxu1 %v11088_v17 }
0x10a1   :  { %8082 = vmatprep.subr.bf16.mxu1 %v11089_v24  ;;  %8110 = vmatpush3.bf16.msra.mxu0 %v10013_v16 }
0x10a2   :  { %8111 = vmatprep.subr.bf16.mxu0 %v11085_v56 }
0x10a4   :  { %8084 = vmatpush1.bf16.msra.mxu1 %v11090_v55 }
0x10a5   :  { %8086 = vmatprep.subr.bf16.mxu1 %v11091_v34  ;;  %8113 = vmatpush3.bf16.msra.mxu0 %v10023_v22 }
0x10a6   :  { %8114 = vmatprep.subr.bf16.mxu0 %v11085_v56 }
0x10a8   :  { %8088 = vmatpush1.bf16.msra.mxu1 %v11092_v31 }
0x10a9   :  { %8090 = vmatprep.subr.bf16.mxu1 %v11093_v39  ;;  %8116 = vmatpush3.bf16.msra.mxu0 %v11238_v42 }
0x10aa   :  { %8117 = vmatprep.subr.bf16.mxu0 %v11085_v56 }
0x10ac   :  { %8092 = vmatpush1.bf16.msra.mxu1 %v11239_v19 }
0x10ad   :  { %8094 = vmatprep.subr.bf16.mxu1 %v11240_v36  ;;  %8119 = vmatpush3.bf16.msra.mxu0 %v11241_v63 }
0x10ae   :  { %8120 = vmatprep.subr.bf16.mxu0 %v11085_v56 }
0x10b0   :  { %8096 = vmatpush1.bf16.msra.mxu1 %v11242_v13 }
0x10b1   :  { %8098 = vmatprep.subr.bf16.mxu1 %v11243_v26  ;;  %8122 = vmatpush3.bf16.msra.mxu0 %v11244_v45 }
0x10b2   :  { %8123 = vmatprep.subr.bf16.mxu0 %v11085_v56 }
0x10b4   :  { %8100 = vmatpush1.bf16.msra.mxu1 %v11245_v10 }
0x10b5   :  { %8102 = vmatprep.subr.bf16.mxu1 %v11246_v32  ;;  %8125 = vmatpush3.bf16.msra.mxu0 %v11247_v6 }
0x10b6   :  { %8126 = vmatprep.subr.bf16.mxu0 %v11085_v56 }
0x10b8   :  { %8104 = vmatpush1.bf16.msra.mxu1 %v11248_v58 }
0x10b9   :  { %8128 = vmatpush3.bf16.msra.mxu0 %v11249_v20 }
0x10bb   :  { %5494 = vmatmul.mubr.f32.vlgmr.msra.gmra.mrb[34].mxu1 %v5673_v15 }
0x114e   :  { %v5208_v14 = vpop.f32.mrb[32].mxu1 }
0x114f   :  { %v5209_v59 = vadd.f32 %v10597_v2, %v5208_v14  ;;  %v6005_v8 = vpop.f32.mrb[33].mxu1 }
0x1151   :  { %5213 = vst [vmem:[#allocation7 + $0x30] sm:$0xff] %v5209_v59 }
0x116e   :  { %v5424_v27 = vpop.f32.mrb[34].mxu0 }
0x116f   :  { %v5426_v62 = vpop.f32.mrb[35].mxu0  ;;  %v5500_v29 = vadd.f32 %v5424_v27, %v11250_v9 }
0x1170   :  { %v5501_v49 = vadd.f32 %v5426_v62, %v10088_v38 }
0x1171   :  { %v5674_v52 = vmul.f32 -1.442695, %v5500_v29 }
0x1172   :  { %v5675_v28 = vmul.f32 -1.442695, %v5501_v49 }
0x1174   :  { %8423 = vpow2.f32 %v5675_v28 }
0x1175   :  { %8425 = vpow2.f32 %v5674_v52 }
0x117e   :  { %v8424_v60 = vpop.eup %8423 }
0x117f   :  { %v8426_v43 = vpop.eup %8425  ;;  %v5513_v1 = vadd.f32 1.0, %v8424_v60 }
0x1180   :  { %v5507_v33 = vadd.f32 1.0, %v8426_v43 }
0x1181   :  { %8427 = vrcp.f32 %v5513_v1 }
0x1182   :  { %8429 = vrcp.f32 %v5507_v33 }
0x118b   :  { %v8428_v47 = vpop.eup %8427 }
0x118c   :  { %v8430_v46 = vpop.eup %8429  ;;  %v5523_v56 = vmul.f32 %v8428_v47, %v10605_v11 }
0x118e   :  { %v5495_v51 = vpop.f32.mrb[34].mxu1 }
0x118f   :  { %v5502_v53 = vadd.f32 %v5495_v51, %v10099_v48  ;;  %v5497_v16 = vpop.f32.mrb[35].mxu1 }
0x1190   :  { %v5503_v22 = vadd.f32 %v5497_v16, %v11114_v54 }
0x1191   :  { %8431 = vtanh.f32 %v5502_v53 }
0x1192   :  { %v5676_v38 = vmul.f32 -1.442695, %v5503_v22 }
0x1194   :  { %8433 = vpow2.f32 %v5676_v38 }
0x119b   :  { %v8432_v21 = vpop.eup %8431 }
0x119c   :  { %v5524_v0 = vmul.f32 %v8432_v21, %v8430_v46 }
0x119e   :  { %v8434_v44 = vpop.eup %8433  ;;  %v5525_v17 = vadd.f32 %v5524_v0, %v5523_v56 }
0x119f   :  { %v5520_v24 = vadd.f32 1.0, %v8434_v44 }
0x11a0   :  { %8435 = vtanh.f32 %v5525_v17 }
0x11a1   :  { %8437 = vrcp.f32 %v5520_v24 }
0x11aa   :  { %v8436_v55 = vpop.eup %8435 }
0x11ab   :  { %v8438_v48 = vpop.eup %8437 }
0x11ac   :  { %v5527_v34 = vmul.f32 %v8438_v48, %v8436_v55 }
0x11ae   :  { %6039 = vmatmul.mubr.f32.vlgmr.msra.gmra.mrb[36].mxu0 %v5527_v34 }
0x1281   :  { %v5594_v31 = vpop.f32.mrb[36].mxu0 }
0x1282   :  { %v5595_v39 = vadd.f32 %v10597_v2, %v5594_v31  ;;  %v6040_v54 = vpop.f32.mrb[37].mxu0 }
0x1284   :  { %5599 = vst [vmem:[#allocation7 + $0x38] sm:$0xff] %v5595_v39 }
0x1285   :  { %8498 = shalt.err (!%p8495_p6)
}
0x1286   :  { %s8499_s20 = scalar_lea.hbm %s10707_s10, 1024 }
0x1287   :  { %p8500_p7 = scmp.ne.s32.totalorder %s10707_s10, %s8499_s20  ;;  %p8503_p8 = scmp.lt.u32.totalorder %s8499_s20, %s10707_s10 }
0x1289   :  { %p8505_p9 = pnand %p8503_p8, %p8500_p7 }
0x128b   :  { %8508 = shalt.err (!%p8505_p9)
}
0x128c   :  { %s8523_s23 = smov 128   ;;  %s8524_s24 = smov 8  }
0x128d   :  { %5611 = dma.vmem_to_hbm [thread:$0]  %s5606_s14, 1024, %s10707_s10, [#allocation4], %s8523_s23, %s8523_s23, %s8524_s24  }
0x128e   :  { %8513 = dma.done.wait [#allocation4], 1024  }
0x128f   :  { %8514 = vsyncadd [#allocation4], 4294966272 }
0x1290   :  { %5615 = vsyncpa [#allocation3], 1 }
0x1291   :  { %5616 = vsyncpa [#allocation6], 1 }
0x1292   :  { %5617 = vsyncpa [#allocation4], 1 }

</bundles_post_ra>
